<compile_context>
chip_gen: v5e
topology: v5e:2x2
jax: 0.10.0
libtpu: 0.0.40
codegen_flags: <defaults>
</compile_context>

<pallas_src>
import numpy as np
import jax
import jax.numpy as jnp
from jax.experimental import pallas as pl
from jax.experimental.pallas import tpu as pltpu


# ------------------------------------------------------------------ kernel

def _fcn_fused_kernel(xs_ref, wb_ref, bb_ref, wc_ref, bc_ref, rh_ref, rwt_ref,
                      o_ref):
    """Full FCN forward for one image (one grid step).

      xs_ref : (1, 4*Cin, Hh, Wh) f32  zero-padded input, 2x2 phase split
                                       (phase p = (i%2)*2 + (j%2), Hh = Hf+1)
      wb_ref : (9*F, Cin, 1, 1)   f32  3x3 conv weight, offset-major (k=i*3+j)
      bb_ref : (F, 1, 1)          f32  backbone bias
      wc_ref : (C, F, 1, 1)       f32  1x1 classifier weight
      bc_ref : (C, 1, 1)          f32  classifier bias
      rh_ref : (H, Hf)            f32  bilinear row-interp matrix
      rwt_ref: (Wf, W)            f32  bilinear col-interp matrix (transposed)
      o_ref  : (1, C, H, W)       f32  final upsampled logits
    """
    C = wc_ref.shape[0]
    F = wc_ref.shape[1]
    Cin = xs_ref.shape[1] // 4
    H, Hf = rh_ref.shape
    Wf, W = rwt_ref.shape

    # ---- backbone conv 3x3 / stride 2 / pad 1: patches built in VMEM --------
    # offset (i, j): x_pad[c, 2y+i, 2x+j] == phase(i%2, j%2)[c, y + i//2, x + j//2]
    feat = None
    for i in range(3):
        for j in range(3):
            p = (i % 2) * 2 + (j % 2)
            di, dj = i // 2, j // 2
            k = i * 3 + j
            view = xs_ref[0, p * Cin:(p + 1) * Cin, di:di + Hf, dj:dj + Wf]
            w_k = wb_ref[k * F:(k + 1) * F]                       # (F, Cin, 1, 1)
            contrib = jnp.sum(w_k * view[None], axis=1)           # (F, Hf, Wf)
            feat = contrib if feat is None else feat + contrib
    feat = jnp.maximum(feat + bb_ref[...], 0.0)                   # (F, Hf, Wf)

    # ---- 1x1 classifier (+bias), VPU broadcast-multiply-reduce --------------
    logits = jnp.sum(wc_ref[...] * feat[None], axis=1) + bc_ref[...]   # (C, Hf, Wf)

    # ---- bilinear upsample: out_c = Rh @ logits_c @ Rw^T (2 small MXU dots) --
    rh = rh_ref[...]
    rwt = rwt_ref[...]
    for c in range(C):
        t = jnp.dot(logits[c], rwt, preferred_element_type=jnp.float32)    # (Hf, W)
        o_ref[0, c] = jnp.dot(rh, t, preferred_element_type=jnp.float32)   # (H, W)


# ------------------------------------------------------------------ host-side glue

def _phase_split_2x2(x):
    """(N, C, H, W) -> zero-pad 1 each side, split into 2x2 spatial phases.

    out[n, p*C + c, a, b] = x_pad[n, c, 2a + p//2, 2b + p%2]
    Cost: one XLA pad+transpose over ~1.26x the input bytes (vs 2.25x write +
    2.25x re-read for the old HBM im2col).
    """
    N, C, H, W = x.shape
    assert H % 2 == 0 and W % 2 == 0, "even spatial dims expected"
    xp = jnp.pad(x, ((0, 0), (0, 0), (1, 1), (1, 1)))
    Hh, Wh = (H + 2) // 2, (W + 2) // 2
    x6 = xp.reshape(N, C, Hh, 2, Wh, 2)
    return x6.transpose(0, 3, 5, 1, 2, 4).reshape(N, 4 * C, Hh, Wh)


def _bilinear_matrix(out_size, in_size):
    # Matches torch F.interpolate(..., mode='bilinear', align_corners=False).
    scale = in_size / out_size
    dst = np.arange(out_size, dtype=np.float64)
    src = (dst + 0.5) * scale - 0.5
    src = np.clip(src, 0.0, None)
    x0 = np.minimum(np.floor(src).astype(np.int64), in_size - 1)
    x1 = np.minimum(x0 + 1, in_size - 1)
    w1 = src - x0
    w0 = 1.0 - w1
    M = np.zeros((out_size, in_size), dtype=np.float32)
    M[np.arange(out_size), x0] += w0.astype(np.float32)
    M[np.arange(out_size), x1] += w1.astype(np.float32)
    return jnp.asarray(M)


# ------------------------------------------------------------------ model

class SimpleSegmentationModelPallas:
    """backbone: Conv2d(cin->feat, k=3, s=2, p=1)+ReLU ; classifier: Conv2d(feat->C, 1x1)
    forward returns F.interpolate(classifier(backbone(x)), size=x.shape[-2:],
                                  mode='bilinear', align_corners=False)."""

    def __init__(self, key, cin=4, feat=8, num_classes=6):
        k1, k2, k3, k4 = jax.random.split(key, 4)
        self.cin, self.feat, self.num_classes = cin, feat, num_classes

        wb = jax.random.normal(k1, (feat, cin, 3, 3), jnp.float32) * 0.1
        bb = jax.random.normal(k2, (feat,), jnp.float32) * 0.1
        wc = jax.random.normal(k3, (num_classes, feat, 1, 1), jnp.float32) * 0.1
        bc = jax.random.normal(k4, (num_classes,), jnp.float32) * 0.1
        self._wb, self._bb, self._wc, self._bc = wb, bb, wc, bc   # for reference check

        # kernel-side weight layouts (precomputed once, f32):
        #   wb9[(i*3+j)*F + f, c, 0, 0] = wb[f, c, i, j]   (offset-major)
        self.wb9 = wb.transpose(2, 3, 0, 1).reshape(9 * feat, cin)[:, :, None, None]
        self.bb3 = bb.reshape(feat, 1, 1)
        self.wc4 = wc                                   # (C, F, 1, 1) already
        self.bc3 = bc.reshape(num_classes, 1, 1)

        self._interp_cache = {}
        self._forward = jax.jit(self._forward_impl)

    def _interp_matrices(self, Hf, Wf, H, W):
        key = (Hf, Wf, H, W)
        if key not in self._interp_cache:
            self._interp_cache[key] = (_bilinear_matrix(H, Hf),       # (H, Hf)
                                       _bilinear_matrix(W, Wf).T)     # (Wf, W)
        return self._interp_cache[key]

    def _forward_impl(self, x):
        # x: (N, Cin, H, W) float32, NCHW (PyTorch convention)
        N, Cin, H, W = x.shape
        C, F = self.num_classes, self.feat
        Hf = (H + 2 - 3) // 2 + 1          # conv3x3 / stride 2 / pad 1
        Wf = (W + 2 - 3) // 2 + 1
        Hh, Wh = Hf + 1, Wf + 1

        xs = _phase_split_2x2(x)                          # (N, 4*Cin, Hh, Wh)
        rh, rwt = self._interp_matrices(Hf, Wf, H, W)

        # VMEM per grid step (double-buffered): ~2*(4*Cin*Hh*Wh + C*H*W)*4B
        # -> ~30 KiB for this toy; spatial tiling would be added for huge images.
        return pl.pallas_call(
            _fcn_fused_kernel,
            grid=(N,),
            in_specs=[
                pl.BlockSpec((1, 4 * Cin, Hh, Wh), lambda n: (n, 0, 0, 0)),
                pl.BlockSpec((9 * F, Cin, 1, 1), lambda n: (0, 0, 0, 0)),
                pl.BlockSpec((F, 1, 1), lambda n: (0, 0, 0)),
                pl.BlockSpec((C, F, 1, 1), lambda n: (0, 0, 0, 0)),
                pl.BlockSpec((C, 1, 1), lambda n: (0, 0, 0)),
                pl.BlockSpec((H, Hf), lambda n: (0, 0)),
                pl.BlockSpec((Wf, W), lambda n: (0, 0)),
            ],
            out_specs=pl.BlockSpec((1, C, H, W), lambda n: (n, 0, 0, 0)),
            out_shape=jax.ShapeDtypeStruct((N, C, H, W), jnp.float32),
            compiler_params=pltpu.CompilerParams(
                dimension_semantics=("parallel",)),   # v7x: one image per TensorCore
        )(xs, self.wb9, self.bb3, self.wc4, self.bc3, rh, rwt)

    def __call__(self, x):
        return self._forward(x)


# ------------------------------------------------------------------ pure-JAX reference

def _reference_forward(x, wb, bb, wc, bc):
    hi = jax.lax.Precision.HIGHEST
    feat = jax.lax.conv_general_dilated(
        x, wb, window_strides=(2, 2), padding=((1, 1), (1, 1)),
        dimension_numbers=('NCHW', 'OIHW', 'NCHW'), precision=hi)
    feat = jnp.maximum(feat + bb[None, :, None, None], 0.0)
    logits = jax.lax.conv_general_dilated(
        feat, wc, window_strides=(1, 1), padding='VALID',
        dimension_numbers=('NCHW', 'OIHW', 'NCHW'), precision=hi)
    logits = logits + bc[None, :, None, None]
    H, W = x.shape[-2:]
    rh = _bilinear_matrix(H, logits.shape[-2])
    rw = _bilinear_matrix(W, logits.shape[-1])
    return jnp.einsum('yh,nchw,xw->ncyx', rh, logits, rw, precision=hi)


# ------------------------------------------------------------------ main

if __name__ == "__main__":
    key = jax.random.PRNGKey(0)
    k_in, k_par = jax.random.split(key)
    x = jax.random.normal(k_in, (2, 4, 16, 16), jnp.float32)      # NCHW

    model = SimpleSegmentationModelPallas(k_par, cin=4, feat=8, num_classes=6)
    out = jax.block_until_ready(model(x))
    assert out.shape == (2, 6, 16, 16), out.shape
    assert bool(jnp.all(jnp.isfinite(out)))

    ref = jax.block_until_ready(_reference_forward(
        x, model._wb, model._bb, model._wc, model._bc))
    np.testing.assert_allclose(np.asarray(out), np.asarray(ref),
                               atol=1e-2, rtol=1e-2)

    print("KERNEL_OK")
</pallas_src>

<mosaic_0001>
module attributes {stable_mosaic.version = 11 : i64} {
  func.func @_fcn_fused_kernel(%arg0: i32, %arg1: memref<1x16x9x9xf32, #tpu.memory_space<vmem>>, %arg2: memref<72x4x1x1xf32, #tpu.memory_space<vmem>>, %arg3: memref<8x1x1xf32, #tpu.memory_space<vmem>>, %arg4: memref<6x8x1x1xf32, #tpu.memory_space<vmem>>, %arg5: memref<6x1x1xf32, #tpu.memory_space<vmem>>, %arg6: memref<16x8xf32, #tpu.memory_space<vmem>>, %arg7: memref<8x16xf32, #tpu.memory_space<vmem>>, %arg8: memref<1x6x16x16xf32, #tpu.memory_space<vmem>>) attributes {dimension_semantics = [#tpu.dimension_semantics<parallel>], iteration_bounds = array<i64: 2>, scalar_prefetch = 0 : i64, scratch_operands = 0 : i64, tpu.core_type = #tpu.core_type<tc>, window_params = [{transform_indices = @transform_0, window_bounds = array<i64: 1, 16, 9, 9>}, {pipeline_mode = #tpu.pipeline_mode<synchronous>, transform_indices = @transform_1, window_bounds = array<i64: 72, 4, 1, 1>}, {pipeline_mode = #tpu.pipeline_mode<synchronous>, transform_indices = @transform_2, window_bounds = array<i64: 8, 1, 1>}, {pipeline_mode = #tpu.pipeline_mode<synchronous>, transform_indices = @transform_3, window_bounds = array<i64: 6, 8, 1, 1>}, {pipeline_mode = #tpu.pipeline_mode<synchronous>, transform_indices = @transform_4, window_bounds = array<i64: 6, 1, 1>}, {pipeline_mode = #tpu.pipeline_mode<synchronous>, transform_indices = @transform_5, window_bounds = array<i64: 16, 8>}, {pipeline_mode = #tpu.pipeline_mode<synchronous>, transform_indices = @transform_6, window_bounds = array<i64: 8, 16>}, {transform_indices = @transform_7, window_bounds = array<i64: 1, 6, 16, 16>}]} {
    %c0 = arith.constant 0 : index
    %c0_0 = arith.constant 0 : index
    %c0_1 = arith.constant 0 : index
    %c0_2 = arith.constant 0 : index
    %0 = vector.load %arg1[%c0, %c0_0, %c0_1, %c0_2] : memref<1x16x9x9xf32, #tpu.memory_space<vmem>>, vector<1x4x8x8xf32>
    %1 = vector.shape_cast %0 : vector<1x4x8x8xf32> to vector<4x8x8xf32>
    %c0_3 = arith.constant 0 : index
    %c0_4 = arith.constant 0 : index
    %c0_5 = arith.constant 0 : index
    %c0_6 = arith.constant 0 : index
    %2 = vector.load %arg2[%c0_3, %c0_4, %c0_5, %c0_6] : memref<72x4x1x1xf32, #tpu.memory_space<vmem>>, vector<8x4x1x1xf32>
    %3 = vector.shape_cast %1 : vector<4x8x8xf32> to vector<1x4x8x8xf32>
    %4 = vector.broadcast %2 : vector<8x4x1x1xf32> to vector<8x4x8x8xf32>
    %5 = vector.broadcast %3 : vector<1x4x8x8xf32> to vector<8x4x8x8xf32>
    %6 = arith.mulf %4, %5 : vector<8x4x8x8xf32>
    %cst = arith.constant dense<0.000000e+00> : vector<8x8x8xf32>
    %7 = vector.multi_reduction <add>, %6, %cst [1] : vector<8x4x8x8xf32> to vector<8x8x8xf32>
    %c0_7 = arith.constant 0 : index
    %c4 = arith.constant 4 : index
    %c0_8 = arith.constant 0 : index
    %c0_9 = arith.constant 0 : index
    %8 = vector.load %arg1[%c0_7, %c4, %c0_8, %c0_9] : memref<1x16x9x9xf32, #tpu.memory_space<vmem>>, vector<1x4x8x8xf32>
    %9 = vector.shape_cast %8 : vector<1x4x8x8xf32> to vector<4x8x8xf32>
    %c8 = arith.constant 8 : index
    %c0_10 = arith.constant 0 : index
    %c0_11 = arith.constant 0 : index
    %c0_12 = arith.constant 0 : index
    %10 = vector.load %arg2[%c8, %c0_10, %c0_11, %c0_12] : memref<72x4x1x1xf32, #tpu.memory_space<vmem>>, vector<8x4x1x1xf32>
    %11 = vector.shape_cast %9 : vector<4x8x8xf32> to vector<1x4x8x8xf32>
    %12 = vector.broadcast %10 : vector<8x4x1x1xf32> to vector<8x4x8x8xf32>
    %13 = vector.broadcast %11 : vector<1x4x8x8xf32> to vector<8x4x8x8xf32>
    %14 = arith.mulf %12, %13 : vector<8x4x8x8xf32>
    %cst_13 = arith.constant dense<0.000000e+00> : vector<8x8x8xf32>
    %15 = vector.multi_reduction <add>, %14, %cst_13 [1] : vector<8x4x8x8xf32> to vector<8x8x8xf32>
    %16 = arith.addf %7, %15 : vector<8x8x8xf32>
    %c0_14 = arith.constant 0 : index
    %c0_15 = arith.constant 0 : index
    %c0_16 = arith.constant 0 : index
    %c1 = arith.constant 1 : index
    %17 = vector.load %arg1[%c0_14, %c0_15, %c0_16, %c1] : memref<1x16x9x9xf32, #tpu.memory_space<vmem>>, vector<1x4x8x8xf32>
    %18 = vector.shape_cast %17 : vector<1x4x8x8xf32> to vector<4x8x8xf32>
    %c16 = arith.constant 16 : index
    %c0_17 = arith.constant 0 : index
    %c0_18 = arith.constant 0 : index
    %c0_19 = arith.constant 0 : index
    %19 = vector.load %arg2[%c16, %c0_17, %c0_18, %c0_19] : memref<72x4x1x1xf32, #tpu.memory_space<vmem>>, vector<8x4x1x1xf32>
    %20 = vector.shape_cast %18 : vector<4x8x8xf32> to vector<1x4x8x8xf32>
    %21 = vector.broadcast %19 : vector<8x4x1x1xf32> to vector<8x4x8x8xf32>
    %22 = vector.broadcast %20 : vector<1x4x8x8xf32> to vector<8x4x8x8xf32>
    %23 = arith.mulf %21, %22 : vector<8x4x8x8xf32>
    %cst_20 = arith.constant dense<0.000000e+00> : vector<8x8x8xf32>
    %24 = vector.multi_reduction <add>, %23, %cst_20 [1] : vector<8x4x8x8xf32> to vector<8x8x8xf32>
    %25 = arith.addf %16, %24 : vector<8x8x8xf32>
    %c0_21 = arith.constant 0 : index
    %c8_22 = arith.constant 8 : index
    %c0_23 = arith.constant 0 : index
    %c0_24 = arith.constant 0 : index
    %26 = vector.load %arg1[%c0_21, %c8_22, %c0_23, %c0_24] : memref<1x16x9x9xf32, #tpu.memory_space<vmem>>, vector<1x4x8x8xf32>
    %27 = vector.shape_cast %26 : vector<1x4x8x8xf32> to vector<4x8x8xf32>
    %c24 = arith.constant 24 : index
    %c0_25 = arith.constant 0 : index
    %c0_26 = arith.constant 0 : index
    %c0_27 = arith.constant 0 : index
    %28 = vector.load %arg2[%c24, %c0_25, %c0_26, %c0_27] : memref<72x4x1x1xf32, #tpu.memory_space<vmem>>, vector<8x4x1x1xf32>
    %29 = vector.shape_cast %27 : vector<4x8x8xf32> to vector<1x4x8x8xf32>
    %30 = vector.broadcast %28 : vector<8x4x1x1xf32> to vector<8x4x8x8xf32>
    %31 = vector.broadcast %29 : vector<1x4x8x8xf32> to vector<8x4x8x8xf32>
    %32 = arith.mulf %30, %31 : vector<8x4x8x8xf32>
    %cst_28 = arith.constant dense<0.000000e+00> : vector<8x8x8xf32>
    %33 = vector.multi_reduction <add>, %32, %cst_28 [1] : vector<8x4x8x8xf32> to vector<8x8x8xf32>
    %34 = arith.addf %25, %33 : vector<8x8x8xf32>
    %c0_29 = arith.constant 0 : index
    %c12 = arith.constant 12 : index
    %c0_30 = arith.constant 0 : index
    %c0_31 = arith.constant 0 : index
    %35 = vector.load %arg1[%c0_29, %c12, %c0_30, %c0_31] : memref<1x16x9x9xf32, #tpu.memory_space<vmem>>, vector<1x4x8x8xf32>
    %36 = vector.shape_cast %35 : vector<1x4x8x8xf32> to vector<4x8x8xf32>
    %c32 = arith.constant 32 : index
    %c0_32 = arith.constant 0 : index
    %c0_33 = arith.constant 0 : index
    %c0_34 = arith.constant 0 : index
    %37 = vector.load %arg2[%c32, %c0_32, %c0_33, %c0_34] : memref<72x4x1x1xf32, #tpu.memory_space<vmem>>, vector<8x4x1x1xf32>
    %38 = vector.shape_cast %36 : vector<4x8x8xf32> to vector<1x4x8x8xf32>
    %39 = vector.broadcast %37 : vector<8x4x1x1xf32> to vector<8x4x8x8xf32>
    %40 = vector.broadcast %38 : vector<1x4x8x8xf32> to vector<8x4x8x8xf32>
    %41 = arith.mulf %39, %40 : vector<8x4x8x8xf32>
    %cst_35 = arith.constant dense<0.000000e+00> : vector<8x8x8xf32>
    %42 = vector.multi_reduction <add>, %41, %cst_35 [1] : vector<8x4x8x8xf32> to vector<8x8x8xf32>
    %43 = arith.addf %34, %42 : vector<8x8x8xf32>
    %c0_36 = arith.constant 0 : index
    %c8_37 = arith.constant 8 : index
    %c0_38 = arith.constant 0 : index
    %c1_39 = arith.constant 1 : index
    %44 = vector.load %arg1[%c0_36, %c8_37, %c0_38, %c1_39] : memref<1x16x9x9xf32, #tpu.memory_space<vmem>>, vector<1x4x8x8xf32>
    %45 = vector.shape_cast %44 : vector<1x4x8x8xf32> to vector<4x8x8xf32>
    %c40 = arith.constant 40 : index
    %c0_40 = arith.constant 0 : index
    %c0_41 = arith.constant 0 : index
    %c0_42 = arith.constant 0 : index
    %46 = vector.load %arg2[%c40, %c0_40, %c0_41, %c0_42] : memref<72x4x1x1xf32, #tpu.memory_space<vmem>>, vector<8x4x1x1xf32>
    %47 = vector.shape_cast %45 : vector<4x8x8xf32> to vector<1x4x8x8xf32>
    %48 = vector.broadcast %46 : vector<8x4x1x1xf32> to vector<8x4x8x8xf32>
    %49 = vector.broadcast %47 : vector<1x4x8x8xf32> to vector<8x4x8x8xf32>
    %50 = arith.mulf %48, %49 : vector<8x4x8x8xf32>
    %cst_43 = arith.constant dense<0.000000e+00> : vector<8x8x8xf32>
    %51 = vector.multi_reduction <add>, %50, %cst_43 [1] : vector<8x4x8x8xf32> to vector<8x8x8xf32>
    %52 = arith.addf %43, %51 : vector<8x8x8xf32>
    %c0_44 = arith.constant 0 : index
    %c0_45 = arith.constant 0 : index
    %c1_46 = arith.constant 1 : index
    %c0_47 = arith.constant 0 : index
    %53 = vector.load %arg1[%c0_44, %c0_45, %c1_46, %c0_47] : memref<1x16x9x9xf32, #tpu.memory_space<vmem>>, vector<1x4x8x8xf32>
    %54 = vector.shape_cast %53 : vector<1x4x8x8xf32> to vector<4x8x8xf32>
    %c48 = arith.constant 48 : index
    %c0_48 = arith.constant 0 : index
    %c0_49 = arith.constant 0 : index
    %c0_50 = arith.constant 0 : index
    %55 = vector.load %arg2[%c48, %c0_48, %c0_49, %c0_50] : memref<72x4x1x1xf32, #tpu.memory_space<vmem>>, vector<8x4x1x1xf32>
    %56 = vector.shape_cast %54 : vector<4x8x8xf32> to vector<1x4x8x8xf32>
    %57 = vector.broadcast %55 : vector<8x4x1x1xf32> to vector<8x4x8x8xf32>
    %58 = vector.broadcast %56 : vector<1x4x8x8xf32> to vector<8x4x8x8xf32>
    %59 = arith.mulf %57, %58 : vector<8x4x8x8xf32>
    %cst_51 = arith.constant dense<0.000000e+00> : vector<8x8x8xf32>
    %60 = vector.multi_reduction <add>, %59, %cst_51 [1] : vector<8x4x8x8xf32> to vector<8x8x8xf32>
    %61 = arith.addf %52, %60 : vector<8x8x8xf32>
    %c0_52 = arith.constant 0 : index
    %c4_53 = arith.constant 4 : index
    %c1_54 = arith.constant 1 : index
    %c0_55 = arith.constant 0 : index
    %62 = vector.load %arg1[%c0_52, %c4_53, %c1_54, %c0_55] : memref<1x16x9x9xf32, #tpu.memory_space<vmem>>, vector<1x4x8x8xf32>
    %63 = vector.shape_cast %62 : vector<1x4x8x8xf32> to vector<4x8x8xf32>
    %c56 = arith.constant 56 : index
    %c0_56 = arith.constant 0 : index
    %c0_57 = arith.constant 0 : index
    %c0_58 = arith.constant 0 : index
    %64 = vector.load %arg2[%c56, %c0_56, %c0_57, %c0_58] : memref<72x4x1x1xf32, #tpu.memory_space<vmem>>, vector<8x4x1x1xf32>
    %65 = vector.shape_cast %63 : vector<4x8x8xf32> to vector<1x4x8x8xf32>
    %66 = vector.broadcast %64 : vector<8x4x1x1xf32> to vector<8x4x8x8xf32>
    %67 = vector.broadcast %65 : vector<1x4x8x8xf32> to vector<8x4x8x8xf32>
    %68 = arith.mulf %66, %67 : vector<8x4x8x8xf32>
    %cst_59 = arith.constant dense<0.000000e+00> : vector<8x8x8xf32>
    %69 = vector.multi_reduction <add>, %68, %cst_59 [1] : vector<8x4x8x8xf32> to vector<8x8x8xf32>
    %70 = arith.addf %61, %69 : vector<8x8x8xf32>
    %c0_60 = arith.constant 0 : index
    %c0_61 = arith.constant 0 : index
    %c1_62 = arith.constant 1 : index
    %c1_63 = arith.constant 1 : index
    %71 = vector.load %arg1[%c0_60, %c0_61, %c1_62, %c1_63] : memref<1x16x9x9xf32, #tpu.memory_space<vmem>>, vector<1x4x8x8xf32>
    %72 = vector.shape_cast %71 : vector<1x4x8x8xf32> to vector<4x8x8xf32>
    %c64 = arith.constant 64 : index
    %c0_64 = arith.constant 0 : index
    %c0_65 = arith.constant 0 : index
    %c0_66 = arith.constant 0 : index
    %73 = vector.load %arg2[%c64, %c0_64, %c0_65, %c0_66] : memref<72x4x1x1xf32, #tpu.memory_space<vmem>>, vector<8x4x1x1xf32>
    %74 = vector.shape_cast %72 : vector<4x8x8xf32> to vector<1x4x8x8xf32>
    %75 = vector.broadcast %73 : vector<8x4x1x1xf32> to vector<8x4x8x8xf32>
    %76 = vector.broadcast %74 : vector<1x4x8x8xf32> to vector<8x4x8x8xf32>
    %77 = arith.mulf %75, %76 : vector<8x4x8x8xf32>
    %cst_67 = arith.constant dense<0.000000e+00> : vector<8x8x8xf32>
    %78 = vector.multi_reduction <add>, %77, %cst_67 [1] : vector<8x4x8x8xf32> to vector<8x8x8xf32>
    %79 = arith.addf %70, %78 : vector<8x8x8xf32>
    %c0_68 = arith.constant 0 : index
    %c0_69 = arith.constant 0 : index
    %c0_70 = arith.constant 0 : index
    %80 = vector.load %arg3[%c0_68, %c0_69, %c0_70] : memref<8x1x1xf32, #tpu.memory_space<vmem>>, vector<8x1x1xf32>
    %81 = vector.broadcast %80 : vector<8x1x1xf32> to vector<8x8x8xf32>
    %82 = arith.addf %79, %81 : vector<8x8x8xf32>
    %cst_71 = arith.constant 0.000000e+00 : f32
    %83 = vector.broadcast %cst_71 : f32 to vector<8x8x8xf32>
    %84 = arith.maximumf %82, %83 : vector<8x8x8xf32>
    %c0_72 = arith.constant 0 : index
    %c0_73 = arith.constant 0 : index
    %c0_74 = arith.constant 0 : index
    %c0_75 = arith.constant 0 : index
    %85 = vector.load %arg4[%c0_72, %c0_73, %c0_74, %c0_75] : memref<6x8x1x1xf32, #tpu.memory_space<vmem>>, vector<6x8x1x1xf32>
    %86 = vector.shape_cast %84 : vector<8x8x8xf32> to vector<1x8x8x8xf32>
    %87 = vector.broadcast %85 : vector<6x8x1x1xf32> to vector<6x8x8x8xf32>
    %88 = vector.broadcast %86 : vector<1x8x8x8xf32> to vector<6x8x8x8xf32>
    %89 = arith.mulf %87, %88 : vector<6x8x8x8xf32>
    %cst_76 = arith.constant dense<0.000000e+00> : vector<6x8x8xf32>
    %90 = vector.multi_reduction <add>, %89, %cst_76 [1] : vector<6x8x8x8xf32> to vector<6x8x8xf32>
    %c0_77 = arith.constant 0 : index
    %c0_78 = arith.constant 0 : index
    %c0_79 = arith.constant 0 : index
    %91 = vector.load %arg5[%c0_77, %c0_78, %c0_79] : memref<6x1x1xf32, #tpu.memory_space<vmem>>, vector<6x1x1xf32>
    %92 = vector.broadcast %91 : vector<6x1x1xf32> to vector<6x8x8xf32>
    %93 = arith.addf %90, %92 : vector<6x8x8xf32>
    %c0_80 = arith.constant 0 : index
    %c0_81 = arith.constant 0 : index
    %94 = vector.load %arg6[%c0_80, %c0_81] : memref<16x8xf32, #tpu.memory_space<vmem>>, vector<16x8xf32>
    %c0_82 = arith.constant 0 : index
    %c0_83 = arith.constant 0 : index
    %95 = vector.load %arg7[%c0_82, %c0_83] : memref<8x16xf32, #tpu.memory_space<vmem>>, vector<8x16xf32>
    %96 = vector.extract_strided_slice %93 {offsets = [0, 0, 0], sizes = [1, 8, 8], strides = [1, 1, 1]} : vector<6x8x8xf32> to vector<1x8x8xf32>
    %97 = vector.shape_cast %96 : vector<1x8x8xf32> to vector<8x8xf32>
    %cst_84 = arith.constant dense<0.000000e+00> : vector<8x16xf32>
    %98 = tpu.matmul %97, %95, %cst_84 {dimension_numbers = #tpu.dot_dimension_numbers<[1], [0], [0], [1], [0, 0, 1, 1], [], []>} : vector<8x8xf32>, vector<8x16xf32>, vector<8x16xf32> -> vector<8x16xf32>
    %cst_85 = arith.constant dense<0.000000e+00> : vector<16x16xf32>
    %99 = tpu.matmul %94, %98, %cst_85 {dimension_numbers = #tpu.dot_dimension_numbers<[1], [0], [0], [1], [0, 0, 1, 1], [], []>} : vector<16x8xf32>, vector<8x16xf32>, vector<16x16xf32> -> vector<16x16xf32>
    %c0_86 = arith.constant 0 : index
    %c0_87 = arith.constant 0 : index
    %c0_88 = arith.constant 0 : index
    %c0_89 = arith.constant 0 : index
    %100 = vector.load %arg8[%c0_86, %c0_87, %c0_88, %c0_89] : memref<1x6x16x16xf32, #tpu.memory_space<vmem>>, vector<1x1x16x16xf32>
    %101 = vector.shape_cast %100 : vector<1x1x16x16xf32> to vector<16x16xf32>
    %102 = vector.shape_cast %99 : vector<16x16xf32> to vector<1x1x16x16xf32>
    tpu.vector_store %arg8[%c0_86, %c0_87, %c0_88, %c0_89], %102 {strides = array<i32>} : memref<1x6x16x16xf32, #tpu.memory_space<vmem>>, vector<1x1x16x16xf32>,
    %103 = vector.extract_strided_slice %93 {offsets = [1, 0, 0], sizes = [1, 8, 8], strides = [1, 1, 1]} : vector<6x8x8xf32> to vector<1x8x8xf32>
    %104 = vector.shape_cast %103 : vector<1x8x8xf32> to vector<8x8xf32>
    %cst_90 = arith.constant dense<0.000000e+00> : vector<8x16xf32>
    %105 = tpu.matmul %104, %95, %cst_90 {dimension_numbers = #tpu.dot_dimension_numbers<[1], [0], [0], [1], [0, 0, 1, 1], [], []>} : vector<8x8xf32>, vector<8x16xf32>, vector<8x16xf32> -> vector<8x16xf32>
    %cst_91 = arith.constant dense<0.000000e+00> : vector<16x16xf32>
    %106 = tpu.matmul %94, %105, %cst_91 {dimension_numbers = #tpu.dot_dimension_numbers<[1], [0], [0], [1], [0, 0, 1, 1], [], []>} : vector<16x8xf32>, vector<8x16xf32>, vector<16x16xf32> -> vector<16x16xf32>
    %c0_92 = arith.constant 0 : index
    %c1_93 = arith.constant 1 : index
    %c0_94 = arith.constant 0 : index
    %c0_95 = arith.constant 0 : index
    %107 = vector.load %arg8[%c0_92, %c1_93, %c0_94, %c0_95] : memref<1x6x16x16xf32, #tpu.memory_space<vmem>>, vector<1x1x16x16xf32>
    %108 = vector.shape_cast %107 : vector<1x1x16x16xf32> to vector<16x16xf32>
    %109 = vector.shape_cast %106 : vector<16x16xf32> to vector<1x1x16x16xf32>
    tpu.vector_store %arg8[%c0_92, %c1_93, %c0_94, %c0_95], %109 {strides = array<i32>} : memref<1x6x16x16xf32, #tpu.memory_space<vmem>>, vector<1x1x16x16xf32>,
    %110 = vector.extract_strided_slice %93 {offsets = [2, 0, 0], sizes = [1, 8, 8], strides = [1, 1, 1]} : vector<6x8x8xf32> to vector<1x8x8xf32>
    %111 = vector.shape_cast %110 : vector<1x8x8xf32> to vector<8x8xf32>
    %cst_96 = arith.constant dense<0.000000e+00> : vector<8x16xf32>
    %112 = tpu.matmul %111, %95, %cst_96 {dimension_numbers = #tpu.dot_dimension_numbers<[1], [0], [0], [1], [0, 0, 1, 1], [], []>} : vector<8x8xf32>, vector<8x16xf32>, vector<8x16xf32> -> vector<8x16xf32>
    %cst_97 = arith.constant dense<0.000000e+00> : vector<16x16xf32>
    %113 = tpu.matmul %94, %112, %cst_97 {dimension_numbers = #tpu.dot_dimension_numbers<[1], [0], [0], [1], [0, 0, 1, 1], [], []>} : vector<16x8xf32>, vector<8x16xf32>, vector<16x16xf32> -> vector<16x16xf32>
    %c0_98 = arith.constant 0 : index
    %c2 = arith.constant 2 : index
    %c0_99 = arith.constant 0 : index
    %c0_100 = arith.constant 0 : index
    %114 = vector.load %arg8[%c0_98, %c2, %c0_99, %c0_100] : memref<1x6x16x16xf32, #tpu.memory_space<vmem>>, vector<1x1x16x16xf32>
    %115 = vector.shape_cast %114 : vector<1x1x16x16xf32> to vector<16x16xf32>
    %116 = vector.shape_cast %113 : vector<16x16xf32> to vector<1x1x16x16xf32>
    tpu.vector_store %arg8[%c0_98, %c2, %c0_99, %c0_100], %116 {strides = array<i32>} : memref<1x6x16x16xf32, #tpu.memory_space<vmem>>, vector<1x1x16x16xf32>,
    %117 = vector.extract_strided_slice %93 {offsets = [3, 0, 0], sizes = [1, 8, 8], strides = [1, 1, 1]} : vector<6x8x8xf32> to vector<1x8x8xf32>
    %118 = vector.shape_cast %117 : vector<1x8x8xf32> to vector<8x8xf32>
    %cst_101 = arith.constant dense<0.000000e+00> : vector<8x16xf32>
    %119 = tpu.matmul %118, %95, %cst_101 {dimension_numbers = #tpu.dot_dimension_numbers<[1], [0], [0], [1], [0, 0, 1, 1], [], []>} : vector<8x8xf32>, vector<8x16xf32>, vector<8x16xf32> -> vector<8x16xf32>
    %cst_102 = arith.constant dense<0.000000e+00> : vector<16x16xf32>
    %120 = tpu.matmul %94, %119, %cst_102 {dimension_numbers = #tpu.dot_dimension_numbers<[1], [0], [0], [1], [0, 0, 1, 1], [], []>} : vector<16x8xf32>, vector<8x16xf32>, vector<16x16xf32> -> vector<16x16xf32>
    %c0_103 = arith.constant 0 : index
    %c3 = arith.constant 3 : index
    %c0_104 = arith.constant 0 : index
    %c0_105 = arith.constant 0 : index
    %121 = vector.load %arg8[%c0_103, %c3, %c0_104, %c0_105] : memref<1x6x16x16xf32, #tpu.memory_space<vmem>>, vector<1x1x16x16xf32>
    %122 = vector.shape_cast %121 : vector<1x1x16x16xf32> to vector<16x16xf32>
    %123 = vector.shape_cast %120 : vector<16x16xf32> to vector<1x1x16x16xf32>
    tpu.vector_store %arg8[%c0_103, %c3, %c0_104, %c0_105], %123 {strides = array<i32>} : memref<1x6x16x16xf32, #tpu.memory_space<vmem>>, vector<1x1x16x16xf32>,
    %124 = vector.extract_strided_slice %93 {offsets = [4, 0, 0], sizes = [1, 8, 8], strides = [1, 1, 1]} : vector<6x8x8xf32> to vector<1x8x8xf32>
    %125 = vector.shape_cast %124 : vector<1x8x8xf32> to vector<8x8xf32>
    %cst_106 = arith.constant dense<0.000000e+00> : vector<8x16xf32>
    %126 = tpu.matmul %125, %95, %cst_106 {dimension_numbers = #tpu.dot_dimension_numbers<[1], [0], [0], [1], [0, 0, 1, 1], [], []>} : vector<8x8xf32>, vector<8x16xf32>, vector<8x16xf32> -> vector<8x16xf32>
    %cst_107 = arith.constant dense<0.000000e+00> : vector<16x16xf32>
    %127 = tpu.matmul %94, %126, %cst_107 {dimension_numbers = #tpu.dot_dimension_numbers<[1], [0], [0], [1], [0, 0, 1, 1], [], []>} : vector<16x8xf32>, vector<8x16xf32>, vector<16x16xf32> -> vector<16x16xf32>
    %c0_108 = arith.constant 0 : index
    %c4_109 = arith.constant 4 : index
    %c0_110 = arith.constant 0 : index
    %c0_111 = arith.constant 0 : index
    %128 = vector.load %arg8[%c0_108, %c4_109, %c0_110, %c0_111] : memref<1x6x16x16xf32, #tpu.memory_space<vmem>>, vector<1x1x16x16xf32>
    %129 = vector.shape_cast %128 : vector<1x1x16x16xf32> to vector<16x16xf32>
    %130 = vector.shape_cast %127 : vector<16x16xf32> to vector<1x1x16x16xf32>
    tpu.vector_store %arg8[%c0_108, %c4_109, %c0_110, %c0_111], %130 {strides = array<i32>} : memref<1x6x16x16xf32, #tpu.memory_space<vmem>>, vector<1x1x16x16xf32>,
    %131 = vector.extract_strided_slice %93 {offsets = [5, 0, 0], sizes = [1, 8, 8], strides = [1, 1, 1]} : vector<6x8x8xf32> to vector<1x8x8xf32>
    %132 = vector.shape_cast %131 : vector<1x8x8xf32> to vector<8x8xf32>
    %cst_112 = arith.constant dense<0.000000e+00> : vector<8x16xf32>
    %133 = tpu.matmul %132, %95, %cst_112 {dimension_numbers = #tpu.dot_dimension_numbers<[1], [0], [0], [1], [0, 0, 1, 1], [], []>} : vector<8x8xf32>, vector<8x16xf32>, vector<8x16xf32> -> vector<8x16xf32>
    %cst_113 = arith.constant dense<0.000000e+00> : vector<16x16xf32>
    %134 = tpu.matmul %94, %133, %cst_113 {dimension_numbers = #tpu.dot_dimension_numbers<[1], [0], [0], [1], [0, 0, 1, 1], [], []>} : vector<16x8xf32>, vector<8x16xf32>, vector<16x16xf32> -> vector<16x16xf32>
    %c0_114 = arith.constant 0 : index
    %c5 = arith.constant 5 : index
    %c0_115 = arith.constant 0 : index
    %c0_116 = arith.constant 0 : index
    %135 = vector.load %arg8[%c0_114, %c5, %c0_115, %c0_116] : memref<1x6x16x16xf32, #tpu.memory_space<vmem>>, vector<1x1x16x16xf32>
    %136 = vector.shape_cast %135 : vector<1x1x16x16xf32> to vector<16x16xf32>
    %137 = vector.shape_cast %134 : vector<16x16xf32> to vector<1x1x16x16xf32>
    tpu.vector_store %arg8[%c0_114, %c5, %c0_115, %c0_116], %137 {strides = array<i32>} : memref<1x6x16x16xf32, #tpu.memory_space<vmem>>, vector<1x1x16x16xf32>,
    return
  }
  func.func @transform_0(%arg0: i32) -> (i32, i32, i32, i32) {
    %c0_i32 = arith.constant 0 : i32
    %c0_i32_0 = arith.constant 0 : i32
    %c0_i32_1 = arith.constant 0 : i32
    %c0_i32_2 = arith.constant 0 : i32
    return %arg0, %c0_i32, %c0_i32_0, %c0_i32_1 : i32, i32, i32, i32
  }
  func.func @transform_1(%arg0: i32) -> (i32, i32, i32, i32) {
    %c0_i32 = arith.constant 0 : i32
    %c0_i32_0 = arith.constant 0 : i32
    %c0_i32_1 = arith.constant 0 : i32
    %c0_i32_2 = arith.constant 0 : i32
    %c0_i32_3 = arith.constant 0 : i32
    return %c0_i32, %c0_i32_0, %c0_i32_1, %c0_i32_2 : i32, i32, i32, i32
  }
  func.func @transform_2(%arg0: i32) -> (i32, i32, i32) {
    %c0_i32 = arith.constant 0 : i32
    %c0_i32_0 = arith.constant 0 : i32
    %c0_i32_1 = arith.constant 0 : i32
    %c0_i32_2 = arith.constant 0 : i32
    return %c0_i32, %c0_i32_0, %c0_i32_1 : i32, i32, i32
  }
  func.func @transform_3(%arg0: i32) -> (i32, i32, i32, i32) {
    %c0_i32 = arith.constant 0 : i32
    %c0_i32_0 = arith.constant 0 : i32
    %c0_i32_1 = arith.constant 0 : i32
    %c0_i32_2 = arith.constant 0 : i32
    %c0_i32_3 = arith.constant 0 : i32
    return %c0_i32, %c0_i32_0, %c0_i32_1, %c0_i32_2 : i32, i32, i32, i32
  }
  func.func @transform_4(%arg0: i32) -> (i32, i32, i32) {
    %c0_i32 = arith.constant 0 : i32
    %c0_i32_0 = arith.constant 0 : i32
    %c0_i32_1 = arith.constant 0 : i32
    %c0_i32_2 = arith.constant 0 : i32
    return %c0_i32, %c0_i32_0, %c0_i32_1 : i32, i32, i32
  }
  func.func @transform_5(%arg0: i32) -> (i32, i32) {
    %c0_i32 = arith.constant 0 : i32
    %c0_i32_0 = arith.constant 0 : i32
    %c0_i32_1 = arith.constant 0 : i32
    return %c0_i32, %c0_i32_0 : i32, i32
  }
  func.func @transform_6(%arg0: i32) -> (i32, i32) {
    %c0_i32 = arith.constant 0 : i32
    %c0_i32_0 = arith.constant 0 : i32
    %c0_i32_1 = arith.constant 0 : i32
    return %c0_i32, %c0_i32_0 : i32, i32
  }
  func.func @transform_7(%arg0: i32) -> (i32, i32, i32, i32) {
    %c0_i32 = arith.constant 0 : i32
    %c0_i32_0 = arith.constant 0 : i32
    %c0_i32_1 = arith.constant 0 : i32
    %c0_i32_2 = arith.constant 0 : i32
    return %arg0, %c0_i32, %c0_i32_0, %c0_i32_1 : i32, i32, i32, i32
  }
}

</mosaic_0001>

<bundles_post_ra>
// kernel: _forward_impl.1
= control target key start
LH: loop header
LB: loop body
LE: loop exit
PB: predicated region body
PF: predicated region fallthrough
CT: control target
= control target key end

     0   :  { %12 = vsyncpa [#allocation3], 0  ;;  %s7808_s0 = inlined_call_operand.vmem [shape: f32[2,16,9,9], index: 0, kind: input, shape index: {}]   ;;  %s7809_s1 = inlined_call_operand.vmem [shape: f32[72,4,1,1], index: 1, kind: input, shape index: {}]   ;;  %s7810_s2 = inlined_call_operand.vmem [shape: f32[8,1,1], index: 2, kind: input, shape index: {}]   ;;  %s7811_s3 = inlined_call_operand.vmem [shape: f32[6,8,1,1], index: 3, kind: input, shape index: {}]   ;;  %s7812_s4 = inlined_call_operand.vmem [shape: f32[6,1,1], index: 4, kind: input, shape index: {}]   ;;  %s7813_s5 = inlined_call_operand.vmem [shape: f32[16,8], index: 5, kind: input, shape index: {}]   ;;  %s7814_s6 = inlined_call_operand.vmem [shape: f32[8,16], index: 6, kind: input, shape index: {}]   ;;  %s7815_s7 = inlined_call_operand.hbm [shape: f32[2,6,16,16], index: 7, kind: output, shape index: {}]  }
   0x1   :  { %14 = vsyncpa [#allocation3 + $0x1], 0  ;;  %s5101_s24 = smov 0   ;;  %s5103_s25 = smov 0  }
   0x2   :  { %s5105_s26 = smov 0   ;;  %s5107_s27 = smov 0  }
   0x3 LB: > { %s5122_s28 = sadd.s32 4294967295, %s5055_s27   ;;  %s4257_s29 = sadd.s32 4294967294, %s5055_s27   ;;  %s5055_s27 = sphi %s5107_s27, %s8101_s27   ;;  %s5051_s26 = sphi %s5105_s26, %s8100_s26   ;;  %s5047_s25 = sphi %s5103_s25, %s8099_s25   ;;  %s5043_s24 = sphi %s5101_s24, %s8098_s24  }
   0x4   : > { %s5126_s30 = sadd.s32 1, %s5055_s27   ;;  %s179_s8 = sadd.s32 1, %s5051_s26 }
   0x5   : > { %s176_s9 = ssub.s32 %s5055_s27, %s5126_s30  ;;  %p189_p0 = scmp.ne.s32.totalorder %s5051_s26, %s5047_s25 }
   0x6   : > { %p177_p1 = scmp.eq.s32.totalorder %s176_s9, 0  ;;  %p190_p2 = scmp.eq.s32.totalorder %s5122_s28, 1 }
   0x7   : > { %p195_p3 = scmp.ne.s32.totalorder %s5047_s25, %s5043_s24  ;;  %p196_p4 = scmp.eq.s32.totalorder %s4257_s29, 1 }
   0x8   : > { %s5137_s10 = scalar_select %p177_p1, %s5051_s26, %s179_s8  }
   0x9   : > { %p5139_p5 = por %p190_p2, %p189_p0  ;;  %p5143_p6 = por %p196_p4, %p195_p3 }
   0xa   : > { %p4260_p7 = scmp.ge.s32.totalorder %s5055_s27, 1  ;;  %p240_p8 = scmp.lt.s32.totalorder %s5055_s27, 3 }
   0xc   : > { %p241_p9 = pnand %p4260_p7, %p240_p8 }
   0xe   : > { %244 = sbr.rel (%p241_p9) target bundleno = 1747 (0x6d3), region = 48 }
  0x13   : > { %v4615_v0 = vld [vmem:[%s7809_s1 + $0x4] ss:$0 sm:$0xff]  ;;  %v5057_v1 = vmov 0   ;;  %v4616_v2 = vld [vmem:[%s7809_s1 + $0x2] ss:$0 sm:$0xff]  ;;  %p272_p10 = scmp.lt.s32.totalorder %s5122_s28, 1 }
  0x14   : > { %4614 = vset.pattern.permute.xlu2 %v5057_v1  ;;  %4613 = vset.pattern.permute.xlu1 %v5057_v1  ;;  %v4617_v3 = vld [vmem:[%s7809_s1] ss:$0 sm:$0xff]  ;;  %v4618_v4 = vld [vmem:[%s7809_s1 + $0x5] ss:$0 sm:$0xff]  ;;  %v4619_v5 = vld [vmem:[%s7809_s1 + $0x3] ss:$0 sm:$0xff] }
  0x15   : > { %4612 = vset.pattern.permute.xlu0 %v5057_v1  ;;  %394 = vperm.xlu2 %4614, %v4615_v0   ;;  %v4620_v6 = vld [vmem:[%s7809_s1 + $0x1] ss:$0 sm:$0xff]  ;;  %v4621_v7 = vld [vmem:[%s7809_s1 + $0x8] ss:$0 sm:$0xff]  ;;  %v4622_v8 = vld [vmem:[%s7809_s1 + $0x7] ss:$0 sm:$0xff] }
  0x16   : > { %386 = vperm.xlu1 %4613, %v4616_v2   ;;  %378 = vperm.xlu0 %4612, %v4617_v3   ;;  %v4623_v9 = vld [vmem:[%s7809_s1 + $0x6] ss:$0 sm:$0xff]  ;;  %v4624_v10 = vld [vmem:[%s7809_s1 + $0xb] ss:$0 sm:$0xff]  ;;  %v4625_v11 = vld [vmem:[%s7809_s1 + $0xa] ss:$0 sm:$0xff] }
  0x17   : > { %v4626_v12 = vld [vmem:[%s7809_s1 + $0x9] ss:$0 sm:$0xff]  ;;  %v4627_v13 = vld [vmem:[%s7809_s1 + $0xe] ss:$0 sm:$0xff]  ;;  %v4628_v14 = vld [vmem:[%s7809_s1 + $0xd] ss:$0 sm:$0xff] }
  0x18   : > { %v4629_v15 = vld [vmem:[%s7809_s1 + $0xc] ss:$0 sm:$0xff]  ;;  %v4630_v16 = vld [vmem:[%s7809_s1 + $0x11] ss:$0 sm:$0xff]  ;;  %v4631_v17 = vld [vmem:[%s7809_s1 + $0x10] ss:$0 sm:$0xff] }
  0x19   : > { %v4632_v18 = vld [vmem:[%s7809_s1 + $0xf] ss:$0 sm:$0xff]  ;;  %v4633_v19 = vld [vmem:[%s7809_s1 + $0x14] ss:$0 sm:$0xff]  ;;  %v4634_v20 = vld [vmem:[%s7809_s1 + $0x13] ss:$0 sm:$0xff] }
  0x1a   : > { %v4635_v21 = vld [vmem:[%s7809_s1 + $0x12] ss:$0 sm:$0xff]  ;;  %v4636_v22 = vld [vmem:[%s7809_s1 + $0x17] ss:$0 sm:$0xff]  ;;  %v4637_v23 = vld [vmem:[%s7809_s1 + $0x16] ss:$0 sm:$0xff] }
  0x1b   : > { %v4638_v24 = vld [vmem:[%s7809_s1 + $0x15] ss:$0 sm:$0xff]  ;;  %v4639_v25 = vld [vmem:[%s7809_s1 + $0x1a] ss:$0 sm:$0xff]  ;;  %v4640_v26 = vld [vmem:[%s7809_s1 + $0x19] ss:$0 sm:$0xff] }
  0x1c   : > { %v4641_v27 = vld [vmem:[%s7809_s1 + $0x18] ss:$0 sm:$0xff]  ;;  %v4642_v28 = vld [vmem:[%s7809_s1 + $0x1d] ss:$0 sm:$0xff]  ;;  %v4643_v29 = vld [vmem:[%s7809_s1 + $0x1c] ss:$0 sm:$0xff] }
  0x1d   : > { %398 = vperm.xlu2 %4614, %v4618_v4   ;;  %v4644_v30 = vld [vmem:[%s7809_s1 + $0x1b] ss:$0 sm:$0xff]  ;;  %v4645_v31 = vld [vmem:[%s7809_s1 + $0x20] ss:$0 sm:$0xff]  ;;  %v4646_v32 = vld [vmem:[%s7809_s1 + $0x1f] ss:$0 sm:$0xff] }
  0x1e   : > { %390 = vperm.xlu1 %4613, %v4619_v5   ;;  %382 = vperm.xlu0 %4612, %v4620_v6   ;;  %v4647_v33 = vld [vmem:[%s7809_s1 + $0x1e] ss:$0 sm:$0xff]  ;;  %v4648_v34 = vld [vmem:[%s7809_s1 + $0x23] ss:$0 sm:$0xff]  ;;  %v4649_v35 = vld [vmem:[%s7809_s1 + $0x22] ss:$0 sm:$0xff] }
  0x1f   : > { %v4650_v36 = vld [vmem:[%s7809_s1 + $0x21] ss:$0 sm:$0xff]  ;;  %v4651_v38 = vld [vmem:[%s7809_s1 + $0x26] ss:$0 sm:$0xff]  ;;  %v4652_v39 = vld [vmem:[%s7809_s1 + $0x25] ss:$0 sm:$0xff] }
  0x20   : > { %v4653_v40 = vld [vmem:[%s7809_s1 + $0x24] ss:$0 sm:$0xff]  ;;  %v4654_v42 = vld [vmem:[%s7809_s1 + $0x29] ss:$0 sm:$0xff]  ;;  %v4655_v43 = vld [vmem:[%s7809_s1 + $0x28] ss:$0 sm:$0xff] }
  0x21   : > { %v4656_v44 = vld [vmem:[%s7809_s1 + $0x27] ss:$0 sm:$0xff]  ;;  %v4657_v46 = vld [vmem:[%s7809_s1 + $0x2c] ss:$0 sm:$0xff]  ;;  %v4658_v47 = vld [vmem:[%s7809_s1 + $0x2b] ss:$0 sm:$0xff] }
  0x22   : > { %v4659_v48 = vld [vmem:[%s7809_s1 + $0x2a] ss:$0 sm:$0xff]  ;;  %v4660_v50 = vld [vmem:[%s7809_s1 + $0x2f] ss:$0 sm:$0xff]  ;;  %v4661_v53 = vld [vmem:[%s7809_s1 + $0x2e] ss:$0 sm:$0xff] }
  0x23   : > { %v4662_v54 = vld [vmem:[%s7809_s1 + $0x2d] ss:$0 sm:$0xff]  ;;  %v4663_v56 = vld [vmem:[%s7809_s1 + $0x32] ss:$0 sm:$0xff]  ;;  %v4664_v59 = vld [vmem:[%s7809_s1 + $0x31] ss:$0 sm:$0xff] }
  0x24   : > { %v4665_v60 = vld [vmem:[%s7809_s1 + $0x30] ss:$0 sm:$0xff]  ;;  %v4666_v62 = vld [vmem:[%s7809_s1 + $0x35] ss:$0 sm:$0xff]  ;;  %v4667_v1 = vld [vmem:[%s7809_s1 + $0x34] ss:$0 sm:$0xff] }
  0x25   : > { %410 = vperm.xlu2 %4614, %v4621_v7   ;;  %v4668_v2 = vld [vmem:[%s7809_s1 + $0x33] ss:$0 sm:$0xff]  ;;  %v4669_v4 = vld [vmem:[%s7809_s1 + $0x38] ss:$0 sm:$0xff]  ;;  %v4670_v7 = vld [vmem:[%s7809_s1 + $0x37] ss:$0 sm:$0xff] }
  0x26   : > { %406 = vperm.xlu1 %4613, %v4622_v8   ;;  %402 = vperm.xlu0 %4612, %v4623_v9   ;;  %v4671_v8 = vld [vmem:[%s7809_s1 + $0x36] ss:$0 sm:$0xff]  ;;  %s273_s23 = scalar_select %p272_p10, %s5122_s28, 1  ;;  %vm1177_vm0 = vcmask 72712   ;;  %vm537_vm1 = vcmask 64512   ;;  %vm3931_vm2 = vcmask 130048  }
  0x27   : > { %s5058_s14 = smov 127   ;;  %s269_s15 = sand.u32 1, %s5047_s25  }
  0x28   : > { %s4566_s29 = sshll.u32 %s273_s23, 8  ;;  %s4567_s16 = smul.u32 96, %s269_s15 }
  0x29   : > { %s5568_s13 = scalar_lea.vmem %s7808_s0, %s4566_s29  ;;  %s4568_s18 = smul.u32 96, %s5122_s28 }
  0x2a   : > { %s7744_s17 = scalar_lea.vmem [#allocation2], %s4567_s16  ;;  %s4180_s28 = scalar_lea.sflag [#allocation3], %s269_s15 }
  0x2b   : > { %s4191_s20 = scalar_lea.hbm %s7815_s7, %s4568_s18  ;;  %s4192_s21 = sshll.u32 %s7744_s17, 4  ;;  %s4193_s21 = int_to_ptr.vmem [resolvable:$true] %s4192_s21 }
  0x2c   : > { %s4194_s22 = sshll.u32 %s4191_s20, 4  ;;  %s4195_s22 = int_to_ptr.hbm [resolvable:$true] %s4194_s22 }
  0x2d   : > { %422 = vperm.xlu2 %4614, %v4624_v10   ;;  %s5007_s23 = sshra.s32 %s4195_s22, 4  ;;  %s5008_s23 = int_to_ptr.hbm [resolvable:$true] %s5007_s23 }
  0x2e   : > { %418 = vperm.xlu1 %4613, %v4625_v11   ;;  %414 = vperm.xlu0 %4612, %v4626_v12   ;;  %v4672_v12 = vld [vmem:[%s7809_s1 + $0x3b] ss:$0 sm:$0xff]  ;;  %s5009_s29 = scalar_lea.hbm %s5008_s23, 96  ;;  %p5014_p0 = scmp.lt.s32.totalorder %s5008_s23, %s7815_s7 }
  0x2f   : > { %p5010_p11 = scmp.ne.s32.totalorder %s5008_s23, %s5009_s29 }
  0x31   : > { %p5011_p12 = pnand %p5010_p11, %p5139_p5 }
  0x33   : > { %p5012_p13 = pneg %p5011_p12 }
  0x35   : > { %434 = vperm.xlu2 %4614, %v4627_v13   ;;  %v4673_v13 = vld [vmem:[%s7809_s1 + $0x3a] ss:$0 sm:$0xff] }
  0x36   : > { %430 = vperm.xlu1 %4613, %v4628_v14   ;;  %426 = vperm.xlu0 %4612, %v4629_v15   ;;  %v4674_v14 = vld [vmem:[%s7809_s1 + $0x39] ss:$0 sm:$0xff] }
  0x3d   : > { %446 = vperm.xlu2 %4614, %v4630_v16  }
  0x3e   : > { %442 = vperm.xlu1 %4613, %v4631_v17   ;;  %438 = vperm.xlu0 %4612, %v4632_v18   ;;  %v4675_v18 = vld [vmem:[%s7809_s1 + $0x3e] ss:$0 sm:$0xff] }
  0x45   : > { %458 = vperm.xlu2 %4614, %v4633_v19   ;;  %v4676_v19 = vld [vmem:[%s7809_s1 + $0x3d] ss:$0 sm:$0xff] }
  0x46   : > { %454 = vperm.xlu1 %4613, %v4634_v20   ;;  %450 = vperm.xlu0 %4612, %v4635_v21   ;;  %v4677_v20 = vld [vmem:[%s7809_s1 + $0x3c] ss:$0 sm:$0xff] }
  0x4d   : > { %470 = vperm.xlu2 %4614, %v4636_v22  }
  0x4e   : > { %466 = vperm.xlu1 %4613, %v4637_v23   ;;  %462 = vperm.xlu0 %4612, %v4638_v24   ;;  %v4678_v24 = vld [vmem:[%s7809_s1 + $0x41] ss:$0 sm:$0xff] }
  0x55   : > { %482 = vperm.xlu2 %4614, %v4639_v25   ;;  %v4679_v25 = vld [vmem:[%s7809_s1 + $0x40] ss:$0 sm:$0xff] }
  0x56   : > { %478 = vperm.xlu1 %4613, %v4640_v26   ;;  %474 = vperm.xlu0 %4612, %v4641_v27   ;;  %v4680_v26 = vld [vmem:[%s7809_s1 + $0x3f] ss:$0 sm:$0xff] }
  0x5d   : > { %494 = vperm.xlu2 %4614, %v4642_v28  }
  0x5e   : > { %490 = vperm.xlu1 %4613, %v4643_v29   ;;  %486 = vperm.xlu0 %4612, %v4644_v30   ;;  %v4681_v30 = vld [vmem:[%s7809_s1 + $0x44] ss:$0 sm:$0xff] }
  0x65   : > { %697 = vperm.xlu2 %4614, %v4645_v31   ;;  %v4682_v31 = vld [vmem:[%s7809_s1 + $0x43] ss:$0 sm:$0xff] }
  0x66   : > { %502 = vperm.xlu1 %4613, %v4646_v32   ;;  %498 = vperm.xlu0 %4612, %v4647_v33   ;;  %v4683_v32 = vld [vmem:[%s7809_s1 + $0x42] ss:$0 sm:$0xff] }
  0x6d   : > { %709 = vperm.xlu2 %4614, %v4648_v34  }
  0x6e   : > { %705 = vperm.xlu1 %4613, %v4649_v35   ;;  %701 = vperm.xlu0 %4612, %v4650_v36   ;;  %v4684_v36 = vld [vmem:[%s7809_s1 + $0x47] ss:$0 sm:$0xff] }
  0x6f   : > { %v5257_v37 = vpop.permute.xlu2 %394 }
  0x70   : > { %7824 = vst [vmem:[#allocation5_spill] sm:$0xff] %v5257_v37 }
  0x75   : > { %721 = vperm.xlu2 %4614, %v4651_v38   ;;  %v4685_v38 = vld [vmem:[%s7809_s1 + $0x46] ss:$0 sm:$0xff] }
  0x76   : > { %717 = vperm.xlu1 %4613, %v4652_v39   ;;  %713 = vperm.xlu0 %4612, %v4653_v40   ;;  %v4686_v39 = vld [vmem:[%s7809_s1 + $0x45] ss:$0 sm:$0xff] }
  0x77   : > { %v5268_v41 = vpop.permute.xlu2 %398 }
  0x78   : > { %7825 = vst [vmem:[#allocation6_spill] sm:$0xff] %v5268_v41 }
  0x7d   : > { %733 = vperm.xlu2 %4614, %v4654_v42  }
  0x7e   : > { %729 = vperm.xlu1 %4613, %v4655_v43   ;;  %725 = vperm.xlu0 %4612, %v4656_v44   ;;  %v4687_v44 = vld [vmem:[%s7809_s1 + $0x4a] ss:$0 sm:$0xff] }
  0x7f   : > { %v5279_v45 = vpop.permute.xlu2 %410 }
  0x80   : > { %7826 = vst [vmem:[#allocation7_spill] sm:$0xff] %v5279_v45 }
  0x85   : > { %745 = vperm.xlu2 %4614, %v4657_v46   ;;  %v4688_v46 = vld [vmem:[%s7809_s1 + $0x49] ss:$0 sm:$0xff] }
  0x86   : > { %741 = vperm.xlu1 %4613, %v4658_v47   ;;  %737 = vperm.xlu0 %4612, %v4659_v48   ;;  %v4689_v47 = vld [vmem:[%s7809_s1 + $0x48] ss:$0 sm:$0xff] }
  0x87   : > { %v5290_v49 = vpop.permute.xlu2 %422 }
  0x88   : > { %7827 = vst [vmem:[#allocation8_spill] sm:$0xff] %v5290_v49  ;;  %v5295_v51 = vpop.permute.xlu1 %386  ;;  %v5297_v52 = vpop.permute.xlu0 %378 }
  0x89   : > { %7828 = vst [vmem:[#allocation9_spill] sm:$0xff] %v5295_v51 }
  0x8a   : > { %7829 = vst [vmem:[#allocation10_spill] sm:$0xff] %v5297_v52 }
  0x8d   : > { %757 = vperm.xlu2 %4614, %v4660_v50  }
  0x8e   : > { %753 = vperm.xlu1 %4613, %v4661_v53   ;;  %749 = vperm.xlu0 %4612, %v4662_v54   ;;  %v4690_v54 = vld [vmem:[%s7809_s1 + $0x4d] ss:$0 sm:$0xff] }
  0x8f   : > { %v5305_v55 = vpop.permute.xlu2 %434 }
  0x90   : > { %7830 = vst [vmem:[#allocation11_spill] sm:$0xff] %v5305_v55  ;;  %v5310_v57 = vpop.permute.xlu1 %390  ;;  %v5312_v58 = vpop.permute.xlu0 %382  ;;  %v5582_v55 = vld [vmem:[%s5568_s13 + $0x30] sm:$0xff] }
  0x91   : > { %7831 = vst [vmem:[#allocation12_spill] sm:$0xff] %v5310_v57 }
  0x92   : > { %7832 = vst [vmem:[#allocation13_spill] sm:$0xff] %v5312_v58 }
  0x95   : > { %769 = vperm.xlu2 %4614, %v4663_v56   ;;  %v4691_v56 = vld [vmem:[%s7809_s1 + $0x4c] ss:$0 sm:$0xff] }
  0x96   : > { %765 = vperm.xlu1 %4613, %v4664_v59   ;;  %761 = vperm.xlu0 %4612, %v4665_v60   ;;  %v4692_v59 = vld [vmem:[%s7809_s1 + $0x4b] ss:$0 sm:$0xff] }
  0x97   : > { %v5320_v61 = vpop.permute.xlu2 %446 }
  0x98   : > { %v5325_v63 = vpop.permute.xlu1 %406  ;;  %v5327_v0 = vpop.permute.xlu0 %402 }
  0x99   : > { %7833 = vst [vmem:[#allocation14_spill] sm:$0xff] %v5325_v63 }
  0x9a   : > { %7834 = vst [vmem:[#allocation15_spill] sm:$0xff] %v5327_v0 }
  0x9d   : > { %781 = vperm.xlu2 %4614, %v4666_v62  }
  0x9e   : > { %777 = vperm.xlu1 %4613, %v4667_v1   ;;  %773 = vperm.xlu0 %4612, %v4668_v2   ;;  %v4693_v2 = vld [vmem:[%s7809_s1 + $0x50] ss:$0 sm:$0xff] }
  0x9f   : > { %v5335_v3 = vpop.permute.xlu2 %458 }
  0xa0   : > { %v5340_v5 = vpop.permute.xlu1 %418  ;;  %v5342_v6 = vpop.permute.xlu0 %414 }
  0xa1   : > { %7835 = vst [vmem:[#allocation16_spill] sm:$0xff] %v5340_v5 }
  0xa2   : > { %7836 = vst [vmem:[#allocation17_spill] sm:$0xff] %v5342_v6 }
  0xa5   : > { %793 = vperm.xlu2 %4614, %v4669_v4   ;;  %v4694_v4 = vld [vmem:[%s7809_s1 + $0x4f] ss:$0 sm:$0xff] }
  0xa6   : > { %789 = vperm.xlu1 %4613, %v4670_v7   ;;  %785 = vperm.xlu0 %4612, %v4671_v8   ;;  %v4695_v7 = vld [vmem:[%s7809_s1 + $0x4e] ss:$0 sm:$0xff] }
  0xa7   : > { %v5350_v9 = vpop.permute.xlu2 %470 }
  0xa8   : > { %v5352_v10 = vpop.permute.xlu1 %430  ;;  %v5354_v11 = vpop.permute.xlu0 %426 }
  0xa9   : > { %7837 = vst [vmem:[#allocation18_spill] sm:$0xff] %v5352_v10 }
  0xaa   : > { %7838 = vst [vmem:[#allocation19_spill] sm:$0xff] %v5354_v11 }
  0xad   : > { %805 = vperm.xlu2 %4614, %v4672_v12  }
  0xae   : > { %801 = vperm.xlu1 %4613, %v4673_v13   ;;  %797 = vperm.xlu0 %4612, %v4674_v14   ;;  %v4696_v14 = vld [vmem:[%s7809_s1 + $0x53] ss:$0 sm:$0xff] }
  0xaf   : > { %v5365_v15 = vpop.permute.xlu2 %482 }
  0xb0   : > { %v5367_v16 = vpop.permute.xlu1 %442  ;;  %v5369_v17 = vpop.permute.xlu0 %438 }
  0xb1   : > { %7839 = vst [vmem:[#allocation20_spill] sm:$0xff] %v5369_v17 }
  0xb5   : > { %817 = vperm.xlu2 %4614, %v4675_v18   ;;  %v4697_v18 = vld [vmem:[%s7809_s1 + $0x52] ss:$0 sm:$0xff] }
  0xb6   : > { %813 = vperm.xlu1 %4613, %v4676_v19   ;;  %809 = vperm.xlu0 %4612, %v4677_v20   ;;  %v4698_v19 = vld [vmem:[%s7809_s1 + $0x51] ss:$0 sm:$0xff] }
  0xb7   : > { %v5380_v21 = vpop.permute.xlu2 %494 }
  0xb8   : > { %v5382_v22 = vpop.permute.xlu1 %454  ;;  %v5384_v23 = vpop.permute.xlu0 %450 }
  0xbd   : > { %1022 = vperm.xlu2 %4614, %v4678_v24  }
  0xbe   : > { %1018 = vperm.xlu1 %4613, %v4679_v25   ;;  %821 = vperm.xlu0 %4612, %v4680_v26   ;;  %v4699_v26 = vld [vmem:[%s7809_s1 + $0x56] ss:$0 sm:$0xff] }
  0xbf   : > { %v5395_v27 = vpop.permute.xlu2 %697 }
  0xc0   : > { %7840 = vst [vmem:[#allocation21_spill] sm:$0xff] %v5395_v27  ;;  %v5397_v28 = vpop.permute.xlu1 %466  ;;  %v5399_v29 = vpop.permute.xlu0 %462 }
  0xc5   : > { %1034 = vperm.xlu2 %4614, %v4681_v30   ;;  %v4700_v30 = vld [vmem:[%s7809_s1 + $0x55] ss:$0 sm:$0xff] }
  0xc6   : > { %1030 = vperm.xlu1 %4613, %v4682_v31   ;;  %1026 = vperm.xlu0 %4612, %v4683_v32   ;;  %v4701_v31 = vld [vmem:[%s7809_s1 + $0x54] ss:$0 sm:$0xff] }
  0xc7   : > { %v5410_v33 = vpop.permute.xlu2 %709 }
  0xc8   : > { %7841 = vst [vmem:[#allocation22_spill] sm:$0xff] %v5410_v33  ;;  %v5412_v34 = vpop.permute.xlu1 %478  ;;  %v5414_v35 = vpop.permute.xlu0 %474 }
  0xcd   : > { %1046 = vperm.xlu2 %4614, %v4684_v36  }
  0xce   : > { %1042 = vperm.xlu1 %4613, %v4685_v38   ;;  %1038 = vperm.xlu0 %4612, %v4686_v39   ;;  %v4702_v39 = vld [vmem:[%s7809_s1 + $0x59] ss:$0 sm:$0xff] }
  0xcf   : > { %v5425_v40 = vpop.permute.xlu2 %721 }
  0xd0   : > { %7842 = vst [vmem:[#allocation23_spill] sm:$0xff] %v5425_v40  ;;  %v5427_v42 = vpop.permute.xlu1 %490  ;;  %v5429_v43 = vpop.permute.xlu0 %486  ;;  %v5577_v40 = vld [vmem:[%s5568_s13 + $0x10] sm:$0xff] }
  0xd5   : > { %1058 = vperm.xlu2 %4614, %v4687_v44   ;;  %v4703_v44 = vld [vmem:[%s7809_s1 + $0x58] ss:$0 sm:$0xff] }
  0xd6   : > { %1054 = vperm.xlu1 %4613, %v4688_v46   ;;  %1050 = vperm.xlu0 %4612, %v4689_v47   ;;  %v4704_v46 = vld [vmem:[%s7809_s1 + $0x57] ss:$0 sm:$0xff] }
  0xd7   : > { %v5440_v48 = vpop.permute.xlu2 %733 }
  0xd8   : > { %7843 = vst [vmem:[#allocation24_spill] sm:$0xff] %v5440_v48  ;;  %v5442_v50 = vpop.permute.xlu1 %502  ;;  %v5444_v53 = vpop.permute.xlu0 %498 }
  0xdd   : > { %1070 = vperm.xlu2 %4614, %v4690_v54  }
  0xde   : > { %1066 = vperm.xlu1 %4613, %v4691_v56   ;;  %1062 = vperm.xlu0 %4612, %v4692_v59   ;;  %v4705_v59 = vld [vmem:[%s7809_s1 + $0x5c] ss:$0 sm:$0xff] }
  0xdf   : > { %v5455_v60 = vpop.permute.xlu2 %745 }
  0xe0   : > { %7844 = vst [vmem:[#allocation25_spill] sm:$0xff] %v5455_v60  ;;  %v5457_v62 = vpop.permute.xlu1 %705  ;;  %v5459_v1 = vpop.permute.xlu0 %701 }
  0xe1   : > { %7845 = vst [vmem:[#allocation26_spill] sm:$0xff] %v5457_v62 }
  0xe2   : > { %7846 = vst [vmem:[#allocation27_spill] sm:$0xff] %v5459_v1 }
  0xe5   : > { %1082 = vperm.xlu2 %4614, %v4693_v2   ;;  %v4706_v2 = vld [vmem:[%s7809_s1 + $0x5b] ss:$0 sm:$0xff] }
  0xe6   : > { %1078 = vperm.xlu1 %4613, %v4694_v4   ;;  %1074 = vperm.xlu0 %4612, %v4695_v7   ;;  %v4707_v4 = vld [vmem:[%s7809_s1 + $0x5a] ss:$0 sm:$0xff] }
  0xe7   : > { %v5470_v8 = vpop.permute.xlu2 %757 }
  0xe8   : > { %7847 = vst [vmem:[#allocation28_spill] sm:$0xff] %v5470_v8  ;;  %v5472_v12 = vpop.permute.xlu1 %717  ;;  %v5474_v13 = vpop.permute.xlu0 %713 }
  0xe9   : > { %7848 = vst [vmem:[#allocation29_spill] sm:$0xff] %v5472_v12 }
  0xea   : > { %7849 = vst [vmem:[#allocation30_spill] sm:$0xff] %v5474_v13 }
  0xed   : > { %1094 = vperm.xlu2 %4614, %v4696_v14  }
  0xee   : > { %1090 = vperm.xlu1 %4613, %v4697_v18   ;;  %1086 = vperm.xlu0 %4612, %v4698_v19   ;;  %v4708_v19 = vld [vmem:[%s7809_s1 + $0x5f] ss:$0 sm:$0xff] }
  0xef   : > { %v5485_v20 = vpop.permute.xlu2 %769 }
  0xf0   : > { %v5487_v24 = vpop.permute.xlu1 %729  ;;  %v5489_v25 = vpop.permute.xlu0 %725 }
  0xf1   : > { %7850 = vst [vmem:[#allocation31_spill] sm:$0xff] %v5487_v24 }
  0xf2   : > { %7851 = vst [vmem:[#allocation32_spill] sm:$0xff] %v5489_v25 }
  0xf5   : > { %1106 = vperm.xlu2 %4614, %v4699_v26   ;;  %v4709_v26 = vld [vmem:[%s7809_s1 + $0x5e] ss:$0 sm:$0xff] }
  0xf6   : > { %1102 = vperm.xlu1 %4613, %v4700_v30   ;;  %1098 = vperm.xlu0 %4612, %v4701_v31   ;;  %v4710_v30 = vld [vmem:[%s7809_s1 + $0x5d] ss:$0 sm:$0xff] }
  0xf7   : > { %v5500_v32 = vpop.permute.xlu2 %781 }
  0xf8   : > { %v5502_v36 = vpop.permute.xlu1 %741  ;;  %v5504_v38 = vpop.permute.xlu0 %737 }
  0xf9   : > { %7852 = vst [vmem:[#allocation33_spill] sm:$0xff] %v5502_v36 }
  0xfa   : > { %7853 = vst [vmem:[#allocation34_spill] sm:$0xff] %v5504_v38  ;;  %v5585_v38 = vld [vmem:[%s5568_s13 + $0x20] sm:$0xff] }
  0xfd   : > { %1118 = vperm.xlu2 %4614, %v4702_v39  }
  0xfe   : > { %1114 = vperm.xlu1 %4613, %v4703_v44   ;;  %1110 = vperm.xlu0 %4612, %v4704_v46  }
  0xff   : > { %v5515_v47 = vpop.permute.xlu2 %793 }
 0x100   : > { %v5517_v54 = vpop.permute.xlu1 %753  ;;  %v5519_v56 = vpop.permute.xlu0 %749 }
 0x101   : > { %7854 = vst [vmem:[#allocation35_spill] sm:$0xff] %v5517_v54  ;;  %v5573_v54 = vld [vmem:[%s5568_s13] sm:$0xff] }
 0x102   : > { %7855 = vst [vmem:[#allocation36_spill] sm:$0xff] %v5519_v56 }
 0x105   : > { %1130 = vperm.xlu2 %4614, %v4705_v59  }
 0x106   : > { %1126 = vperm.xlu1 %4613, %v4706_v2   ;;  %1122 = vperm.xlu0 %4612, %v4707_v4  }
 0x107   : > { %v5532_v14 = vpop.permute.xlu2 %805 }
 0x108   : > { %v5530_v7 = vpop.permute.xlu1 %765  ;;  %v5534_v18 = vpop.permute.xlu0 %761 }
 0x10d   : > { %1142 = vperm.xlu2 %4614, %v4708_v19  }
 0x10e   : > { %1138 = vperm.xlu1 %4613, %v4709_v26   ;;  %1134 = vperm.xlu0 %4612, %v4710_v30  }
 0x10f   : > { %v5549_v44 = vpop.permute.xlu2 %817 }
 0x110   : > { %v5545_v31 = vpop.permute.xlu1 %777  ;;  %v5547_v39 = vpop.permute.xlu0 %773 }
 0x117   : > { %v1023_v2 = vpop.permute.xlu2 %1022 }
 0x118   : > { %v5551_v46 = vpop.permute.xlu1 %789  ;;  %v5553_v59 = vpop.permute.xlu0 %785  ;;  %v1146_v5 = vmul.f32 %v1023_v2, %v5577_v40 }
 0x11a   : > { %v1179_v49 = vsel %vm1177_vm0, %v1146_v5, 0.0 }
 0x11f   : > { %v1035_v17 = vpop.permute.xlu2 %1034 }
 0x120   : > { %v5555_v4 = vpop.permute.xlu1 %801  ;;  %v5557_v8 = vpop.permute.xlu0 %797  ;;  %v1149_v12 = vmul.f32 %v1035_v17, %v5573_v54 }
 0x127   : > { %v1047_v36 = vpop.permute.xlu2 %1046 }
 0x128   : > { %v5560_v19 = vpop.permute.xlu1 %813  ;;  %v5563_v26 = vpop.permute.xlu0 %809 }
 0x129   : > { %7856 = vst [vmem:[#allocation37_spill] sm:$0xff] %v5563_v26  ;;  %v4968_v26 = vld [vmem:[%s5568_s13 + $0x30] sm:$0xff] }
 0x130   : > { %v1019_v30 = vpop.permute.xlu1 %1018  ;;  %v5570_v63 = vpop.permute.xlu0 %821 }
 0x131   : > { %7857 = vst [vmem:[#allocation38_spill] sm:$0xff] %v5570_v63  ;;  %v1145_v25 = vmul.f32 %v1019_v30, %v5573_v54  ;;  %v1059_v30 = vpop.permute.xlu2 %1058 }
 0x133   : > { %v1178_v11 = vsel %vm1177_vm0, %v1145_v25, 0.0 }
 0x134   : > { %v1180_v56 = vadd.f32 %v1179_v49, %v1178_v11  ;;  %v1152_v49 = vmul.f32 %v1047_v36, %v5582_v55 }
 0x138   : > { %v1031_v10 = vpop.permute.xlu1 %1030  ;;  %v1027_v60 = vpop.permute.xlu0 %1026 }
 0x139   : > { %v1148_v48 = vmul.f32 %v1031_v10, %v5582_v55  ;;  %v1147_v0 = vmul.f32 %v1027_v60, %v5585_v38  ;;  %v1185_v60 = vsel %vm1177_vm0, %v1149_v12, 0.0  ;;  %v1071_v11 = vpop.permute.xlu2 %1070 }
 0x13b   : > { %v1181_v24 = vsel %vm1177_vm0, %v1147_v0, 0.0  ;;  %v1183_v13 = vsel %vm1177_vm0, %v1148_v48, 0.0 }
 0x13c   : > { %v1182_v2 = vadd.f32 %v1181_v24, %v1180_v56  ;;  %v1190_v24 = vsel %vm1177_vm0, %v1152_v49, 0.0 }
 0x13e   : > { %v1184_v25 = vadd.f32 %v1183_v13, %v1182_v2 }
 0x140   : > { %v1043_v6 = vpop.permute.xlu1 %1042  ;;  %v1039_v45 = vpop.permute.xlu0 %1038  ;;  %1242 = vrot.lane.b32.xlu0 %v1184_v25, %s5058_s14 }
 0x141   : > { %v1151_v5 = vmul.f32 %v1043_v6, %v5585_v38  ;;  %v1150_v10 = vmul.f32 %v1039_v45, %v5577_v40 }
 0x143   : > { %v1186_v0 = vsel %vm1177_vm0, %v1150_v10, 0.0  ;;  %v1188_v13 = vsel %vm1177_vm0, %v1151_v5, 0.0  ;;  %v1155_v10 = vmul.f32 %v1059_v30, %v5585_v38 }
 0x144   : > { %v1187_v48 = vadd.f32 %v1186_v0, %v1185_v60  ;;  %v1083_v60 = vpop.permute.xlu2 %1082 }
 0x145   : > { %v1195_v49 = vsel %vm1177_vm0, %v1155_v10, 0.0 }
 0x146   : > { %v1189_v17 = vadd.f32 %v1188_v13, %v1187_v48 }
 0x148   : > { %v1055_v56 = vpop.permute.xlu1 %1054  ;;  %v1051_v25 = vpop.permute.xlu0 %1050  ;;  %v1191_v6 = vadd.f32 %v1190_v24, %v1189_v17 }
 0x149   : > { %v1154_v2 = vmul.f32 %v1055_v56, %v5577_v40  ;;  %v1153_v45 = vmul.f32 %v1051_v25, %v5573_v54 }
 0x14a   : > { %1244 = vrot.lane.b32.xlu1 %v1191_v6, %s5058_s14 }
 0x14b   : > { %v1193_v12 = vsel %vm1177_vm0, %v1154_v2, 0.0  ;;  %v1192_v36 = vsel %vm1177_vm0, %v1153_v45, 0.0  ;;  %v1158_v2 = vmul.f32 %v1071_v11, %v5577_v40 }
 0x14c   : > { %v1194_v5 = vadd.f32 %v1193_v12, %v1192_v36  ;;  %v1095_v45 = vpop.permute.xlu2 %1094 }
 0x14d   : > { %v1200_v36 = vsel %vm1177_vm0, %v1158_v2, 0.0 }
 0x14e   : > { %v1196_v56 = vadd.f32 %v1195_v49, %v1194_v5 }
 0x150   : > { %v1067_v0 = vpop.permute.xlu1 %1066  ;;  %v1063_v48 = vpop.permute.xlu0 %1062 }
 0x151   : > { %v1156_v13 = vmul.f32 %v1063_v48, %v5582_v55  ;;  %v1157_v17 = vmul.f32 %v1067_v0, %v5573_v54 }
 0x153   : > { %v1197_v24 = vsel %vm1177_vm0, %v1156_v13, 0.0  ;;  %v1199_v30 = vsel %vm1177_vm0, %v1157_v17, 0.0 }
 0x154   : > { %v1198_v25 = vadd.f32 %v1197_v24, %v1196_v56  ;;  %v1201_v48 = vadd.f32 %v1200_v36, %v1199_v30  ;;  %v1161_v56 = vmul.f32 %v1083_v60, %v5573_v54  ;;  %v1164_v30 = vmul.f32 %v1095_v45, %v5582_v55 }
 0x156   : > { %1246 = vrot.lane.b32.xlu2 %v1198_v25, %s5058_s14  ;;  %v1211_v60 = vsel %vm1177_vm0, %v1164_v30, 0.0 }
 0x158   : > { %v1079_v6 = vpop.permute.xlu1 %1078  ;;  %v1075_v12 = vpop.permute.xlu0 %1074 }
 0x159   : > { %v1160_v10 = vmul.f32 %v1079_v6, %v5582_v55  ;;  %v1159_v5 = vmul.f32 %v1075_v12, %v5585_v38  ;;  %v1107_v6 = vpop.permute.xlu2 %1106  ;;  %v1206_v12 = vsel %vm1177_vm0, %v1161_v56, 0.0 }
 0x15b   : > { %v1202_v0 = vsel %vm1177_vm0, %v1159_v5, 0.0  ;;  %v1204_v13 = vsel %vm1177_vm0, %v1160_v10, 0.0 }
 0x15c   : > { %v1203_v49 = vadd.f32 %v1202_v0, %v1201_v48 }
 0x15e   : > { %v1205_v11 = vadd.f32 %v1204_v13, %v1203_v49 }
 0x160   : > { %v1091_v24 = vpop.permute.xlu1 %1090  ;;  %v1087_v17 = vpop.permute.xlu0 %1086  ;;  %1248 = vrot.lane.b32.xlu0 %v1205_v11, %s5058_s14 }
 0x161   : > { %v1163_v25 = vmul.f32 %v1091_v24, %v5585_v38  ;;  %v1162_v2 = vmul.f32 %v1087_v17, %v5577_v40  ;;  %v1119_v17 = vpop.permute.xlu2 %1118 }
 0x163   : > { %v1207_v36 = vsel %vm1177_vm0, %v1162_v2, 0.0  ;;  %v1209_v10 = vsel %vm1177_vm0, %v1163_v25, 0.0  ;;  %v1167_v2 = vmul.f32 %v1107_v6, %v5585_v38 }
 0x164   : > { %v1208_v5 = vadd.f32 %v1207_v36, %v1206_v12 }
 0x165   : > { %v1216_v30 = vsel %vm1177_vm0, %v1167_v2, 0.0 }
 0x166   : > { %v1210_v48 = vadd.f32 %v1209_v10, %v1208_v5 }
 0x168   : > { %v1103_v0 = vpop.permute.xlu1 %1102  ;;  %v1099_v13 = vpop.permute.xlu0 %1098  ;;  %v1212_v11 = vadd.f32 %v1211_v60, %v1210_v48 }
 0x169   : > { %v1166_v49 = vmul.f32 %v1103_v0, %v5577_v40  ;;  %v1165_v24 = vmul.f32 %v1099_v13, %v5573_v54  ;;  %v1131_v13 = vpop.permute.xlu2 %1130 }
 0x16a   : > { %1250 = vrot.lane.b32.xlu1 %v1212_v11, %s5058_s14 }
 0x16b   : > { %v1214_v56 = vsel %vm1177_vm0, %v1166_v49, 0.0  ;;  %v1213_v45 = vsel %vm1177_vm0, %v1165_v24, 0.0  ;;  %v1170_v49 = vmul.f32 %v1119_v17, %v5577_v40 }
 0x16c   : > { %v1215_v25 = vadd.f32 %v1214_v56, %v1213_v45 }
 0x16d   : > { %v1221_v56 = vsel %vm1177_vm0, %v1170_v49, 0.0 }
 0x16e   : > { %v1217_v10 = vadd.f32 %v1216_v30, %v1215_v25 }
 0x170   : > { %v1115_v12 = vpop.permute.xlu1 %1114  ;;  %v1111_v36 = vpop.permute.xlu0 %1110 }
 0x171   : > { %v1168_v5 = vmul.f32 %v1111_v36, %v5582_v55  ;;  %v1169_v48 = vmul.f32 %v1115_v12, %v5573_v54  ;;  %v4711_v12 = vld [vmem:[%s7809_s1 + $0x60] ss:$0 sm:$0xff] }
 0x173   : > { %v1218_v60 = vsel %vm1177_vm0, %v1168_v5, 0.0  ;;  %v1220_v6 = vsel %vm1177_vm0, %v1169_v48, 0.0 }
 0x174   : > { %v1219_v0 = vadd.f32 %v1218_v60, %v1217_v10  ;;  %v1222_v25 = vadd.f32 %v1221_v56, %v1220_v6  ;;  %v1173_v10 = vmul.f32 %v1131_v13, %v5573_v54  ;;  %v1143_v60 = vpop.permute.xlu2 %1142  ;;  %v4713_v13 = vld [vmem:[%s7809_s1 + $0x61] ss:$0 sm:$0xff] }
 0x175   : > { %v1176_v56 = vmul.f32 %v1143_v60, %v5582_v55  ;;  %v4722_v60 = vld [vmem:[%s7809_s1 + $0x68] ss:$0 sm:$0xff] }
 0x176   : > { %1252 = vrot.lane.b32.xlu2 %v1219_v0, %s5058_s14 }
 0x178   : > { %v1127_v11 = vpop.permute.xlu1 %1126  ;;  %v1123_v24 = vpop.permute.xlu0 %1122 }
 0x179   : > { %v1172_v45 = vmul.f32 %v1127_v11, %v5582_v55  ;;  %v1171_v2 = vmul.f32 %v1123_v24, %v5585_v38  ;;  %v4712_v11 = vld [vmem:[%s7809_s1 + $0x63] ss:$0 sm:$0xff]  ;;  %v1227_v24 = vsel %vm1177_vm0, %v1173_v10, 0.0  ;;  %v4714_v55 = vld [vmem:[%s7809_s1 + $0x66] ss:$0 sm:$0xff] }
 0x17a   : > { %v4720_v10 = vld [vmem:[%s7809_s1 + $0x6c] ss:$0 sm:$0xff] }
 0x17b   : > { %v1223_v17 = vsel %vm1177_vm0, %v1171_v2, 0.0  ;;  %v1225_v30 = vsel %vm1177_vm0, %v1172_v45, 0.0 }
 0x17c   : > { %v1224_v36 = vadd.f32 %v1223_v17, %v1222_v25  ;;  %v4716_v17 = vld [vmem:[%s7809_s1 + $0x62] ss:$0 sm:$0xff] }
 0x17e   : > { %1377 = vperm.xlu2 %4614, %v4711_v12   ;;  %v1226_v5 = vadd.f32 %v1225_v30, %v1224_v36  ;;  %v4715_v12 = vld [vmem:[%s7809_s1 + $0x64] ss:$0 sm:$0xff]  ;;  %v4717_v36 = vld [vmem:[%s7809_s1 + $0x69] ss:$0 sm:$0xff]  ;;  %v4718_v30 = vld [vmem:[%s7809_s1 + $0x67] ss:$0 sm:$0xff] }
 0x180   : > { %v1139_v48 = vpop.permute.xlu1 %1138  ;;  %v1135_v0 = vpop.permute.xlu0 %1134  ;;  %1254 = vrot.lane.b32.xlu0 %v1226_v5, %s5058_s14  ;;  %v4719_v5 = vld [vmem:[%s7809_s1 + $0x65] ss:$0 sm:$0xff] }
 0x181   : > { %v1175_v49 = vmul.f32 %v1139_v48, %v5585_v38  ;;  %v1174_v6 = vmul.f32 %v1135_v0, %v5577_v40  ;;  %v1232_v40 = vsel %vm1177_vm0, %v1176_v56, 0.0  ;;  %v4721_v48 = vld [vmem:[%s7809_s1 + $0x6a] ss:$0 sm:$0xff]  ;;  %v4723_v0 = vld [vmem:[%s7809_s1 + $0x6f] ss:$0 sm:$0xff] }
 0x182   : > { %v4728_v56 = vld [vmem:[%s7809_s1 + $0x6e] ss:$0 sm:$0xff] }
 0x183   : > { %v1228_v45 = vsel %vm1177_vm0, %v1174_v6, 0.0  ;;  %v1230_v2 = vsel %vm1177_vm0, %v1175_v49, 0.0  ;;  %v4724_v49 = vld [vmem:[%s7809_s1 + $0x6d] ss:$0 sm:$0xff]  ;;  %v4725_v6 = vld [vmem:[%s7809_s1 + $0x6b] ss:$0 sm:$0xff] }
 0x184   : > { %v1229_v54 = vadd.f32 %v1228_v45, %v1227_v24  ;;  %v4727_v24 = vld [vmem:[%s7809_s1 + $0x70] ss:$0 sm:$0xff]  ;;  %v4729_v45 = vld [vmem:[%s7809_s1 + $0x75] ss:$0 sm:$0xff] }
 0x186   : > { %1389 = vperm.xlu2 %4614, %v4712_v11   ;;  %v1231_v38 = vadd.f32 %v1230_v2, %v1229_v54  ;;  %v4726_v11 = vld [vmem:[%s7809_s1 + $0x72] ss:$0 sm:$0xff]  ;;  %v4730_v54 = vld [vmem:[%s7809_s1 + $0x73] ss:$0 sm:$0xff]  ;;  %v4732_v2 = vld [vmem:[%s7809_s1 + $0x78] ss:$0 sm:$0xff] }
 0x188   : > { %1381 = vperm.xlu0 %4612, %v4713_v13   ;;  %v1233_v25 = vadd.f32 %v1232_v40, %v1231_v38  ;;  %v4731_v13 = vld [vmem:[%s7809_s1 + $0x71] ss:$0 sm:$0xff]  ;;  %v4733_v38 = vld [vmem:[%s7809_s1 + $0x76] ss:$0 sm:$0xff]  ;;  %v4734_v40 = vld [vmem:[%s7809_s1 + $0x74] ss:$0 sm:$0xff] }
 0x18a   : > { %1256 = vrot.lane.b32.xlu1 %v1233_v25, %s5058_s14  ;;  %v4735_v25 = vld [vmem:[%s7809_s1 + $0x7b] ss:$0 sm:$0xff] }
 0x18e   : > { %1401 = vperm.xlu2 %4614, %v4714_v55   ;;  %v4736_v55 = vld [vmem:[%s7809_s1 + $0x79] ss:$0 sm:$0xff] }
 0x190   : > { %1393 = vperm.xlu0 %4612, %v4715_v12   ;;  %v4737_v12 = vld [vmem:[%s7809_s1 + $0x77] ss:$0 sm:$0xff] }
 0x192   : > { %1385 = vperm.xlu1 %4613, %v4716_v17  }
 0x196   : > { %1413 = vperm.xlu2 %4614, %v4717_v36   ;;  %v4738_v36 = vld [vmem:[%s7809_s1 + $0x7e] ss:$0 sm:$0xff] }
 0x198   : > { %1405 = vperm.xlu0 %4612, %v4718_v30   ;;  %v4739_v30 = vld [vmem:[%s7809_s1 + $0x7c] ss:$0 sm:$0xff] }
 0x19a   : > { %1397 = vperm.xlu1 %4613, %v4719_v5   ;;  %v4740_v5 = vld [vmem:[%s7809_s1 + $0x7a] ss:$0 sm:$0xff] }
 0x19e   : > { %1425 = vperm.xlu2 %4614, %v4720_v10  }
 0x1a0   : > { %1417 = vperm.xlu0 %4612, %v4721_v48   ;;  %v4741_v48 = vld [vmem:[%s7809_s1 + $0x81] ss:$0 sm:$0xff] }
 0x1a2   : > { %1409 = vperm.xlu1 %4613, %v4722_v60   ;;  %v4742_v60 = vld [vmem:[%s7809_s1 + $0x7f] ss:$0 sm:$0xff] }
 0x1a6   : > { %1437 = vperm.xlu2 %4614, %v4723_v0   ;;  %v4743_v0 = vld [vmem:[%s7809_s1 + $0x7d] ss:$0 sm:$0xff] }
 0x1a8   : > { %1429 = vperm.xlu0 %4612, %v4724_v49  }
 0x1aa   : > { %1421 = vperm.xlu1 %4613, %v4725_v6   ;;  %v4744_v6 = vld [vmem:[%s7809_s1 + $0x84] ss:$0 sm:$0xff] }
 0x1ae   : > { %1449 = vperm.xlu2 %4614, %v4726_v11   ;;  %v4745_v11 = vld [vmem:[%s7809_s1 + $0x82] ss:$0 sm:$0xff] }
 0x1b0   : > { %1441 = vperm.xlu0 %4612, %v4727_v24   ;;  %v5737_v17 = vpop.permute.xlu2 %1246  ;;  %v4746_v24 = vld [vmem:[%s7809_s1 + $0x80] ss:$0 sm:$0xff] }
 0x1b1   : > { %7858 = vst [vmem:[#allocation39_spill] sm:$0xff] %v5737_v17 }
 0x1b2   : > { %1433 = vperm.xlu1 %4613, %v4728_v56  }
 0x1b6   : > { %1461 = vperm.xlu2 %4614, %v4729_v45   ;;  %v5772_v45 = vpop.permute.xlu0 %1242 }
 0x1b7   : > { %7862 = vst [vmem:[#allocation43_spill] sm:$0xff] %v5772_v45  ;;  %v4779_v45 = vld [vmem:[%s7809_s1 + $0xa1] ss:$0 sm:$0xff] }
 0x1b8   : > { %1453 = vperm.xlu0 %4612, %v4730_v54   ;;  %v4747_v54 = vld [vmem:[%s7809_s1 + $0x87] ss:$0 sm:$0xff] }
 0x1ba   : > { %1445 = vperm.xlu1 %4613, %v4731_v13   ;;  %v4748_v13 = vld [vmem:[%s7809_s1 + $0x85] ss:$0 sm:$0xff] }
 0x1be   : > { %1473 = vperm.xlu2 %4614, %v4732_v2   ;;  %v4749_v2 = vld [vmem:[%s7809_s1 + $0x83] ss:$0 sm:$0xff] }
 0x1c0   : > { %1465 = vperm.xlu0 %4612, %v4733_v38  }
 0x1c2   : > { %1457 = vperm.xlu1 %4613, %v4734_v40  }
 0x1c6   : > { %1485 = vperm.xlu2 %4614, %v4735_v25   ;;  %v4750_v25 = vld [vmem:[%s7809_s1 + $0x8a] ss:$0 sm:$0xff] }
 0x1c8   : > { %1477 = vperm.xlu0 %4612, %v4736_v55   ;;  %v5790_v55 = vpop.permute.xlu1 %1244 }
 0x1c9   : > { %7865 = vst [vmem:[#allocation46_spill] sm:$0xff] %v5790_v55 }
 0x1ca   : > { %1469 = vperm.xlu1 %4613, %v4737_v12   ;;  %v4751_v12 = vld [vmem:[%s7809_s1 + $0x88] ss:$0 sm:$0xff] }
 0x1ce   : > { %1497 = vperm.xlu2 %4614, %v4738_v36   ;;  %v4752_v36 = vld [vmem:[%s7809_s1 + $0x86] ss:$0 sm:$0xff] }
 0x1d0   : > { %v5748_v10 = vpop.permute.xlu2 %1252  ;;  %1489 = vperm.xlu0 %4612, %v4739_v30  }
 0x1d1   : > { %7859 = vst [vmem:[#allocation40_spill] sm:$0xff] %v5748_v10 }
 0x1d2   : > { %1481 = vperm.xlu1 %4613, %v4740_v5   ;;  %v5785_v40 = vpop.permute.xlu0 %1248 }
 0x1d3   : > { %7864 = vst [vmem:[#allocation45_spill] sm:$0xff] %v5785_v40 }
 0x1d6   : > { %1707 = vperm.xlu2 %4614, %v4741_v48   ;;  %v4753_v48 = vld [vmem:[%s7809_s1 + $0x8d] ss:$0 sm:$0xff] }
 0x1d8   : > { %v5759_v49 = vpop.permute.xlu2 %1377  ;;  %1501 = vperm.xlu0 %4612, %v4742_v60  }
 0x1d9   : > { %7860 = vst [vmem:[#allocation41_spill] sm:$0xff] %v5759_v49 }
 0x1da   : > { %1493 = vperm.xlu1 %4613, %v4743_v0   ;;  %v4754_v0 = vld [vmem:[%s7809_s1 + $0x8b] ss:$0 sm:$0xff] }
 0x1dc   : > { %v5805_v60 = vpop.permute.xlu1 %1250 }
 0x1dd   : > { %7868 = vst [vmem:[#allocation49_spill] sm:$0xff] %v5805_v60 }
 0x1de   : > { %1719 = vperm.xlu2 %4614, %v4744_v6   ;;  %v4755_v6 = vld [vmem:[%s7809_s1 + $0x89] ss:$0 sm:$0xff] }
 0x1e0   : > { %v5770_v56 = vpop.permute.xlu2 %1389  ;;  %1711 = vperm.xlu0 %4612, %v4745_v11  }
 0x1e1   : > { %7861 = vst [vmem:[#allocation42_spill] sm:$0xff] %v5770_v56 }
 0x1e2   : > { %1703 = vperm.xlu1 %4613, %v4746_v24  }
 0x1e6   : > { %1731 = vperm.xlu2 %4614, %v4747_v54   ;;  %v4756_v54 = vld [vmem:[%s7809_s1 + $0x90] ss:$0 sm:$0xff] }
 0x1e8   : > { %v5783_v38 = vpop.permute.xlu2 %1401  ;;  %1723 = vperm.xlu0 %4612, %v4748_v13  }
 0x1e9   : > { %7863 = vst [vmem:[#allocation44_spill] sm:$0xff] %v5783_v38 }
 0x1ea   : > { %1715 = vperm.xlu1 %4613, %v4749_v2   ;;  %v4757_v2 = vld [vmem:[%s7809_s1 + $0x8e] ss:$0 sm:$0xff] }
 0x1ee   : > { %1743 = vperm.xlu2 %4614, %v4750_v25   ;;  %v4758_v25 = vld [vmem:[%s7809_s1 + $0x8c] ss:$0 sm:$0xff] }
 0x1f0   : > { %v5798_v30 = vpop.permute.xlu2 %1413  ;;  %1735 = vperm.xlu0 %4612, %v4751_v12  }
 0x1f1   : > { %7866 = vst [vmem:[#allocation47_spill] sm:$0xff] %v5798_v30 }
 0x1f2   : > { %1727 = vperm.xlu1 %4613, %v4752_v36   ;;  %v5800_v5 = vpop.permute.xlu0 %1254 }
 0x1f3   : > { %7867 = vst [vmem:[#allocation48_spill] sm:$0xff] %v5800_v5 }
 0x1f6   : > { %1755 = vperm.xlu2 %4614, %v4753_v48   ;;  %v4759_v48 = vld [vmem:[%s7809_s1 + $0x93] ss:$0 sm:$0xff] }
 0x1f8   : > { %v5813_v11 = vpop.permute.xlu2 %1425  ;;  %1747 = vperm.xlu0 %4612, %v4754_v0  }
 0x1f9   : > { %7869 = vst [vmem:[#allocation50_spill] sm:$0xff] %v5813_v11  ;;  %v4767_v11 = vld [vmem:[%s7809_s1 + $0x95] ss:$0 sm:$0xff] }
 0x1fa   : > { %1739 = vperm.xlu1 %4613, %v4755_v6   ;;  %v5815_v24 = vpop.permute.xlu0 %1381  ;;  %v4760_v6 = vld [vmem:[%s7809_s1 + $0x91] ss:$0 sm:$0xff] }
 0x1fb   : > { %7870 = vst [vmem:[#allocation51_spill] sm:$0xff] %v5815_v24  ;;  %v4788_v24 = vld [vmem:[%s7809_s1 + $0xaa] ss:$0 sm:$0xff] }
 0x1fc   : > { %v5820_v13 = vpop.permute.xlu1 %1256 }
 0x1fd   : > { %7871 = vst [vmem:[#allocation52_spill] sm:$0xff] %v5820_v13 }
 0x1fe   : > { %1767 = vperm.xlu2 %4614, %v4756_v54   ;;  %v4761_v54 = vld [vmem:[%s7809_s1 + $0x8f] ss:$0 sm:$0xff] }
 0x200   : > { %v5828_v12 = vpop.permute.xlu2 %1437  ;;  %1759 = vperm.xlu0 %4612, %v4757_v2  }
 0x201   : > { %7872 = vst [vmem:[#allocation53_spill] sm:$0xff] %v5828_v12  ;;  %v4764_v12 = vld [vmem:[%s7809_s1 + $0x92] ss:$0 sm:$0xff] }
 0x202   : > { %1751 = vperm.xlu1 %4613, %v4758_v25   ;;  %v5830_v36 = vpop.permute.xlu0 %1393  ;;  %v4762_v25 = vld [vmem:[%s7809_s1 + $0x96] ss:$0 sm:$0xff] }
 0x203   : > { %7873 = vst [vmem:[#allocation54_spill] sm:$0xff] %v5830_v36  ;;  %v4770_v36 = vld [vmem:[%s7809_s1 + $0x98] ss:$0 sm:$0xff] }
 0x204   : > { %v5835_v0 = vpop.permute.xlu1 %1385 }
 0x205   : > { %7874 = vst [vmem:[#allocation55_spill] sm:$0xff] %v5835_v0  ;;  %v4785_v0 = vld [vmem:[%s7809_s1 + $0xa7] ss:$0 sm:$0xff] }
 0x206   : > { %1779 = vperm.xlu2 %4614, %v4759_v48   ;;  %v4763_v48 = vld [vmem:[%s7809_s1 + $0x94] ss:$0 sm:$0xff] }
 0x208   : > { %v5843_v40 = vpop.permute.xlu2 %1449  ;;  %1771 = vperm.xlu0 %4612, %v4760_v6  }
 0x20a   : > { %1763 = vperm.xlu1 %4613, %v4761_v54   ;;  %v5845_v2 = vpop.permute.xlu0 %1405  ;;  %v4765_v54 = vld [vmem:[%s7809_s1 + $0x99] ss:$0 sm:$0xff] }
 0x20b   : > { %7875 = vst [vmem:[#allocation56_spill] sm:$0xff] %v5845_v2 }
 0x20c   : > { %v5850_v55 = vpop.permute.xlu1 %1397 }
 0x20d   : > { %7876 = vst [vmem:[#allocation57_spill] sm:$0xff] %v5850_v55  ;;  %v4776_v55 = vld [vmem:[%s7809_s1 + $0x9e] ss:$0 sm:$0xff] }
 0x20e   : > { %1791 = vperm.xlu2 %4614, %v4762_v25   ;;  %v4766_v25 = vld [vmem:[%s7809_s1 + $0x97] ss:$0 sm:$0xff] }
 0x210   : > { %v5858_v17 = vpop.permute.xlu2 %1461  ;;  %1783 = vperm.xlu0 %4612, %v4763_v48   ;;  %v4768_v48 = vld [vmem:[%s7809_s1 + $0x9c] ss:$0 sm:$0xff] }
 0x211   : > { %7877 = vst [vmem:[#allocation58_spill] sm:$0xff] %v5858_v17  ;;  %v6495_v17 = vld [vmem:[%s5568_s13 + $0x51] sm:$0xff] }
 0x212   : > { %1775 = vperm.xlu1 %4613, %v4764_v12   ;;  %v5860_v6 = vpop.permute.xlu0 %1417 }
 0x213   : > { %7878 = vst [vmem:[#allocation59_spill] sm:$0xff] %v5860_v6 }
 0x214   : > { %v5865_v2 = vpop.permute.xlu1 %1409 }
 0x215   : > { %7879 = vst [vmem:[#allocation60_spill] sm:$0xff] %v5865_v2 }
 0x216   : > { %1803 = vperm.xlu2 %4614, %v4765_v54   ;;  %v4769_v54 = vld [vmem:[%s7809_s1 + $0x9a] ss:$0 sm:$0xff] }
 0x218   : > { %v5873_v38 = vpop.permute.xlu2 %1473  ;;  %1795 = vperm.xlu0 %4612, %v4766_v25   ;;  %v4771_v25 = vld [vmem:[%s7809_s1 + $0x9f] ss:$0 sm:$0xff] }
 0x219   : > { %7880 = vst [vmem:[#allocation61_spill] sm:$0xff] %v5873_v38 }
 0x21a   : > { %1787 = vperm.xlu1 %4613, %v4767_v11   ;;  %v5875_v12 = vpop.permute.xlu0 %1429 }
 0x21b   : > { %7881 = vst [vmem:[#allocation62_spill] sm:$0xff] %v5875_v12 }
 0x21c   : > { %v5880_v6 = vpop.permute.xlu1 %1421 }
 0x21d   : > { %7882 = vst [vmem:[#allocation63_spill] sm:$0xff] %v5880_v6  ;;  %v4773_v6 = vld [vmem:[%s7809_s1 + $0x9b] ss:$0 sm:$0xff] }
 0x21e   : > { %1815 = vperm.xlu2 %4614, %v4768_v48   ;;  %v4772_v48 = vld [vmem:[%s7809_s1 + $0x9d] ss:$0 sm:$0xff] }
 0x220   : > { %v5888_v30 = vpop.permute.xlu2 %1485  ;;  %1807 = vperm.xlu0 %4612, %v4769_v54   ;;  %v4774_v54 = vld [vmem:[%s7809_s1 + $0xa2] ss:$0 sm:$0xff] }
 0x221   : > { %7883 = vst [vmem:[#allocation64_spill] sm:$0xff] %v5888_v30 }
 0x222   : > { %1799 = vperm.xlu1 %4613, %v4770_v36   ;;  %v5890_v11 = vpop.permute.xlu0 %1441 }
 0x224   : > { %v5895_v12 = vpop.permute.xlu1 %1433 }
 0x225   : > { %7884 = vst [vmem:[#allocation65_spill] sm:$0xff] %v5895_v12 }
 0x226   : > { %1827 = vperm.xlu2 %4614, %v4771_v25   ;;  %v4775_v25 = vld [vmem:[%s7809_s1 + $0xa0] ss:$0 sm:$0xff] }
 0x228   : > { %v5903_v2 = vpop.permute.xlu2 %1497  ;;  %1819 = vperm.xlu0 %4612, %v4772_v48   ;;  %v4777_v48 = vld [vmem:[%s7809_s1 + $0xa5] ss:$0 sm:$0xff] }
 0x229   : > { %7885 = vst [vmem:[#allocation66_spill] sm:$0xff] %v5903_v2 }
 0x22a   : > { %1811 = vperm.xlu1 %4613, %v4773_v6   ;;  %v5905_v36 = vpop.permute.xlu0 %1453 }
 0x22b   : > { %7886 = vst [vmem:[#allocation67_spill] sm:$0xff] %v5905_v36  ;;  %v6508_v36 = vld [vmem:[%s5568_s13 + $0x41] sm:$0xff] }
 0x22c   : > { %v5910_v12 = vpop.permute.xlu1 %1445 }
 0x22e   : > { %2032 = vperm.xlu2 %4614, %v4774_v54   ;;  %v4778_v54 = vld [vmem:[%s7809_s1 + $0xa3] ss:$0 sm:$0xff] }
 0x230   : > { %v5918_v41 = vpop.permute.xlu2 %1707  ;;  %2024 = vperm.xlu0 %4612, %v4775_v25   ;;  %v4780_v25 = vld [vmem:[%s7809_s1 + $0xa8] ss:$0 sm:$0xff] }
 0x231   : > { %7887 = vst [vmem:[#allocation68_spill] sm:$0xff] %v5918_v41  ;;  %v4782_v41 = vld [vmem:[%s7809_s1 + $0xa4] ss:$0 sm:$0xff] }
 0x232   : > { %1823 = vperm.xlu1 %4613, %v4776_v55   ;;  %v5920_v6 = vpop.permute.xlu0 %1465 }
 0x233   : > { %7888 = vst [vmem:[#allocation69_spill] sm:$0xff] %v5920_v6 }
 0x234   : > { %v5925_v37 = vpop.permute.xlu1 %1457 }
 0x235   : > { %7889 = vst [vmem:[#allocation70_spill] sm:$0xff] %v5925_v37 }
 0x236   : > { %2044 = vperm.xlu2 %4614, %v4777_v48   ;;  %v4781_v48 = vld [vmem:[%s7809_s1 + $0xa6] ss:$0 sm:$0xff] }
 0x238   : > { %v5933_v56 = vpop.permute.xlu2 %1719  ;;  %2036 = vperm.xlu0 %4612, %v4778_v54   ;;  %v4783_v54 = vld [vmem:[%s7809_s1 + $0xab] ss:$0 sm:$0xff] }
 0x239   : > { %7890 = vst [vmem:[#allocation71_spill] sm:$0xff] %v5933_v56 }
 0x23a   : > { %2028 = vperm.xlu1 %4613, %v4779_v45   ;;  %v5935_v55 = vpop.permute.xlu0 %1477 }
 0x23b   : > { %7891 = vst [vmem:[#allocation72_spill] sm:$0xff] %v5935_v55 }
 0x23c   : > { %v5940_v57 = vpop.permute.xlu1 %1469 }
 0x23d   : > { %7892 = vst [vmem:[#allocation73_spill] sm:$0xff] %v5940_v57 }
 0x23e   : > { %2056 = vperm.xlu2 %4614, %v4780_v25   ;;  %v4784_v25 = vld [vmem:[%s7809_s1 + $0xa9] ss:$0 sm:$0xff] }
 0x240   : > { %v5948_v56 = vpop.permute.xlu2 %1731  ;;  %2048 = vperm.xlu0 %4612, %v4781_v48   ;;  %v4786_v48 = vld [vmem:[%s7809_s1 + $0xae] ss:$0 sm:$0xff] }
 0x241   : > { %7893 = vst [vmem:[#allocation74_spill] sm:$0xff] %v5948_v56 }
 0x242   : > { %2040 = vperm.xlu1 %4613, %v4782_v41   ;;  %v5950_v45 = vpop.permute.xlu0 %1489 }
 0x243   : > { %7894 = vst [vmem:[#allocation75_spill] sm:$0xff] %v5950_v45 }
 0x244   : > { %v5955_v33 = vpop.permute.xlu1 %1481 }
 0x245   : > { %7895 = vst [vmem:[#allocation76_spill] sm:$0xff] %v5955_v33 }
 0x246   : > { %2068 = vperm.xlu2 %4614, %v4783_v54   ;;  %v4787_v54 = vld [vmem:[%s7809_s1 + $0xac] ss:$0 sm:$0xff] }
 0x248   : > { %v5963_v56 = vpop.permute.xlu2 %1743  ;;  %2060 = vperm.xlu0 %4612, %v4784_v25  }
 0x249   : > { %7896 = vst [vmem:[#allocation77_spill] sm:$0xff] %v5963_v56  ;;  %v4789_v56 = vld [vmem:[%s7809_s1 + $0xb1] ss:$0 sm:$0xff] }
 0x24a   : > { %2052 = vperm.xlu1 %4613, %v4785_v0   ;;  %v5965_v41 = vpop.permute.xlu0 %1501 }
 0x24b   : > { %7897 = vst [vmem:[#allocation78_spill] sm:$0xff] %v5965_v41 }
 0x24c   : > { %v5970_v49 = vpop.permute.xlu1 %1493 }
 0x24d   : > { %7898 = vst [vmem:[#allocation79_spill] sm:$0xff] %v5970_v49 }
 0x24e   : > { %2080 = vperm.xlu2 %4614, %v4786_v48   ;;  %v4790_v48 = vld [vmem:[%s7809_s1 + $0xaf] ss:$0 sm:$0xff] }
 0x250   : > { %2072 = vperm.xlu0 %4612, %v4787_v54   ;;  %v5978_v25 = vpop.permute.xlu2 %1755  ;;  %v4791_v54 = vld [vmem:[%s7809_s1 + $0xad] ss:$0 sm:$0xff] }
 0x251   : > { %7899 = vst [vmem:[#allocation80_spill] sm:$0xff] %v5978_v25  ;;  %v4792_v25 = vld [vmem:[%s7809_s1 + $0xb4] ss:$0 sm:$0xff] }
 0x252   : > { %2064 = vperm.xlu1 %4613, %v4788_v24   ;;  %v5980_v0 = vpop.permute.xlu0 %1711 }
 0x253   : > { %7900 = vst [vmem:[#allocation81_spill] sm:$0xff] %v5980_v0 }
 0x254   : > { %v5985_v62 = vpop.permute.xlu1 %1703 }
 0x255   : > { %7901 = vst [vmem:[#allocation82_spill] sm:$0xff] %v5985_v62 }
 0x256   : > { %2092 = vperm.xlu2 %4614, %v4789_v56   ;;  %v4793_v56 = vld [vmem:[%s7809_s1 + $0xb2] ss:$0 sm:$0xff] }
 0x258   : > { %2084 = vperm.xlu0 %4612, %v4790_v48   ;;  %v5998_v0 = vpop.permute.xlu2 %1767  ;;  %v4794_v48 = vld [vmem:[%s7809_s1 + $0xb0] ss:$0 sm:$0xff] }
 0x25a   : > { %2076 = vperm.xlu1 %4613, %v4791_v54   ;;  %v5993_v24 = vpop.permute.xlu0 %1723 }
 0x25b   : > { %7902 = vst [vmem:[#allocation83_spill] sm:$0xff] %v5993_v24  ;;  %v4795_v24 = vld [vmem:[%s7809_s1 + $0xb7] ss:$0 sm:$0xff] }
 0x25c   : > { %v6000_v62 = vpop.permute.xlu1 %1715 }
 0x25d   : > { %7903 = vst [vmem:[#allocation84_spill] sm:$0xff] %v6000_v62  ;;  %v4796_v62 = vld [vmem:[%s7809_s1 + $0xb5] ss:$0 sm:$0xff] }
 0x25e   : > { %2104 = vperm.xlu2 %4614, %v4792_v25   ;;  %v4797_v25 = vld [vmem:[%s7809_s1 + $0xb3] ss:$0 sm:$0xff] }
 0x260   : > { %2096 = vperm.xlu0 %4612, %v4793_v56   ;;  %v6018_v27 = vpop.permute.xlu2 %1779 }
 0x261   : > { %7906 = vst [vmem:[#allocation87_spill] sm:$0xff] %v6018_v27 }
 0x262   : > { %2088 = vperm.xlu1 %4613, %v4794_v48   ;;  %v6008_v54 = vpop.permute.xlu0 %1735  ;;  %v4798_v48 = vld [vmem:[%s7809_s1 + $0xba] ss:$0 sm:$0xff] }
 0x263   : > { %7904 = vst [vmem:[#allocation85_spill] sm:$0xff] %v6008_v54  ;;  %v4799_v54 = vld [vmem:[%s7809_s1 + $0xb8] ss:$0 sm:$0xff] }
 0x264   : > { %v6013_v51 = vpop.permute.xlu1 %1727 }
 0x265   : > { %7905 = vst [vmem:[#allocation86_spill] sm:$0xff] %v6013_v51 }
 0x266   : > { %2116 = vperm.xlu2 %4614, %v4795_v24   ;;  %v4800_v24 = vld [vmem:[%s7809_s1 + $0xb6] ss:$0 sm:$0xff] }
 0x268   : > { %2108 = vperm.xlu0 %4612, %v4796_v62   ;;  %v6036_v52 = vpop.permute.xlu2 %1791 }
 0x269   : > { %7909 = vst [vmem:[#allocation90_spill] sm:$0xff] %v6036_v52 }
 0x26a   : > { %2100 = vperm.xlu1 %4613, %v4797_v25   ;;  %v6023_v56 = vpop.permute.xlu0 %1747  ;;  %v4801_v25 = vld [vmem:[%s7809_s1 + $0xbd] ss:$0 sm:$0xff] }
 0x26b   : > { %7907 = vst [vmem:[#allocation88_spill] sm:$0xff] %v6023_v56 }
 0x26c   : > { %v6028_v51 = vpop.permute.xlu1 %1739 }
 0x26d   : > { %7908 = vst [vmem:[#allocation89_spill] sm:$0xff] %v6028_v51  ;;  %v4803_v51 = vld [vmem:[%s7809_s1 + $0xb9] ss:$0 sm:$0xff] }
 0x26e   : > { %2128 = vperm.xlu2 %4614, %v4798_v48   ;;  %v4802_v48 = vld [vmem:[%s7809_s1 + $0xbb] ss:$0 sm:$0xff] }
 0x270   : > { %2120 = vperm.xlu0 %4612, %v4799_v54   ;;  %v6051_v54 = vpop.permute.xlu2 %1803 }
 0x271   : > { %7912 = vst [vmem:[#allocation93_spill] sm:$0xff] %v6051_v54  ;;  %v6089_v54 = vld [vmem:[%s5568_s13 + $0x80] sm:$0xff] }
 0x272   : > { %2112 = vperm.xlu1 %4613, %v4800_v24   ;;  %v6038_v62 = vpop.permute.xlu0 %1759 }
 0x273   : > { %7910 = vst [vmem:[#allocation91_spill] sm:$0xff] %v6038_v62 }
 0x274   : > { %v6043_v56 = vpop.permute.xlu1 %1751 }
 0x275   : > { %7911 = vst [vmem:[#allocation92_spill] sm:$0xff] %v6043_v56  ;;  %v4804_v56 = vld [vmem:[%s7809_s1 + $0xbe] ss:$0 sm:$0xff] }
 0x276   : > { %2140 = vperm.xlu2 %4614, %v4801_v25   ;;  %v4805_v25 = vld [vmem:[%s7809_s1 + $0xbc] ss:$0 sm:$0xff] }
 0x278   : > { %2132 = vperm.xlu0 %4612, %v4802_v48   ;;  %v6065_v48 = vpop.permute.xlu2 %1815 }
 0x279   : > { %7915 = vst [vmem:[#allocation96_spill] sm:$0xff] %v6065_v48 }
 0x27a   : > { %2124 = vperm.xlu1 %4613, %v4803_v51   ;;  %v6053_v24 = vpop.permute.xlu0 %1771 }
 0x27c   : > { %v6055_v62 = vpop.permute.xlu1 %1763 }
 0x27d   : > { %7913 = vst [vmem:[#allocation94_spill] sm:$0xff] %v6055_v62  ;;  %v4806_v62 = vld [vmem:[%s7809_s1 + $0xbf] ss:$0 sm:$0xff] }
 0x280   : > { %2144 = vperm.xlu0 %4612, %v4804_v56   ;;  %v6076_v56 = vpop.permute.xlu2 %1827 }
 0x281   : > { %7918 = vst [vmem:[#allocation99_spill] sm:$0xff] %v6076_v56  ;;  %v6093_v56 = vld [vmem:[%s5568_s13 + $0xa0] sm:$0xff] }
 0x282   : > { %2136 = vperm.xlu1 %4613, %v4805_v25   ;;  %v6063_v1 = vpop.permute.xlu0 %1783 }
 0x283   : > { %7914 = vst [vmem:[#allocation95_spill] sm:$0xff] %v6063_v1 }
 0x284   : > { %v6067_v51 = vpop.permute.xlu1 %1775 }
 0x288   : > { %v2033_v5 = vpop.permute.xlu2 %2032 }
 0x28a   : > { %2148 = vperm.xlu1 %4613, %v4806_v62   ;;  %v6072_v58 = vpop.permute.xlu0 %1795 }
 0x28b   : > { %7916 = vst [vmem:[#allocation97_spill] sm:$0xff] %v6072_v58  ;;  %v2153_v58 = vmul.f32 %v6093_v56, %v2033_v5 }
 0x28c   : > { %v6074_v13 = vpop.permute.xlu1 %1787 }
 0x28d   : > { %7917 = vst [vmem:[#allocation98_spill] sm:$0xff] %v6074_v13 }
 0x290   : > { %v2045_v49 = vpop.permute.xlu2 %2044 }
 0x292   : > { %v6078_v25 = vpop.permute.xlu0 %1807 }
 0x293   : > { %7919 = vst [vmem:[#allocation100_spill] sm:$0xff] %v6078_v25  ;;  %v6096_v25 = vld [vmem:[%s5568_s13 + $0x90] sm:$0xff] }
 0x294   : > { %v6080_v41 = vpop.permute.xlu1 %1799  ;;  %v2156_v5 = vmul.f32 %v6096_v25, %v2045_v49 }
 0x295   : > { %7920 = vst [vmem:[#allocation101_spill] sm:$0xff] %v6080_v41 }
 0x298   : > { %v2057_v41 = vpop.permute.xlu2 %2056 }
 0x29a   : > { %v6082_v48 = vpop.permute.xlu0 %1819 }
 0x29b   : > { %7921 = vst [vmem:[#allocation102_spill] sm:$0xff] %v6082_v48 }
 0x29c   : > { %v6084_v2 = vpop.permute.xlu1 %1811 }
 0x29d   : > { %7922 = vst [vmem:[#allocation103_spill] sm:$0xff] %v6084_v2  ;;  %v6101_v2 = vld [vmem:[%s5568_s13 + $0xb0] sm:$0xff] }
 0x2a0   : > { %v2069_v13 = vpop.permute.xlu2 %2068 }
 0x2a2   : > { %v2025_v45 = vpop.permute.xlu0 %2024 }
 0x2a3   : > { %v2151_v10 = vmul.f32 %v6089_v54, %v2025_v45  ;;  %v2186_v45 = vsel %vm1177_vm0, %v2153_v58, 0.0 }
 0x2a4   : > { %v6086_v62 = vpop.permute.xlu1 %1823 }
 0x2a5   : > { %7923 = vst [vmem:[#allocation104_spill] sm:$0xff] %v6086_v62  ;;  %v2183_v33 = vsel %vm1177_vm0, %v2151_v10, 0.0 }
 0x2aa   : > { %v2037_v30 = vpop.permute.xlu0 %2036 }
 0x2ab   : > { %v2154_v62 = vmul.f32 %v6101_v2, %v2037_v30  ;;  %v2191_v30 = vsel %vm1177_vm0, %v2156_v5, 0.0 }
 0x2ac   : > { %v2029_v63 = vpop.permute.xlu1 %2028 }
 0x2ad   : > { %v2152_v48 = vmul.f32 %v6096_v25, %v2029_v63  ;;  %v2188_v6 = vsel %vm1177_vm0, %v2154_v62, 0.0  ;;  %v2081_v62 = vpop.permute.xlu2 %2080 }
 0x2af   : > { %v2184_v55 = vsel %vm1177_vm0, %v2152_v48, 0.0 }
 0x2b0   : > { %v2185_v38 = vadd.f32 %v2184_v55, %v2183_v33 }
 0x2b2   : > { %v2187_v52 = vadd.f32 %v2186_v45, %v2185_v38  ;;  %v2049_v57 = vpop.permute.xlu0 %2048  ;;  %v2159_v45 = vmul.f32 %v6089_v54, %v2057_v41 }
 0x2b3   : > { %v2157_v33 = vmul.f32 %v6093_v56, %v2049_v57 }
 0x2b4   : > { %v2041_v1 = vpop.permute.xlu1 %2040  ;;  %v2189_v60 = vadd.f32 %v2188_v6, %v2187_v52 }
 0x2b5   : > { %v2155_v63 = vmul.f32 %v6089_v54, %v2041_v1  ;;  %v2193_v48 = vsel %vm1177_vm0, %v2157_v33, 0.0 }
 0x2b6   : > { %2247 = vrot.lane.b32.xlu2 %v2189_v60, %s5058_s14 }
 0x2b7   : > { %v2190_v10 = vsel %vm1177_vm0, %v2155_v63, 0.0 }
 0x2b8   : > { %v2192_v58 = vadd.f32 %v2191_v30, %v2190_v10  ;;  %v2197_v10 = vsel %vm1177_vm0, %v2159_v45, 0.0  ;;  %v2162_v30 = vmul.f32 %v6101_v2, %v2069_v13 }
 0x2ba   : > { %v2061_v38 = vpop.permute.xlu0 %2060  ;;  %v2194_v6 = vadd.f32 %v2193_v48, %v2192_v58  ;;  %v2202_v48 = vsel %vm1177_vm0, %v2162_v30, 0.0 }
 0x2bb   : > { %v2160_v49 = vmul.f32 %v6096_v25, %v2061_v38 }
 0x2bc   : > { %v2053_v55 = vpop.permute.xlu1 %2052 }
 0x2bd   : > { %v2158_v52 = vmul.f32 %v6101_v2, %v2053_v55  ;;  %v2198_v57 = vsel %vm1177_vm0, %v2160_v49, 0.0  ;;  %v2165_v49 = vmul.f32 %v6093_v56, %v2081_v62 }
 0x2be   : > { %v2199_v58 = vadd.f32 %v2198_v57, %v2197_v10 }
 0x2bf   : > { %v2195_v1 = vsel %vm1177_vm0, %v2158_v52, 0.0  ;;  %v2093_v52 = vpop.permute.xlu2 %2092  ;;  %v2207_v30 = vsel %vm1177_vm0, %v2165_v49, 0.0 }
 0x2c0   : > { %v2196_v60 = vadd.f32 %v2195_v1, %v2194_v6  ;;  %v2168_v62 = vmul.f32 %v6096_v25, %v2093_v52 }
 0x2c2   : > { %2249 = vrot.lane.b32.xlu0 %v2196_v60, %s5058_s14  ;;  %v2073_v5 = vpop.permute.xlu0 %2072 }
 0x2c3   : > { %v2163_v1 = vmul.f32 %v6089_v54, %v2073_v5 }
 0x2c4   : > { %v2065_v63 = vpop.permute.xlu1 %2064 }
 0x2c5   : > { %v2161_v33 = vmul.f32 %v6093_v56, %v2065_v63  ;;  %v2204_v45 = vsel %vm1177_vm0, %v2163_v1, 0.0  ;;  %v2212_v1 = vsel %vm1177_vm0, %v2168_v62, 0.0 }
 0x2c7   : > { %v2200_v38 = vsel %vm1177_vm0, %v2161_v33, 0.0 }
 0x2c8   : > { %v2201_v55 = vadd.f32 %v2200_v38, %v2199_v58  ;;  %v2105_v38 = vpop.permute.xlu2 %2104 }
 0x2ca   : > { %v2203_v41 = vadd.f32 %v2202_v48, %v2201_v55  ;;  %v2085_v6 = vpop.permute.xlu0 %2084 }
 0x2cb   : > { %v2166_v57 = vmul.f32 %v6101_v2, %v2085_v6 }
 0x2cc   : > { %v2077_v60 = vpop.permute.xlu1 %2076  ;;  %2251 = vrot.lane.b32.xlu1 %v2203_v41, %s5058_s14 }
 0x2cd   : > { %v2164_v13 = vmul.f32 %v6096_v25, %v2077_v60  ;;  %v2209_v5 = vsel %vm1177_vm0, %v2166_v57, 0.0 }
 0x2cf   : > { %v2205_v63 = vsel %vm1177_vm0, %v2164_v13, 0.0 }
 0x2d0   : > { %v2206_v10 = vadd.f32 %v2205_v63, %v2204_v45 }
 0x2d2   : > { %v2208_v33 = vadd.f32 %v2207_v30, %v2206_v10  ;;  %v2097_v58 = vpop.permute.xlu0 %2096  ;;  %v2117_v10 = vpop.permute.xlu2 %2116 }
 0x2d3   : > { %v2169_v60 = vmul.f32 %v6093_v56, %v2097_v58 }
 0x2d4   : > { %v2089_v55 = vpop.permute.xlu1 %2088  ;;  %v2210_v48 = vadd.f32 %v2209_v5, %v2208_v33 }
 0x2d5   : > { %v2167_v41 = vmul.f32 %v6089_v54, %v2089_v55  ;;  %v2214_v57 = vsel %vm1177_vm0, %v2169_v60, 0.0  ;;  %v2171_v55 = vmul.f32 %v6089_v54, %v2105_v38 }
 0x2d6   : > { %2253 = vrot.lane.b32.xlu2 %v2210_v48, %s5058_s14 }
 0x2d7   : > { %v2211_v6 = vsel %vm1177_vm0, %v2167_v41, 0.0  ;;  %v2218_v41 = vsel %vm1177_vm0, %v2171_v55, 0.0 }
 0x2d8   : > { %v2213_v49 = vadd.f32 %v2212_v1, %v2211_v6  ;;  %v2174_v6 = vmul.f32 %v6101_v2, %v2117_v10 }
 0x2da   : > { %v2109_v13 = vpop.permute.xlu0 %2108  ;;  %v2215_v30 = vadd.f32 %v2214_v57, %v2213_v49  ;;  %v2223_v57 = vsel %vm1177_vm0, %v2174_v6, 0.0 }
 0x2db   : > { %v2172_v52 = vmul.f32 %v6096_v25, %v2109_v13  ;;  %v2129_v13 = vpop.permute.xlu2 %2128 }
 0x2dc   : > { %v2101_v45 = vpop.permute.xlu1 %2100 }
 0x2dd   : > { %v2170_v63 = vmul.f32 %v6101_v2, %v2101_v45  ;;  %v2219_v58 = vsel %vm1177_vm0, %v2172_v52, 0.0  ;;  %v2177_v52 = vmul.f32 %v6093_v56, %v2129_v13 }
 0x2de   : > { %v2220_v60 = vadd.f32 %v2219_v58, %v2218_v41  ;;  %v4807_v41 = vld [vmem:[%s7809_s1 + $0xc0] ss:$0 sm:$0xff] }
 0x2df   : > { %v2216_v33 = vsel %vm1177_vm0, %v2170_v63, 0.0 }
 0x2e0   : > { %v2217_v5 = vadd.f32 %v2216_v33, %v2215_v30 }
 0x2e2   : > { %2255 = vrot.lane.b32.xlu0 %v2217_v5, %s5058_s14  ;;  %v2121_v48 = vpop.permute.xlu0 %2120 }
 0x2e3   : > { %v2175_v63 = vmul.f32 %v6089_v54, %v2121_v48  ;;  %v2228_v48 = vsel %vm1177_vm0, %v2177_v52, 0.0  ;;  %v2141_v6 = vpop.permute.xlu2 %2140 }
 0x2e4   : > { %v2113_v62 = vpop.permute.xlu1 %2112 }
 0x2e5   : > { %v2173_v1 = vmul.f32 %v6093_v56, %v2113_v62  ;;  %v2225_v5 = vsel %vm1177_vm0, %v2175_v63, 0.0 }
 0x2e7   : > { %v2221_v49 = vsel %vm1177_vm0, %v2173_v1, 0.0 }
 0x2e8   : > { %v2222_v45 = vadd.f32 %v2221_v49, %v2220_v60 }
 0x2ea   : > { %v2224_v38 = vadd.f32 %v2223_v57, %v2222_v45  ;;  %v2133_v30 = vpop.permute.xlu0 %2132  ;;  %v2180_v45 = vmul.f32 %v6096_v25, %v2141_v6  ;;  %v4811_v6 = vld [vmem:[%s7809_s1 + $0xc4] ss:$0 sm:$0xff] }
 0x2eb   : > { %v2178_v55 = vmul.f32 %v6101_v2, %v2133_v30  ;;  %v4808_v30 = vld [vmem:[%s7809_s1 + $0xc3] ss:$0 sm:$0xff] }
 0x2ec   : > { %v2125_v33 = vpop.permute.xlu1 %2124  ;;  %2257 = vrot.lane.b32.xlu1 %v2224_v38, %s5058_s14 }
 0x2ed   : > { %v2176_v10 = vmul.f32 %v6096_v25, %v2125_v33  ;;  %v2230_v60 = vsel %vm1177_vm0, %v2178_v55, 0.0  ;;  %v2233_v33 = vsel %vm1177_vm0, %v2180_v45, 0.0  ;;  %v4817_v45 = vld [vmem:[%s7809_s1 + $0xca] ss:$0 sm:$0xff] }
 0x2ef   : > { %v2226_v58 = vsel %vm1177_vm0, %v2176_v10, 0.0 }
 0x2f0   : > { %v2227_v62 = vadd.f32 %v2226_v58, %v2225_v5  ;;  %v4809_v5 = vld [vmem:[%s7809_s1 + $0xc1] ss:$0 sm:$0xff] }
 0x2f2   : > { %v2229_v1 = vadd.f32 %v2228_v48, %v2227_v62  ;;  %v2145_v38 = vpop.permute.xlu0 %2144 }
 0x2f3   : > { %v2181_v52 = vmul.f32 %v6093_v56, %v2145_v38  ;;  %v4810_v56 = vld [vmem:[%s7809_s1 + $0xc6] ss:$0 sm:$0xff]  ;;  %v4819_v38 = vld [vmem:[%s7809_s1 + $0xcf] ss:$0 sm:$0xff] }
 0x2f4   : > { %v2137_v49 = vpop.permute.xlu1 %2136  ;;  %2381 = vperm.xlu1 %4613, %v4807_v41   ;;  %v2231_v13 = vadd.f32 %v2230_v60, %v2229_v1  ;;  %v4813_v1 = vld [vmem:[%s7809_s1 + $0xc9] ss:$0 sm:$0xff]  ;;  %v4814_v60 = vld [vmem:[%s7809_s1 + $0xc7] ss:$0 sm:$0xff] }
 0x2f5   : > { %v2179_v57 = vmul.f32 %v6089_v54, %v2137_v49  ;;  %v2235_v54 = vsel %vm1177_vm0, %v2181_v52, 0.0  ;;  %v4815_v49 = vld [vmem:[%s7809_s1 + $0xc5] ss:$0 sm:$0xff]  ;;  %v4823_v52 = vld [vmem:[%s7809_s1 + $0xd0] ss:$0 sm:$0xff] }
 0x2f6   : > { %2259 = vrot.lane.b32.xlu2 %v2231_v13, %s5058_s14  ;;  %v4816_v13 = vld [vmem:[%s7809_s1 + $0xcc] ss:$0 sm:$0xff] }
 0x2f7   : > { %v2232_v63 = vsel %vm1177_vm0, %v2179_v57, 0.0  ;;  %v4818_v57 = vld [vmem:[%s7809_s1 + $0xc8] ss:$0 sm:$0xff] }
 0x2f8   : > { %v2234_v10 = vadd.f32 %v2233_v33, %v2232_v63  ;;  %v4820_v63 = vld [vmem:[%s7809_s1 + $0xcd] ss:$0 sm:$0xff]  ;;  %v4822_v33 = vld [vmem:[%s7809_s1 + $0xd2] ss:$0 sm:$0xff] }
 0x2fa   : > { %v2236_v62 = vadd.f32 %v2235_v54, %v2234_v10  ;;  %v4824_v10 = vld [vmem:[%s7809_s1 + $0xce] ss:$0 sm:$0xff]  ;;  %v4827_v54 = vld [vmem:[%s7809_s1 + $0xd1] ss:$0 sm:$0xff] }
 0x2fc   : > { %v2149_v55 = vpop.permute.xlu1 %2148  ;;  %2393 = vperm.xlu1 %4613, %v4808_v30   ;;  %v4821_v30 = vld [vmem:[%s7809_s1 + $0xcb] ss:$0 sm:$0xff] }
 0x2fd   : > { %v2182_v58 = vmul.f32 %v6101_v2, %v2149_v55  ;;  %v4812_v2 = vld [vmem:[%s7809_s1 + $0xc2] ss:$0 sm:$0xff]  ;;  %v4826_v55 = vld [vmem:[%s7809_s1 + $0xd3] ss:$0 sm:$0xff] }
 0x2fe   : > { %2385 = vperm.xlu2 %4614, %v4809_v5   ;;  %v4825_v5 = vld [vmem:[%s7809_s1 + $0xd5] ss:$0 sm:$0xff] }
 0x2ff   : > { %v2237_v41 = vsel %vm1177_vm0, %v2182_v58, 0.0  ;;  %v4828_v58 = vld [vmem:[%s7809_s1 + $0xd8] ss:$0 sm:$0xff] }
 0x300   : > { %v2238_v48 = vadd.f32 %v2237_v41, %v2236_v62  ;;  %v4829_v62 = vld [vmem:[%s7809_s1 + $0xd6] ss:$0 sm:$0xff]  ;;  %v4830_v41 = vld [vmem:[%s7809_s1 + $0xd4] ss:$0 sm:$0xff] }
 0x302   : > { %2261 = vrot.lane.b32.xlu0 %v2238_v48, %s5058_s14  ;;  %v4831_v48 = vld [vmem:[%s7809_s1 + $0xdb] ss:$0 sm:$0xff] }
 0x304   : > { %2405 = vperm.xlu1 %4613, %v4810_v56   ;;  %v4832_v56 = vld [vmem:[%s7809_s1 + $0xd9] ss:$0 sm:$0xff] }
 0x306   : > { %2397 = vperm.xlu2 %4614, %v4811_v6   ;;  %v4833_v6 = vld [vmem:[%s7809_s1 + $0xd7] ss:$0 sm:$0xff] }
 0x30a   : > { %2389 = vperm.xlu0 %4612, %v4812_v2  }
 0x30c   : > { %2417 = vperm.xlu1 %4613, %v4813_v1   ;;  %v4834_v1 = vld [vmem:[%s7809_s1 + $0xde] ss:$0 sm:$0xff] }
 0x30e   : > { %2409 = vperm.xlu2 %4614, %v4814_v60   ;;  %v4835_v60 = vld [vmem:[%s7809_s1 + $0xdc] ss:$0 sm:$0xff] }
 0x310   : > { %v6253_v2 = vpop.permute.xlu2 %2247 }
 0x311   : > { %7924 = vst [vmem:[#allocation105_spill] sm:$0xff] %v6253_v2  ;;  %v6430_v2 = vld [vmem:[%s5568_s13 + $0x1] sm:$0xff] }
 0x312   : > { %2401 = vperm.xlu0 %4612, %v4815_v49   ;;  %v4836_v49 = vld [vmem:[%s7809_s1 + $0xda] ss:$0 sm:$0xff]  ;;  %7952 = vst [vmem:[#allocation133_spill] sm:$0xff] %v6430_v2 }
 0x314   : > { %2429 = vperm.xlu1 %4613, %v4816_v13  }
 0x316   : > { %2421 = vperm.xlu2 %4614, %v4817_v45   ;;  %v4837_v45 = vld [vmem:[%s7809_s1 + $0xe1] ss:$0 sm:$0xff] }
 0x31a   : > { %2413 = vperm.xlu0 %4612, %v4818_v57   ;;  %v4838_v57 = vld [vmem:[%s7809_s1 + $0xdf] ss:$0 sm:$0xff] }
 0x31c   : > { %2441 = vperm.xlu1 %4613, %v4819_v38   ;;  %v4839_v38 = vld [vmem:[%s7809_s1 + $0xdd] ss:$0 sm:$0xff] }
 0x31e   : > { %2433 = vperm.xlu2 %4614, %v4820_v63  }
 0x322   : > { %2425 = vperm.xlu0 %4612, %v4821_v30   ;;  %v4840_v30 = vld [vmem:[%s7809_s1 + $0xe4] ss:$0 sm:$0xff] }
 0x324   : > { %2453 = vperm.xlu1 %4613, %v4822_v33   ;;  %v4841_v33 = vld [vmem:[%s7809_s1 + $0xe2] ss:$0 sm:$0xff] }
 0x326   : > { %2445 = vperm.xlu2 %4614, %v4823_v52  }
 0x32a   : > { %2437 = vperm.xlu0 %4612, %v4824_v10   ;;  %v4842_v10 = vld [vmem:[%s7809_s1 + $0xe0] ss:$0 sm:$0xff] }
 0x32c   : > { %2465 = vperm.xlu1 %4613, %v4825_v5  }
 0x32e   : > { %2457 = vperm.xlu2 %4614, %v4826_v55   ;;  %v4843_v55 = vld [vmem:[%s7809_s1 + $0xe7] ss:$0 sm:$0xff] }
 0x330   : > { %v6264_v13 = vpop.permute.xlu2 %2253 }
 0x331   : > { %7925 = vst [vmem:[#allocation106_spill] sm:$0xff] %v6264_v13 }
 0x332   : > { %2449 = vperm.xlu0 %4612, %v4827_v54   ;;  %v4844_v54 = vld [vmem:[%s7809_s1 + $0xe5] ss:$0 sm:$0xff] }
 0x334   : > { %2477 = vperm.xlu1 %4613, %v4828_v58  }
 0x336   : > { %2469 = vperm.xlu2 %4614, %v4829_v62   ;;  %v4845_v62 = vld [vmem:[%s7809_s1 + $0xe3] ss:$0 sm:$0xff] }
 0x33a   : > { %2461 = vperm.xlu0 %4612, %v4830_v41  }
 0x33c   : > { %2489 = vperm.xlu1 %4613, %v4831_v48   ;;  %v4846_v48 = vld [vmem:[%s7809_s1 + $0xea] ss:$0 sm:$0xff] }
 0x33e   : > { %2481 = vperm.xlu2 %4614, %v4832_v56   ;;  %v6283_v52 = vpop.permute.xlu1 %2251  ;;  %v4847_v56 = vld [vmem:[%s7809_s1 + $0xe8] ss:$0 sm:$0xff] }
 0x33f   : > { %7927 = vst [vmem:[#allocation108_spill] sm:$0xff] %v6283_v52 }
 0x342   : > { %2473 = vperm.xlu0 %4612, %v4833_v6   ;;  %v6309_v6 = vpop.permute.xlu0 %2249 }
 0x343   : > { %7931 = vst [vmem:[#allocation112_spill] sm:$0xff] %v6309_v6 }
 0x344   : > { %2501 = vperm.xlu1 %4613, %v4834_v1  }
 0x346   : > { %2493 = vperm.xlu2 %4614, %v4835_v60   ;;  %v4848_v60 = vld [vmem:[%s7809_s1 + $0xe6] ss:$0 sm:$0xff] }
 0x34a   : > { %2485 = vperm.xlu0 %4612, %v4836_v49  }
 0x34c   : > { %2710 = vperm.xlu1 %4613, %v4837_v45   ;;  %v4849_v45 = vld [vmem:[%s7809_s1 + $0xed] ss:$0 sm:$0xff] }
 0x34e   : > { %2505 = vperm.xlu2 %4614, %v4838_v57   ;;  %v4850_v57 = vld [vmem:[%s7809_s1 + $0xeb] ss:$0 sm:$0xff] }
 0x350   : > { %v6275_v63 = vpop.permute.xlu2 %2259 }
 0x351   : > { %7926 = vst [vmem:[#allocation107_spill] sm:$0xff] %v6275_v63 }
 0x352   : > { %2497 = vperm.xlu0 %4612, %v4839_v38  }
 0x354   : > { %2722 = vperm.xlu1 %4613, %v4840_v30   ;;  %v6324_v38 = vpop.permute.xlu0 %2255 }
 0x355   : > { %7934 = vst [vmem:[#allocation115_spill] sm:$0xff] %v6324_v38 }
 0x356   : > { %2714 = vperm.xlu2 %4614, %v4841_v33   ;;  %v4851_v33 = vld [vmem:[%s7809_s1 + $0xe9] ss:$0 sm:$0xff] }
 0x358   : > { %v6288_v5 = vpop.permute.xlu2 %2385 }
 0x359   : > { %7928 = vst [vmem:[#allocation109_spill] sm:$0xff] %v6288_v5 }
 0x35a   : > { %2706 = vperm.xlu0 %4612, %v4842_v10  }
 0x35c   : > { %2734 = vperm.xlu1 %4613, %v4843_v55   ;;  %v4852_v55 = vld [vmem:[%s7809_s1 + $0xf0] ss:$0 sm:$0xff] }
 0x35e   : > { %v6296_v58 = vpop.permute.xlu1 %2257  ;;  %2726 = vperm.xlu2 %4614, %v4844_v54   ;;  %v4853_v54 = vld [vmem:[%s7809_s1 + $0xee] ss:$0 sm:$0xff] }
 0x35f   : > { %7929 = vst [vmem:[#allocation110_spill] sm:$0xff] %v6296_v58 }
 0x360   : > { %v6301_v41 = vpop.permute.xlu2 %2397 }
 0x361   : > { %7930 = vst [vmem:[#allocation111_spill] sm:$0xff] %v6301_v41 }
 0x362   : > { %2718 = vperm.xlu0 %4612, %v4845_v62  }
 0x364   : > { %2746 = vperm.xlu1 %4613, %v4846_v48  }
 0x366   : > { %v6311_v1 = vpop.permute.xlu1 %2381  ;;  %2738 = vperm.xlu2 %4614, %v4847_v56   ;;  %v4854_v56 = vld [vmem:[%s7809_s1 + $0xec] ss:$0 sm:$0xff] }
 0x367   : > { %7932 = vst [vmem:[#allocation113_spill] sm:$0xff] %v6311_v1 }
 0x368   : > { %v6316_v49 = vpop.permute.xlu2 %2409 }
 0x369   : > { %7933 = vst [vmem:[#allocation114_spill] sm:$0xff] %v6316_v49 }
 0x36a   : > { %2730 = vperm.xlu0 %4612, %v4848_v60  }
 0x36c   : > { %2758 = vperm.xlu1 %4613, %v4849_v45   ;;  %v4855_v45 = vld [vmem:[%s7809_s1 + $0xf3] ss:$0 sm:$0xff] }
 0x36e   : > { %v6326_v30 = vpop.permute.xlu1 %2393  ;;  %2750 = vperm.xlu2 %4614, %v4850_v57   ;;  %v4856_v57 = vld [vmem:[%s7809_s1 + $0xf1] ss:$0 sm:$0xff] }
 0x36f   : > { %7935 = vst [vmem:[#allocation116_spill] sm:$0xff] %v6326_v30 }
 0x370   : > { %v6331_v10 = vpop.permute.xlu2 %2421 }
 0x371   : > { %7936 = vst [vmem:[#allocation117_spill] sm:$0xff] %v6331_v10 }
 0x372   : > { %2742 = vperm.xlu0 %4612, %v4851_v33  }
 0x374   : > { %2770 = vperm.xlu1 %4613, %v4852_v55   ;;  %v6339_v62 = vpop.permute.xlu0 %2261 }
 0x375   : > { %7937 = vst [vmem:[#allocation118_spill] sm:$0xff] %v6339_v62 }
 0x376   : > { %v6341_v48 = vpop.permute.xlu1 %2405  ;;  %2762 = vperm.xlu2 %4614, %v4853_v54   ;;  %v4857_v54 = vld [vmem:[%s7809_s1 + $0xef] ss:$0 sm:$0xff] }
 0x377   : > { %7938 = vst [vmem:[#allocation119_spill] sm:$0xff] %v6341_v48 }
 0x378   : > { %v6346_v60 = vpop.permute.xlu2 %2433 }
 0x379   : > { %7939 = vst [vmem:[#allocation120_spill] sm:$0xff] %v6346_v60 }
 0x37a   : > { %2754 = vperm.xlu0 %4612, %v4854_v56   ;;  %v4858_v56 = vld [vmem:[%s7809_s1 + $0xf6] ss:$0 sm:$0xff] }
 0x37c   : > { %2782 = vperm.xlu1 %4613, %v4855_v45   ;;  %v6354_v33 = vpop.permute.xlu0 %2389  ;;  %v4859_v45 = vld [vmem:[%s7809_s1 + $0xf4] ss:$0 sm:$0xff] }
 0x37d   : > { %7940 = vst [vmem:[#allocation121_spill] sm:$0xff] %v6354_v33 }
 0x37e   : > { %v6356_v55 = vpop.permute.xlu1 %2417  ;;  %2774 = vperm.xlu2 %4614, %v4856_v57   ;;  %v4860_v57 = vld [vmem:[%s7809_s1 + $0xf2] ss:$0 sm:$0xff] }
 0x37f   : > { %7941 = vst [vmem:[#allocation122_spill] sm:$0xff] %v6356_v55 }
 0x380   : > { %v6361_v13 = vpop.permute.xlu2 %2445 }
 0x381   : > { %7942 = vst [vmem:[#allocation123_spill] sm:$0xff] %v6361_v13  ;;  %v6527_v13 = vld [vmem:[%s5568_s13 + $0x61] sm:$0xff] }
 0x382   : > { %2766 = vperm.xlu0 %4612, %v4857_v54   ;;  %v4861_v54 = vld [vmem:[%s7809_s1 + $0xf9] ss:$0 sm:$0xff] }
 0x384   : > { %2794 = vperm.xlu1 %4613, %v4858_v56   ;;  %v6369_v6 = vpop.permute.xlu0 %2401  ;;  %v4862_v56 = vld [vmem:[%s7809_s1 + $0xf7] ss:$0 sm:$0xff] }
 0x385   : > { %7943 = vst [vmem:[#allocation124_spill] sm:$0xff] %v6369_v6  ;;  %v4870_v6 = vld [vmem:[%s7809_s1 + $0x102] ss:$0 sm:$0xff] }
 0x386   : > { %v6371_v52 = vpop.permute.xlu1 %2429  ;;  %2786 = vperm.xlu2 %4614, %v4859_v45   ;;  %v4863_v45 = vld [vmem:[%s7809_s1 + $0xf5] ss:$0 sm:$0xff] }
 0x387   : > { %7944 = vst [vmem:[#allocation125_spill] sm:$0xff] %v6371_v52  ;;  %v4864_v52 = vld [vmem:[%s7809_s1 + $0xfc] ss:$0 sm:$0xff] }
 0x388   : > { %v6376_v49 = vpop.permute.xlu2 %2457 }
 0x389   : > { %7945 = vst [vmem:[#allocation126_spill] sm:$0xff] %v6376_v49 }
 0x38a   : > { %2778 = vperm.xlu0 %4612, %v4860_v57   ;;  %v4865_v57 = vld [vmem:[%s7809_s1 + $0xfa] ss:$0 sm:$0xff] }
 0x38c   : > { %2806 = vperm.xlu1 %4613, %v4861_v54   ;;  %v6384_v60 = vpop.permute.xlu0 %2413 }
 0x38d   : > { %7946 = vst [vmem:[#allocation127_spill] sm:$0xff] %v6384_v60 }
 0x38e   : > { %v6386_v48 = vpop.permute.xlu1 %2441  ;;  %2798 = vperm.xlu2 %4614, %v4862_v56   ;;  %v4866_v56 = vld [vmem:[%s7809_s1 + $0xf8] ss:$0 sm:$0xff] }
 0x38f   : > { %7947 = vst [vmem:[#allocation128_spill] sm:$0xff] %v6386_v48 }
 0x390   : > { %v2470_v10 = vpop.permute.xlu2 %2469 }
 0x392   : > { %2790 = vperm.xlu0 %4612, %v4863_v45   ;;  %v4867_v45 = vld [vmem:[%s7809_s1 + $0xff] ss:$0 sm:$0xff] }
 0x394   : > { %2818 = vperm.xlu1 %4613, %v4864_v52   ;;  %v6397_v54 = vpop.permute.xlu0 %2425  ;;  %v4868_v52 = vld [vmem:[%s7809_s1 + $0xfd] ss:$0 sm:$0xff] }
 0x395   : > { %7948 = vst [vmem:[#allocation129_spill] sm:$0xff] %v6397_v54 }
 0x396   : > { %v6399_v55 = vpop.permute.xlu1 %2453  ;;  %2810 = vperm.xlu2 %4614, %v4865_v57   ;;  %v4869_v57 = vld [vmem:[%s7809_s1 + $0xfb] ss:$0 sm:$0xff] }
 0x397   : > { %7949 = vst [vmem:[#allocation130_spill] sm:$0xff] %v6399_v55  ;;  %v6467_v55 = vld [vmem:[%s5568_s13 + $0x31] sm:$0xff] }
 0x398   : > { %v2482_v48 = vpop.permute.xlu2 %2481  ;;  %7954 = vst [vmem:[#allocation135_spill] sm:$0xff] %v6467_v55 }
 0x39a   : > { %2802 = vperm.xlu0 %4612, %v4866_v56   ;;  %v4871_v56 = vld [vmem:[%s7809_s1 + $0x100] ss:$0 sm:$0xff] }
 0x39c   : > { %2830 = vperm.xlu1 %4613, %v4867_v45   ;;  %v6410_v54 = vpop.permute.xlu0 %2437  ;;  %v6424_v45 = vld [vmem:[%s5568_s13 + $0x11] sm:$0xff] }
 0x39d   : > { %7950 = vst [vmem:[#allocation131_spill] sm:$0xff] %v6410_v54 }
 0x39e   : > { %v2466_v41 = vpop.permute.xlu1 %2465  ;;  %2822 = vperm.xlu2 %4614, %v4868_v52   ;;  %v2533_v52 = vmul.f32 %v2482_v48, %v6424_v45 }
 0x39f   : > { %v2529_v63 = vmul.f32 %v2466_v41, %v6424_v45 }
 0x3a0   : > { %v6415_v60 = vpop.permute.xlu2 %2493  ;;  %v2583_v1 = vsel %vm537_vm1, %v2533_v52, 0.0 }
 0x3a2   : > { %2814 = vperm.xlu0 %4612, %v4869_v57   ;;  %v4872_v57 = vld [vmem:[%s7809_s1 + $0xfe] ss:$0 sm:$0xff] }
 0x3a4   : > { %3035 = vperm.xlu1 %4613, %v4870_v6   ;;  %v6426_v54 = vpop.permute.xlu0 %2449  ;;  %v4873_v6 = vld [vmem:[%s7809_s1 + $0x105] ss:$0 sm:$0xff] }
 0x3a5   : > { %7951 = vst [vmem:[#allocation132_spill] sm:$0xff] %v6426_v54 }
 0x3a6   : > { %v2478_v30 = vpop.permute.xlu1 %2477  ;;  %3027 = vperm.xlu2 %4614, %v4871_v56   ;;  %v4874_v56 = vld [vmem:[%s7809_s1 + $0x103] ss:$0 sm:$0xff] }
 0x3a7   : > { %v2532_v33 = vmul.f32 %v2478_v30, %v6430_v2  ;;  %v6448_v30 = vld [vmem:[%s5568_s13 + $0x21] sm:$0xff] }
 0x3a8   : > { %v6436_v5 = vpop.permute.xlu2 %2505  ;;  %7953 = vst [vmem:[#allocation134_spill] sm:$0xff] %v6448_v30  ;;  %v2530_v38 = vmul.f32 %v2470_v10, %v6448_v30 }
 0x3a9   : > { %v2582_v48 = vsel %vm537_vm1, %v2532_v33, 0.0  ;;  %v2576_v33 = vsel %vm537_vm1, %v2529_v63, 0.0 }
 0x3aa   : > { %v2584_v62 = vadd.f32 %v2583_v1, %v2582_v48  ;;  %2826 = vperm.xlu0 %4612, %v4872_v57   ;;  %v4875_v1 = vld [vmem:[%s7809_s1 + $0x101] ss:$0 sm:$0xff]  ;;  %v2578_v10 = vsel %vm537_vm1, %v2530_v38, 0.0 }
 0x3ac   : > { %3047 = vperm.xlu1 %4613, %v4873_v6   ;;  %v2462_v58 = vpop.permute.xlu0 %2461  ;;  %v4876_v6 = vld [vmem:[%s7809_s1 + $0x108] ss:$0 sm:$0xff] }
 0x3ad   : > { %v2528_v49 = vmul.f32 %v2462_v58, %v6430_v2 }
 0x3ae   : > { %v2490_v52 = vpop.permute.xlu1 %2489  ;;  %3039 = vperm.xlu2 %4614, %v4874_v56   ;;  %v4877_v56 = vld [vmem:[%s7809_s1 + $0x106] ss:$0 sm:$0xff] }
 0x3af   : > { %v2575_v57 = vsel %vm537_vm1, %v2528_v49, 0.0 }
 0x3b0   : > { %v2577_v41 = vadd.f32 %v2576_v33, %v2575_v57  ;;  %v6457_v48 = vpop.permute.xlu2 %2714  ;;  %v4878_v57 = vld [vmem:[%s7809_s1 + $0x104] ss:$0 sm:$0xff] }
 0x3b2   : > { %3031 = vperm.xlu0 %4612, %v4875_v1   ;;  %v2579_v58 = vadd.f32 %v2578_v10, %v2577_v41  ;;  %v4879_v10 = vld [vmem:[%s7809_s1 + $0x10c] ss:$0 sm:$0xff] }
 0x3b4   : > { %3059 = vperm.xlu1 %4613, %v4876_v6   ;;  %v2474_v63 = vpop.permute.xlu0 %2473  ;;  %v4880_v6 = vld [vmem:[%s7809_s1 + $0x109] ss:$0 sm:$0xff] }
 0x3b5   : > { %v2531_v49 = vmul.f32 %v2474_v63, %v6467_v55  ;;  %v2535_v63 = vmul.f32 %v2490_v52, %v6467_v55 }
 0x3b6   : > { %v2502_v33 = vpop.permute.xlu1 %2501  ;;  %3051 = vperm.xlu2 %4614, %v4877_v56  }
 0x3b7   : > { %v2580_v38 = vsel %vm537_vm1, %v2531_v49, 0.0  ;;  %v2587_v52 = vsel %vm537_vm1, %v2535_v63, 0.0 }
 0x3b8   : > { %v6474_v1 = vadd.f32 %v2580_v38, %v2579_v58  ;;  %v2727_v41 = vpop.permute.xlu2 %2726  ;;  %v4881_v58 = vld [vmem:[%s7809_s1 + $0x107] ss:$0 sm:$0xff] }
 0x3b9   : > { %v2838_v37 = vmul.f32 %v6495_v17, %v2727_v41 }
 0x3ba   : > { %7955 = vst [vmem:[#allocation136_spill] sm:$0xff] %v6474_v1  ;;  %3043 = vperm.xlu0 %4612, %v4878_v57  }
 0x3bc   : > { %3075 = vperm.xlu1 %4613, %v4879_v10   ;;  %v2486_v56 = vpop.permute.xlu0 %2485  ;;  %v4882_v10 = vld [vmem:[%s7809_s1 + $0x10e] ss:$0 sm:$0xff] }
 0x3bd   : > { %v2534_v27 = vmul.f32 %v2486_v56, %v6448_v30 }
 0x3be   : > { %v2711_v49 = vpop.permute.xlu1 %2710  ;;  %3063 = vperm.xlu2 %4614, %v4880_v6   ;;  %v4883_v6 = vld [vmem:[%s7809_s1 + $0x10d] ss:$0 sm:$0xff] }
 0x3bf   : > { %v2585_v38 = vsel %vm537_vm1, %v2534_v27, 0.0  ;;  %v2536_v27 = vmul.f32 %v6415_v60, %v6430_v2  ;;  %v2539_v60 = vmul.f32 %v6436_v5, %v6467_v55 }
 0x3c0   : > { %v2586_v57 = vadd.f32 %v2585_v38, %v2584_v62  ;;  %v6488_v1 = vpop.permute.xlu2 %2738  ;;  %v2538_v38 = vmul.f32 %v2502_v33, %v6448_v30  ;;  %v2873_v30 = vsel %vm537_vm1, %v2838_v37, 0.0 }
 0x3c2   : > { %v6497_v56 = vadd.f32 %v2587_v52, %v2586_v57  ;;  %3055 = vperm.xlu0 %4612, %v4881_v58   ;;  %v4884_v58 = vld [vmem:[%s7809_s1 + $0x10a] ss:$0 sm:$0xff]  ;;  %v2589_v52 = vsel %vm537_vm1, %v2536_v27, 0.0 }
 0x3c4   : > { %7956 = vst [vmem:[#allocation137_spill] sm:$0xff] %v6497_v56  ;;  %3083 = vperm.xlu1 %4613, %v4882_v10   ;;  %v2498_v62 = vpop.permute.xlu0 %2497  ;;  %v2592_v56 = vsel %vm537_vm1, %v2538_v38, 0.0 }
 0x3c5   : > { %v2537_v63 = vmul.f32 %v2498_v62, %v6424_v45 }
 0x3c6   : > { %v2723_v57 = vpop.permute.xlu1 %2722  ;;  %3079 = vperm.xlu2 %4614, %v4883_v6   ;;  %v4885_v6 = vld [vmem:[%s7809_s1 + $0x10f] ss:$0 sm:$0xff] }
 0x3c7   : > { %v2590_v33 = vsel %vm537_vm1, %v2537_v63, 0.0  ;;  %v2837_v41 = vmul.f32 %v6508_v36, %v2723_v57  ;;  %v4886_v57 = vld [vmem:[%s7809_s1 + $0x110] ss:$0 sm:$0xff] }
 0x3c8   : > { %v2591_v10 = vadd.f32 %v2590_v33, %v2589_v52  ;;  %v6518_v62 = vpop.permute.xlu2 %2750  ;;  %v2594_v52 = vsel %vm537_vm1, %v2539_v60, 0.0  ;;  %v2834_v33 = vmul.f32 %v6495_v17, %v2711_v49  ;;  %v4887_v49 = vld [vmem:[%s7809_s1 + $0x10b] ss:$0 sm:$0xff]  ;;  %v4966_v60 = vld [vmem:[%s5568_s13] sm:$0xff] }
 0x3c9   : > { %v2872_v27 = vsel %vm537_vm1, %v2837_v41, 0.0  ;;  %v4965_v41 = vld [vmem:[%s5568_s13 + $0x10] sm:$0xff]  ;;  %v533_v54 = vmul.f32 %v4966_v60, %v5427_v42 }
 0x3ca   : > { %v2593_v5 = vadd.f32 %v2592_v56, %v2591_v10  ;;  %v6529_v63 = vadd.f32 %v2873_v30, %v2872_v27  ;;  %3067 = vperm.xlu0 %4612, %v4884_v58   ;;  %v526_v56 = vmul.f32 %v4965_v41, %v5399_v29  ;;  %v2835_v30 = vmul.f32 %v6527_v13, %v6457_v48 }
 0x3cb   : > { %v521_v27 = vmul.f32 %v4966_v60, %v5367_v16  ;;  %v522_v48 = vmul.f32 %v4965_v41, %v5320_v61 }
 0x3cc   : > { %3087 = vperm.xlu1 %4613, %v4885_v6   ;;  %v2707_v37 = vpop.permute.xlu0 %2706  ;;  %v6536_v38 = vadd.f32 %v2594_v52, %v2593_v5  ;;  %v525_v6 = vmul.f32 %v4966_v60, %v5335_v3  ;;  %v2866_v5 = vsel %vm537_vm1, %v2834_v33, 0.0  ;;  %v6555_v52 = vld [vmem:[%s5568_s13 + $0x20] sm:$0xff]  ;;  %v4888_v3 = vld [vmem:[%s7809_s1 + $0x115] ss:$0 sm:$0xff]  ;;  %v574_v16 = vsel %vm537_vm1, %v526_v56, 0.0 }
 0x3cd   : > { %v2833_v58 = vmul.f32 %v6508_v36, %v2707_v37  ;;  %v530_v33 = vmul.f32 %v4965_v41, %v5412_v34  ;;  %v2868_v61 = vsel %vm537_vm1, %v2835_v30, 0.0  ;;  %v527_v56 = vmul.f32 %v6555_v52, %v5397_v28 }
 0x3ce   : > { %7957 = vst [vmem:[#allocation138_spill] sm:$0xff] %v6536_v38  ;;  %v6543_v10 = vpop.permute.xlu1 %2734  ;;  %3091 = vperm.xlu2 %4614, %v4886_v57   ;;  %v523_v57 = vmul.f32 %v6555_v52, %v5384_v23  ;;  %v4889_v23 = vld [vmem:[%s7809_s1 + $0x112] ss:$0 sm:$0xff]  ;;  %v567_v34 = vsel %vm537_vm1, %v522_v48, 0.0  ;;  %v531_v28 = vmul.f32 %v6555_v52, %v5365_v15 }
 0x3cf   : > { %v2865_v29 = vsel %vm537_vm1, %v2833_v58, 0.0  ;;  %v529_v58 = vmul.f32 %v4966_v60, %v5414_v35  ;;  %v6577_v35 = vld [vmem:[%s5568_s13 + $0x71] sm:$0xff] }
 0x3d0   : > { %v2867_v37 = vadd.f32 %v2866_v5, %v2865_v29  ;;  %v6559_v38 = vpop.permute.xlu2 %2762  ;;  %v573_v5 = vsel %vm537_vm1, %v525_v6, 0.0  ;;  %v566_v29 = vsel %vm537_vm1, %v521_v27, 0.0  ;;  %v528_v27 = vmul.f32 %v4968_v26, %v5350_v9 }
 0x3d1   : > { %v575_v2 = vadd.f32 %v574_v16, %v573_v5  ;;  %v568_v48 = vadd.f32 %v567_v34, %v566_v29 }
 0x3d2   : > { %3071 = vperm.xlu0 %4612, %v4887_v49   ;;  %v2869_v55 = vadd.f32 %v2868_v61, %v2867_v37  ;;  %v569_v49 = vsel %vm537_vm1, %v523_v57, 0.0  ;;  %v581_v37 = vsel %vm537_vm1, %v530_v33, 0.0  ;;  %v580_v61 = vsel %vm537_vm1, %v529_v58, 0.0  ;;  %v4890_v57 = vld [vmem:[%s7809_s1 + $0x111] ss:$0 sm:$0xff] }
 0x3d3   : > { %v524_v33 = vmul.f32 %v4968_v26, %v5382_v22  ;;  %v576_v58 = vsel %vm537_vm1, %v527_v56, 0.0  ;;  %v570_v5 = vadd.f32 %v569_v49, %v568_v48  ;;  %v582_v29 = vadd.f32 %v581_v37, %v580_v61  ;;  %v6610_v56 = vld [vmem:[%s5568_s13 + $0x50] sm:$0xff]  ;;  %v6627_v48 = vld [vmem:[%s5568_s13 + $0x60] sm:$0xff] }
 0x3d4   : > { %3111 = vperm.xlu1 %4613, %v4888_v3   ;;  %v2719_v30 = vpop.permute.xlu0 %2718  ;;  %v534_v3 = vmul.f32 %v4965_v41, %v5380_v21  ;;  %v577_v15 = vadd.f32 %v576_v58, %v575_v2  ;;  %v532_v21 = vmul.f32 %v4968_v26, %v5429_v43  ;;  %v578_v22 = vsel %vm537_vm1, %v528_v27, 0.0  ;;  %v6607_v41 = vld [vmem:[%s5568_s13 + $0x40] sm:$0xff]  ;;  %v4892_v2 = vld [vmem:[%s7809_s1 + $0x113] ss:$0 sm:$0xff] }
 0x3d5   : > { %v2836_v6 = vmul.f32 %v6577_v35, %v2719_v30  ;;  %v571_v49 = vsel %vm537_vm1, %v524_v33, 0.0  ;;  %v841_v42 = vmul.f32 %v6610_v56, %v5530_v7  ;;  %v840_v43 = vmul.f32 %v6607_v41, %v5534_v18 }
 0x3d6   : > { %v6587_v16 = vpop.permute.xlu1 %2746  ;;  %3099 = vperm.xlu2 %4614, %v4889_v23   ;;  %v4891_v23 = vld [vmem:[%s7809_s1 + $0x118] ss:$0 sm:$0xff]  ;;  %v588_v60 = vsel %vm537_vm1, %v534_v3, 0.0  ;;  %v6622_v61 = vadd.f32 %v578_v22, %v577_v15  ;;  %v2840_v7 = vmul.f32 %v6577_v35, %v6543_v10  ;;  %v535_v3 = vmul.f32 %v6555_v52, %v5444_v53  ;;  %v4893_v10 = vld [vmem:[%s7809_s1 + $0x114] ss:$0 sm:$0xff] }
 0x3d7   : > { %v2870_v9 = vsel %vm537_vm1, %v2836_v6, 0.0  ;;  %v6624_v6 = vadd.f32 %v571_v49, %v570_v5  ;;  %v842_v33 = vmul.f32 %v6627_v48, %v5485_v20  ;;  %v845_v58 = vmul.f32 %v6610_v56, %v5500_v32  ;;  %v6648_v5 = vld [vmem:[%s5568_s13 + $0x70] sm:$0xff]  ;;  %v4894_v22 = vld [vmem:[%s7809_s1 + $0x11a] ss:$0 sm:$0xff]  ;;  %v4895_v49 = vld [vmem:[%s7809_s1 + $0x119] ss:$0 sm:$0xff] }
 0x3d8   : > { %v6596_v34 = vadd.f32 %v2870_v9, %v2869_v55  ;;  %v6598_v30 = vpop.permute.xlu2 %2774  ;;  %v583_v55 = vsel %vm537_vm1, %v531_v28, 0.0  ;;  %v587_v28 = vsel %vm537_vm1, %v533_v54, 0.0  ;;  %v848_v9 = vmul.f32 %v6607_v41, %v5515_v47 }
 0x3d9   : > { %v584_v37 = vadd.f32 %v583_v55, %v582_v29  ;;  %v885_v53 = vsel %vm537_vm1, %v841_v42, 0.0  ;;  %v884_v52 = vsel %vm537_vm1, %v840_v43, 0.0  ;;  %v844_v20 = vmul.f32 %v6607_v41, %v5545_v31 }
 0x3da   : > { %3095 = vperm.xlu0 %4612, %v4890_v57   ;;  %v585_v57 = vsel %vm537_vm1, %v532_v21, 0.0  ;;  %v851_v47 = vmul.f32 %v6648_v5, %v5532_v14  ;;  %v843_v15 = vmul.f32 %v6648_v5, %v5547_v39  ;;  %v846_v29 = vmul.f32 %v6627_v48, %v5553_v59 }
 0x3db   : > { %v6667_v31 = vadd.f32 %v588_v60, %v587_v28  ;;  %v849_v14 = vmul.f32 %v6610_v56, %v5557_v8  ;;  %v2877_v39 = vsel %vm537_vm1, %v2840_v7, 0.0  ;;  %v6675_v55 = vmul.f32 %v4968_v26, %v5442_v50 }
 0x3dc   : > { %3123 = vperm.xlu1 %4613, %v4891_v23   ;;  %v2731_v27 = vpop.permute.xlu0 %2730  ;;  %v6678_v59 = vsel %vm537_vm1, %v535_v3, 0.0  ;;  %v887_v43 = vsel %vm537_vm1, %v842_v33, 0.0  ;;  %v892_v8 = vsel %vm537_vm1, %v845_v58, 0.0  ;;  %v891_v60 = vsel %vm537_vm1, %v844_v20, 0.0 }
 0x3dd   : > { %v2839_v18 = vmul.f32 %v6527_v13, %v2731_v27  ;;  %v2841_v50 = vmul.f32 %v6508_v36, %v6488_v1  ;;  %v898_v26 = vsel %vm537_vm1, %v848_v9, 0.0  ;;  %v889_v27 = vsel %vm537_vm1, %v843_v15, 0.0 }
 0x3de   : > { %v6642_v54 = vpop.permute.xlu1 %2758  ;;  %3103 = vperm.xlu2 %4614, %v4892_v2   ;;  %v6669_v2 = vadd.f32 %v585_v57, %v584_v37  ;;  %v6692_v37 = vsel %vm537_vm1, %v851_v47, 0.0  ;;  %v894_v28 = vsel %vm537_vm1, %v846_v29, 0.0  ;;  %v899_v7 = vsel %vm537_vm1, %v849_v14, 0.0 }
 0x3df   : > { %v2875_v32 = vsel %vm537_vm1, %v2839_v18, 0.0  ;;  %v2843_v18 = vmul.f32 %v6527_v13, %v6587_v16  ;;  %v2850_v3 = vmul.f32 %v6495_v17, %v6598_v30  ;;  %v893_v33 = vadd.f32 %v892_v8, %v891_v60 }
 0x3e0   : > { %v2876_v23 = vadd.f32 %v2875_v32, %v6529_v63  ;;  %v6662_v21 = vpop.permute.xlu2 %2786  ;;  %v886_v63 = vadd.f32 %v885_v53, %v884_v52  ;;  %v847_v9 = vmul.f32 %v6648_v5, %v5551_v46  ;;  %v4896_v52 = vld [vmem:[%s7809_s1 + $0x116] ss:$0 sm:$0xff]  ;;  %v2879_v16 = vsel %vm537_vm1, %v2841_v50, 0.0 }
 0x3e1   : > { %v2844_v30 = vmul.f32 %v6577_v35, %v6518_v62  ;;  %v895_v47 = vadd.f32 %v894_v28, %v893_v33  ;;  %v900_v15 = vadd.f32 %v899_v7, %v898_v26  ;;  %v2882_v14 = vsel %vm537_vm1, %v2843_v18, 0.0 }
 0x3e2   : > { %3107 = vperm.xlu0 %4612, %v4893_v10   ;;  %v6683_v42 = vadd.f32 %v2877_v39, %v2876_v23  ;;  %v888_v58 = vadd.f32 %v887_v43, %v886_v63  ;;  %v850_v10 = vmul.f32 %v6627_v48, %v5555_v4  ;;  %v4897_v23 = vld [vmem:[%s7809_s1 + $0x11b] ss:$0 sm:$0xff]  ;;  %v2894_v62 = vsel %vm537_vm1, %v2850_v3, 0.0 }
 0x3e3   : > { %v6726_v63 = vmul.f32 %v6627_v48, %v5549_v44  ;;  %v2884_v44 = vsel %vm537_vm1, %v2844_v30, 0.0  ;;  %v2846_v26 = vmul.f32 %v6495_v17, %v6642_v54  ;;  %v2847_v54 = vmul.f32 %v6527_v13, %v6559_v38 }
 0x3e4   : > { %7958 = vst [vmem:[#allocation139_spill] sm:$0xff] %v6683_v42  ;;  %3131 = vperm.xlu1 %4613, %v4894_v22   ;;  %v2743_v57 = vpop.permute.xlu0 %2742  ;;  %v890_v46 = vadd.f32 %v889_v27, %v888_v58  ;;  %v1521_v22 = vmul.f32 %v6096_v25, %v5910_v12  ;;  %v4898_v12 = vld [vmem:[%s7809_s1 + $0x11c] ss:$0 sm:$0xff]  ;;  %v896_v25 = vsel %vm537_vm1, %v847_v9, 0.0  ;;  %v901_v50 = vsel %vm537_vm1, %v850_v10, 0.0  ;;  %v6761_v9 = vld [vmem:[%s5568_s13 + $0xa0] sm:$0xff] }
 0x3e5   : > { %v2842_v1 = vmul.f32 %v6495_v17, %v2743_v57  ;;  %v897_v27 = vadd.f32 %v896_v25, %v895_v47  ;;  %v6745_v57 = vld [vmem:[%s5568_s13 + $0xd0] sm:$0xff]  ;;  %v1522_v10 = vmul.f32 %v6761_v9, %v5843_v40  ;;  %v7960_v40 = vld [vmem:[#allocation132_spill] sm:$0xff]  ;;  %v7976_v42 = vld [vmem:[#allocation73_spill] sm:$0xff] }
 0x3e6   : > { %v2771_v53 = vpop.permute.xlu1 %2770  ;;  %3127 = vperm.xlu2 %4614, %v4895_v49   ;;  %v6729_v49 = vld [vmem:[%s5568_s13 + $0x80] sm:$0xff]  ;;  %v916_v28 = vadd.f32 %v890_v46, %v6624_v6  ;;  %v1565_v3 = vsel %vm537_vm1, %v1521_v22, 0.0  ;;  %v1847_v33 = vmul.f32 %v6745_v57, %v6053_v24  ;;  %v853_v6 = vmul.f32 %v6610_v56, %v5560_v19  ;;  %v4899_v19 = vld [vmem:[%s7809_s1 + $0x117] ss:$0 sm:$0xff] }
 0x3e7   : > { %v2880_v20 = vsel %vm537_vm1, %v2842_v1, 0.0  ;;  %v2849_v32 = vmul.f32 %v6508_v36, %v2771_v53  ;;  %v1520_v43 = vmul.f32 %v6729_v49, %v5890_v11  ;;  %v902_v11 = vadd.f32 %v901_v50, %v900_v15  ;;  %v6751_v1 = vld [vmem:[%s5568_s13 + $0xc0] sm:$0xff] }
 0x3e8   : > { %v2881_v4 = vadd.f32 %v2880_v20, %v2879_v16  ;;  %v6714_v29 = vpop.permute.xlu2 %2798  ;;  %v1846_v24 = vmul.f32 %v6751_v1, %v5998_v0  ;;  %v2525_v30 = vmul.f32 %v7960_v40, %v6424_v45  ;;  %v2887_v20 = vsel %vm537_vm1, %v2846_v26, 0.0  ;;  %v7962_v22 = vld [vmem:[#allocation133_spill] sm:$0xff]  ;;  %v7965_v26 = vld [vmem:[#allocation70_spill] sm:$0xff] }
 0x3e9   : > { %v2893_v39 = vsel %vm537_vm1, %v2849_v32, 0.0  ;;  %v1564_v53 = vsel %vm537_vm1, %v1520_v43, 0.0  ;;  %v6783_v0 = vadd.f32 %v897_v27, %v6622_v61  ;;  %v904_v46 = vadd.f32 %v6692_v37, %v902_v11  ;;  %v7964_v37 = vld [vmem:[#allocation67_spill] sm:$0xff] }
 0x3ea   : > { %v2883_v8 = vadd.f32 %v2882_v14, %v2881_v4  ;;  %v6733_v60 = vadd.f32 %v2894_v62, %v2893_v39  ;;  %3115 = vperm.xlu0 %4612, %v4896_v52   ;;  %v6767_v52 = vld [vmem:[%s5568_s13 + $0xe0] sm:$0xff]  ;;  %v1566_v47 = vadd.f32 %v1565_v3, %v1564_v53  ;;  %v7963_v14 = vld [vmem:[#allocation123_spill] sm:$0xff]  ;;  %v2889_v39 = vsel %vm537_vm1, %v2847_v54, 0.0 }
 0x3eb   : > { %v1848_v38 = vmul.f32 %v6767_v52, %v6067_v51  ;;  %v7961_v4 = vld [vmem:[#allocation37_spill] sm:$0xff]  ;;  %v1891_v51 = vsel %vm537_vm1, %v1847_v33, 0.0  ;;  %v2524_v62 = vmul.f32 %v7963_v14, %v7962_v22  ;;  %v906_v43 = vsel %vm537_vm1, %v853_v6, 0.0  ;;  %v6807_v27 = vld [vmem:[%s5568_s13 + $0xf0] sm:$0xff] }
 0x3ec   : > { %3135 = vperm.xlu1 %4613, %v4897_v23   ;;  %v2755_v7 = vpop.permute.xlu0 %2754  ;;  %v6747_v18 = vadd.f32 %v2884_v44, %v2883_v8  ;;  %v852_v23 = vmul.f32 %v6607_v41, %v7961_v4  ;;  %v1567_v61 = vsel %vm537_vm1, %v1522_v10, 0.0  ;;  %v6795_v8 = vld [vmem:[%s5568_s13 + $0xb0] sm:$0xff]  ;;  %v4900_v44 = vld [vmem:[%s7809_s1 + $0x11e] ss:$0 sm:$0xff]  ;;  %v1524_v11 = vmul.f32 %v6729_v49, %v7965_v26  ;;  %v7969_v4 = vld [vmem:[#allocation134_spill] sm:$0xff] }
 0x3ed   : > { %v2845_v58 = vmul.f32 %v6508_v36, %v2755_v7  ;;  %v1890_v7 = vsel %vm537_vm1, %v1846_v24, 0.0  ;;  %v1893_v3 = vsel %vm537_vm1, %v1848_v38, 0.0  ;;  %v2569_v33 = vsel %vm537_vm1, %v2525_v30, 0.0  ;;  %v6813_v54 = vld [vmem:[%s5568_s13 + $0x90] sm:$0xff]  ;;  %v7970_v38 = vld [vmem:[#allocation130_spill] sm:$0xff] }
 0x3ee   : > { %7959 = vst [vmem:[#allocation140_spill] sm:$0xff] %v6747_v18  ;;  %v6771_v16 = vpop.permute.xlu1 %2782  ;;  %3139 = vperm.xlu2 %4614, %v4898_v12   ;;  %v1523_v12 = vmul.f32 %v6795_v8, %v7964_v37  ;;  %v1568_v10 = vadd.f32 %v1567_v61, %v1566_v47  ;;  %v7967_v53 = vld [vmem:[#allocation87_spill] sm:$0xff]  ;;  %v1892_v40 = vadd.f32 %v1891_v51, %v1890_v7  ;;  %v2568_v24 = vsel %vm537_vm1, %v2524_v62, 0.0  ;;  %v7971_v37 = vld [vmem:[#allocation49_spill] sm:$0xff]  ;;  %v4901_v51 = vld [vmem:[%s7809_s1 + $0x11d] ss:$0 sm:$0xff] }
 0x3ef   : > { %v2886_v32 = vsel %vm537_vm1, %v2845_v58, 0.0  ;;  %v7966_v58 = vld [vmem:[#allocation58_spill] sm:$0xff]  ;;  %v2526_v14 = vmul.f32 %v7970_v38, %v7969_v4  ;;  %v1270_v26 = vadd.f32 %v7971_v37, %v916_v28  ;;  %v2570_v61 = vadd.f32 %v2569_v33, %v2568_v24 }
 0x3f0   : > { %v2888_v15 = vadd.f32 %v2887_v20, %v2886_v32  ;;  %v6799_v25 = vpop.permute.xlu2 %2810  ;;  %v1525_v6 = vmul.f32 %v6813_v54, %v7966_v58  ;;  %v7968_v32 = vld [vmem:[#allocation98_spill] sm:$0xff]  ;;  %v1894_v47 = vadd.f32 %v1893_v3, %v1892_v40  ;;  %v1569_v62 = vsel %vm537_vm1, %v1523_v12, 0.0  ;;  %v7973_v3 = vld [vmem:[#allocation69_spill] sm:$0xff]  ;;  %v7974_v12 = vld [vmem:[#allocation135_spill] sm:$0xff] }
 0x3f1   : > { %v1571_v7 = vsel %vm537_vm1, %v1524_v11, 0.0  ;;  %v1526_v33 = vmul.f32 %v6761_v9, %v7973_v3  ;;  %v1570_v40 = vadd.f32 %v1569_v62, %v1568_v10  ;;  %v7975_v38 = vld [vmem:[#allocation126_spill] sm:$0xff]  ;;  %v2571_v37 = vsel %vm537_vm1, %v2526_v14, 0.0  ;;  %v7978_v62 = vld [vmem:[#allocation61_spill] sm:$0xff] }
 0x3f2   : > { %3119 = vperm.xlu0 %4612, %v4899_v19   ;;  %v2890_v50 = vadd.f32 %v2889_v39, %v2888_v15  ;;  %v1849_v19 = vmul.f32 %v6807_v27, %v7967_v53  ;;  %v1851_v15 = vmul.f32 %v6745_v57, %v7968_v32  ;;  %v905_v39 = vsel %vm537_vm1, %v852_v23, 0.0  ;;  %v7972_v53 = vld [vmem:[#allocation95_spill] sm:$0xff]  ;;  %v7977_v10 = vld [vmem:[#allocation90_spill] sm:$0xff] }
 0x3f3   : > { %v1572_v28 = vsel %vm537_vm1, %v1525_v6, 0.0  ;;  %v2527_v11 = vmul.f32 %v7975_v38, %v7974_v12  ;;  %v2572_v18 = vadd.f32 %v2571_v37, %v2570_v61  ;;  %v6849_v3 = vadd.f32 %v906_v43, %v905_v39  ;;  %v7981_v37 = vld [vmem:[#allocation97_spill] sm:$0xff] }
 0x3f4   : > { %v2767_v20 = vpop.permute.xlu0 %2766  ;;  %v1895_v32 = vsel %vm537_vm1, %v1849_v19, 0.0  ;;  %v1898_v24 = vsel %vm537_vm1, %v1851_v15, 0.0  ;;  %v1852_v19 = vmul.f32 %v6767_v52, %v7977_v10  ;;  %v1528_v14 = vmul.f32 %v6729_v49, %v7978_v62 }
 0x3f5   : > { %v2848_v30 = vmul.f32 %v6577_v35, %v2767_v20  ;;  %v1850_v20 = vmul.f32 %v6751_v1, %v7972_v53  ;;  %v1573_v53 = vadd.f32 %v1572_v28, %v1571_v7  ;;  %v1896_v6 = vadd.f32 %v1895_v32, %v1894_v47 }
 0x3f6   : > { %v6827_v58 = vpop.permute.xlu1 %2794  ;;  %3147 = vperm.xlu2 %4614, %v4900_v44   ;;  %v1574_v7 = vsel %vm537_vm1, %v1526_v33, 0.0 }
 0x3f7   : > { %v2891_v23 = vsel %vm537_vm1, %v2848_v30, 0.0  ;;  %v1527_v30 = vmul.f32 %v6795_v8, %v7976_v42  ;;  %v1897_v15 = vsel %vm537_vm1, %v1850_v20, 0.0  ;;  %v1596_v42 = vadd.f32 %v1570_v40, %v1270_v26  ;;  %v4902_v26 = vld [vmem:[%s7809_s1 + $0x11f] ss:$0 sm:$0xff] }
 0x3f8   : > { %v6840_v44 = vadd.f32 %v2891_v23, %v2890_v50  ;;  %v6852_v50 = vadd.f32 %v904_v46, %v6669_v2  ;;  %v1899_v23 = vadd.f32 %v1898_v24, %v1897_v15  ;;  %v2823_v47 = vpop.permute.xlu2 %2822  ;;  %v2573_v2 = vsel %vm537_vm1, %v2527_v11, 0.0  ;;  %v7980_v40 = vld [vmem:[#allocation76_spill] sm:$0xff]  ;;  %v7983_v15 = vld [vmem:[#allocation115_spill] sm:$0xff] }
 0x3f9   : > { %v2852_v46 = vmul.f32 %v6577_v35, %v6771_v16  ;;  %v1575_v20 = vadd.f32 %v1574_v7, %v1573_v53  ;;  %v1576_v28 = vsel %vm537_vm1, %v1527_v30, 0.0  ;;  %v1922_v32 = vadd.f32 %v1896_v6, %v1596_v42  ;;  %v7982_v53 = vld [vmem:[#allocation38_spill] sm:$0xff] }
 0x3fa   : > { %3143 = vperm.xlu0 %4612, %v4901_v51   ;;  %v7979_v51 = vld [vmem:[#allocation72_spill] sm:$0xff]  ;;  %v2574_v33 = vadd.f32 %v2573_v2, %v2572_v18  ;;  %v1530_v24 = vmul.f32 %v6761_v9, %v7980_v40  ;;  %v1900_v11 = vsel %vm537_vm1, %v1852_v19, 0.0  ;;  %v1853_v16 = vmul.f32 %v6807_v27, %v7981_v37 }
 0x3fb   : > { %v1529_v43 = vmul.f32 %v6813_v54, %v7979_v51  ;;  %v6878_v30 = vmul.f32 %v6648_v5, %v7982_v53  ;;  %v1901_v6 = vadd.f32 %v1900_v11, %v1899_v23  ;;  %v2275_v62 = vadd.f32 %v7983_v15, %v1922_v32  ;;  %v7984_v18 = vld [vmem:[#allocation40_spill] sm:$0xff] }
 0x3fc   : > { %v2779_v61 = vpop.permute.xlu0 %2778  ;;  %v1271_v42 = vadd.f32 %v7984_v18, %v6783_v0  ;;  %v1577_v19 = vadd.f32 %v1576_v28, %v1575_v20  ;;  %v2898_v51 = vsel %vm537_vm1, %v2852_v46, 0.0  ;;  %v1578_v2 = vsel %vm537_vm1, %v1528_v14, 0.0  ;;  %v7986_v11 = vld [vmem:[#allocation64_spill] sm:$0xff]  ;;  %v7987_v46 = vld [vmem:[#allocation93_spill] sm:$0xff] }
 0x3fd   : > { %v2851_v39 = vmul.f32 %v6527_v13, %v2779_v61  ;;  %v1579_v61 = vsel %vm537_vm1, %v1529_v43, 0.0  ;;  %v2600_v23 = vadd.f32 %v2574_v33, %v2275_v62  ;;  %v1531_v32 = vmul.f32 %v6795_v8, %v7986_v11 }
 0x3fe   : > { %v2807_v38 = vpop.permute.xlu1 %2806  ;;  %v1902_v0 = vsel %vm537_vm1, %v1853_v16, 0.0  ;;  %v2853_v43 = vmul.f32 %v6508_v36, %v6662_v21  ;;  %v1580_v20 = vadd.f32 %v1579_v61, %v1578_v2  ;;  %v1855_v14 = vmul.f32 %v6745_v57, %v7987_v46  ;;  %v7988_v16 = vld [vmem:[#allocation75_spill] sm:$0xff]  ;;  %v7992_v46 = vld [vmem:[#allocation110_spill] sm:$0xff] }
 0x3ff   : > { %v2896_v10 = vsel %vm537_vm1, %v2851_v39, 0.0  ;;  %v7985_v39 = vld [vmem:[#allocation101_spill] sm:$0xff]  ;;  %v1903_v28 = vadd.f32 %v1902_v0, %v1901_v6  ;;  %v2855_v33 = vmul.f32 %v6527_v13, %v6827_v58  ;;  %v2862_v15 = vmul.f32 %v6495_v17, %v2823_v47 }
 0x400   : > { %v2897_v7 = vadd.f32 %v2896_v10, %v6733_v60  ;;  %v1854_v40 = vmul.f32 %v6751_v1, %v7985_v39  ;;  %v1581_v60 = vsel %vm537_vm1, %v1530_v24, 0.0  ;;  %v1532_v62 = vmul.f32 %v6729_v49, %v7988_v16  ;;  %v6908_v61 = vpop.permute.xlu2 %3027  ;;  %v7990_v39 = vld [vmem:[#allocation100_spill] sm:$0xff] }
 0x401   : > { %v1582_v21 = vadd.f32 %v1581_v60, %v1580_v20  ;;  %v2856_v58 = vmul.f32 %v6577_v35, %v6714_v29  ;;  %v1905_v2 = vsel %vm537_vm1, %v1855_v14, 0.0  ;;  %v2903_v0 = vsel %vm537_vm1, %v2855_v33, 0.0 }
 0x402   : > { %3151 = vperm.xlu0 %4612, %v4902_v26   ;;  %v2899_v37 = vadd.f32 %v2898_v51, %v2897_v7  ;;  %v1597_v26 = vadd.f32 %v1577_v19, %v1271_v42  ;;  %v7989_v7 = vld [vmem:[#allocation79_spill] sm:$0xff]  ;;  %v1904_v6 = vsel %vm537_vm1, %v1854_v40, 0.0  ;;  %v2900_v42 = vsel %vm537_vm1, %v2853_v43, 0.0 }
 0x403   : > { %v1533_v18 = vmul.f32 %v6813_v54, %v7989_v7  ;;  %v7991_v40 = vld [vmem:[#allocation103_spill] sm:$0xff]  ;;  %v2915_v43 = vsel %vm537_vm1, %v2862_v15, 0.0  ;;  %v1906_v20 = vadd.f32 %v1905_v2, %v1904_v6  ;;  %v1583_v14 = vsel %vm537_vm1, %v1531_v32, 0.0  ;;  %v7993_v7 = vld [vmem:[#allocation66_spill] sm:$0xff] }
 0x404   : > { %v2791_v10 = vpop.permute.xlu0 %2790  ;;  %v6897_v53 = vadd.f32 %v2899_v37, %v2600_v23  ;;  %v1856_v37 = vmul.f32 %v6767_v52, %v7990_v39  ;;  %v1923_v23 = vadd.f32 %v1903_v28, %v1597_v26  ;;  %v1857_v60 = vmul.f32 %v6807_v27, %v7991_v40  ;;  %v7995_v2 = vld [vmem:[#allocation102_spill] sm:$0xff]  ;;  %v7996_v40 = vld [vmem:[#allocation96_spill] sm:$0xff] }
 0x405   : > { %v2854_v24 = vmul.f32 %v6495_v17, %v2791_v10  ;;  %v1534_v28 = vmul.f32 %v6761_v9, %v7993_v7  ;;  %v2905_v26 = vsel %vm537_vm1, %v2856_v58, 0.0  ;;  %v1586_v33 = vsel %vm537_vm1, %v1533_v18, 0.0 }
 0x406   : > { %v2819_v51 = vpop.permute.xlu1 %2818  ;;  %v2276_v10 = vadd.f32 %v7992_v46, %v1923_v23  ;;  %v1907_v15 = vsel %vm537_vm1, %v1856_v37, 0.0  ;;  %v1859_v39 = vmul.f32 %v6745_v57, %v7995_v2  ;;  %v1909_v32 = vsel %vm537_vm1, %v1857_v60, 0.0 }
 0x407   : > { %v2901_v47 = vsel %vm537_vm1, %v2854_v24, 0.0  ;;  %v2861_v19 = vmul.f32 %v6508_v36, %v2819_v51  ;;  %v2858_v51 = vmul.f32 %v6495_v17, %v2807_v38  ;;  %v2859_v23 = vmul.f32 %v6527_v13, %v6799_v25  ;;  %v7998_v25 = vld [vmem:[#allocation48_spill] sm:$0xff] }
 0x408   : > { %v2902_v11 = vadd.f32 %v2901_v47, %v2900_v42  ;;  %v7994_v47 = vld [vmem:[#allocation136_spill] sm:$0xff]  ;;  %v1585_v17 = vsel %vm537_vm1, %v1532_v62, 0.0  ;;  %v1584_v38 = vadd.f32 %v1583_v14, %v1582_v21  ;;  %v1908_v18 = vadd.f32 %v1907_v15, %v1906_v20  ;;  %v3040_v21 = vpop.permute.xlu2 %3039 }
 0x409   : > { %v2914_v29 = vsel %vm537_vm1, %v2861_v19, 0.0  ;;  %v2601_v19 = vadd.f32 %v7994_v47, %v2276_v10  ;;  %v2908_v60 = vsel %vm537_vm1, %v2858_v51, 0.0  ;;  %v1587_v10 = vadd.f32 %v1586_v33, %v1585_v17 }
 0x40a   : > { %v2904_v24 = vadd.f32 %v2903_v0, %v2902_v11  ;;  %v6924_v16 = vadd.f32 %v2915_v43, %v2914_v29  ;;  %v1858_v0 = vmul.f32 %v6751_v1, %v7996_v40  ;;  %v7997_v43 = vld [vmem:[#allocation104_spill] sm:$0xff]  ;;  %v1910_v62 = vadd.f32 %v1909_v32, %v1908_v18 }
 0x40b   : > { %v1860_v29 = vmul.f32 %v6767_v52, %v7997_v43  ;;  %v910_v14 = vsel %vm537_vm1, %v6878_v30, 0.0  ;;  %v1912_v7 = vsel %vm537_vm1, %v1859_v39, 0.0  ;;  %v591_v51 = vadd.f32 %v6678_v59, %v6667_v31  ;;  %v8000_v59 = vld [vmem:[#allocation99_spill] sm:$0xff] }
 0x40c   : > { %v2803_v42 = vpop.permute.xlu0 %2802  ;;  %v2906_v6 = vadd.f32 %v2905_v26, %v2904_v24  ;;  %v908_v24 = vsel %vm537_vm1, %v6726_v63, 0.0  ;;  %v2910_v26 = vsel %vm537_vm1, %v2859_v23, 0.0  ;;  %v1911_v63 = vsel %vm537_vm1, %v1858_v0, 0.0 }
 0x40d   : > { %v2857_v58 = vmul.f32 %v6508_v36, %v2803_v42  ;;  %v1272_v36 = vadd.f32 %v7998_v25, %v6852_v50  ;;  %v909_v15 = vadd.f32 %v908_v24, %v6849_v3  ;;  %v1588_v42 = vsel %vm537_vm1, %v1534_v28, 0.0  ;;  %v8002_v25 = vld [vmem:[#allocation137_spill] sm:$0xff] }
 0x40e   : > { %v2831_v11 = vpop.permute.xlu1 %2830  ;;  %v6941_v37 = vadd.f32 %v2906_v6, %v2601_v19  ;;  %v7999_v6 = vld [vmem:[#allocation78_spill] sm:$0xff]  ;;  %v1914_v30 = vsel %vm537_vm1, %v1860_v29, 0.0  ;;  %v1589_v2 = vadd.f32 %v1588_v42, %v1587_v10  ;;  %v1913_v39 = vadd.f32 %v1912_v7, %v1911_v63  ;;  %v8003_v10 = vld [vmem:[#allocation52_spill] sm:$0xff] }
 0x40f   : > { %v2907_v46 = vsel %vm537_vm1, %v2857_v58, 0.0  ;;  %v1598_v50 = vadd.f32 %v1584_v38, %v1272_v36  ;;  %v1535_v47 = vmul.f32 %v6795_v8, %v7999_v6  ;;  %v911_v19 = vadd.f32 %v910_v14, %v909_v15  ;;  %v8001_v38 = vld [vmem:[#allocation107_spill] sm:$0xff]  ;;  %v8004_v6 = vld [vmem:[#allocation118_spill] sm:$0xff] }
 0x410   : > { %v2909_v20 = vadd.f32 %v2908_v60, %v2907_v46  ;;  %v592_v31 = vsel %vm537_vm1, %v6675_v55, 0.0  ;;  %v1861_v3 = vmul.f32 %v6807_v27, %v8000_v59  ;;  %v1915_v17 = vadd.f32 %v1914_v30, %v1913_v39  ;;  %v3052_v24 = vpop.permute.xlu2 %3051 }
 0x411   : > { %v1924_v32 = vadd.f32 %v1910_v62, %v1598_v50  ;;  %v593_v58 = vadd.f32 %v592_v31, %v591_v51  ;;  %v1590_v0 = vsel %vm537_vm1, %v1535_v47, 0.0  ;;  %v2864_v51 = vmul.f32 %v6577_v35, %v2831_v11 }
 0x412   : > { %v2911_v33 = vadd.f32 %v2910_v26, %v2909_v20  ;;  %v1591_v60 = vadd.f32 %v1590_v0, %v1589_v2  ;;  %v1916_v55 = vsel %vm537_vm1, %v1861_v3, 0.0  ;;  %v8005_v2 = vld [vmem:[#allocation138_spill] sm:$0xff] }
 0x413   : > { %v2277_v18 = vadd.f32 %v8001_v38, %v1924_v32  ;;  %v919_v29 = vadd.f32 %v911_v19, %v593_v58  ;;  %v1917_v20 = vadd.f32 %v1916_v55, %v1915_v17  ;;  %v2919_v30 = vsel %vm537_vm1, %v2864_v51, 0.0  ;;  %v4903_v55 = vld [vmem:[%s7810_s2] ss:$0 sm:$0xff] }
 0x414   : > { %v2815_v23 = vpop.permute.xlu0 %2814  ;;  %v3154_v32 = vmul.f32 %v6908_v61, %v7962_v22 }
 0x415   : > { %v2860_v28 = vmul.f32 %v6577_v35, %v2815_v23  ;;  %v2602_v36 = vadd.f32 %v8002_v25, %v2277_v18  ;;  %v1273_v62 = vadd.f32 %v8003_v10, %v919_v29 }
 0x416   : > { %v3036_v40 = vpop.permute.xlu1 %3035  ;;  %v3186_v3 = vsel %vm1177_vm0, %v3154_v32, 0.0 }
 0x417   : > { %v2912_v43 = vsel %vm537_vm1, %v2860_v28, 0.0  ;;  %v1599_v7 = vadd.f32 %v1591_v60, %v1273_v62 }
 0x418   : > { %v2913_v46 = vadd.f32 %v2912_v43, %v2911_v33  ;;  %v3064_v23 = vpop.permute.xlu2 %3063 }
 0x419   : > { %v1925_v50 = vadd.f32 %v1917_v20, %v1599_v7 }
 0x41a   : > { %v6976_v14 = vadd.f32 %v2913_v46, %v2602_v36  ;;  %v3160_v46 = vmul.f32 %v3052_v24, %v7969_v4  ;;  %v4904_v24 = vld [vmem:[%s7810_s2 + $0x2] ss:$0 sm:$0xff] }
 0x41b   : > { %v2278_v47 = vadd.f32 %v8004_v6, %v1925_v50 }
 0x41c   : > { %v2827_v26 = vpop.permute.xlu0 %2826  ;;  %v3196_v62 = vsel %vm1177_vm0, %v3160_v46, 0.0  ;;  %v7045_v46 = vld [vmem:[%s5568_s13 + $0x21] sm:$0xff] }
 0x41d   : > { %v2863_v15 = vmul.f32 %v6527_v13, %v2827_v26  ;;  %v2603_v39 = vadd.f32 %v8005_v2, %v2278_v47  ;;  %v3156_v13 = vmul.f32 %v3036_v40, %v7969_v4  ;;  %v4905_v47 = vld [vmem:[%s7810_s2 + $0x1] ss:$0 sm:$0xff] }
 0x41e   : > { %v3048_v42 = vpop.permute.xlu1 %3047 }
 0x41f   : > { %v2917_v33 = vsel %vm537_vm1, %v2863_v15, 0.0  ;;  %v3189_v17 = vsel %vm1177_vm0, %v3156_v13, 0.0  ;;  %v3159_v43 = vmul.f32 %v3048_v42, %v6424_v45 }
 0x420   : > { %v2918_v63 = vadd.f32 %v2917_v33, %v6924_v16  ;;  %v3157_v16 = vmul.f32 %v3040_v21, %v7974_v12  ;;  %v3080_v29 = vpop.permute.xlu2 %3079 }
 0x421   : > { %v3194_v25 = vsel %vm1177_vm0, %v3159_v43, 0.0  ;;  %v7040_v43 = vld [vmem:[%s5568_s13 + $0x1] sm:$0xff] }
 0x422   : > { %v2920_v19 = vadd.f32 %v2919_v30, %v2918_v63  ;;  %v3191_v61 = vsel %vm1177_vm0, %v3157_v16, 0.0  ;;  %v3163_v63 = vmul.f32 %v3064_v23, %v6424_v45 }
 0x424   : > { %v3032_v35 = vpop.permute.xlu0 %3031  ;;  %v6987_v11 = vadd.f32 %v2920_v19, %v2603_v39  ;;  %v4906_v39 = vld [vmem:[%s7811_s3] ss:$0 sm:$0xff]  ;;  %v3201_v32 = vsel %vm1177_vm0, %v3163_v63, 0.0 }
 0x425   : > { %v3155_v31 = vmul.f32 %v3032_v35, %v6424_v45 }
 0x426   : > { %v3060_v59 = vpop.permute.xlu1 %3059 }
 0x427   : > { %v3187_v28 = vsel %vm1177_vm0, %v3155_v31, 0.0  ;;  %v3162_v33 = vmul.f32 %v3060_v59, %v7962_v22 }
 0x428   : > { %v3188_v58 = vadd.f32 %v3187_v28, %v3186_v3  ;;  %v3092_v15 = vpop.permute.xlu2 %3091  ;;  %v7027_v3 = vld [vmem:[%s5568_s13 + $0x11] sm:$0xff] }
 0x429   : > { %v3200_v19 = vsel %vm1177_vm0, %v3162_v33, 0.0  ;;  %v3167_v16 = vmul.f32 %v7027_v3, %v3080_v29 }
 0x42a   : > { %v3190_v38 = vadd.f32 %v3189_v17, %v3188_v58  ;;  %v3202_v13 = vadd.f32 %v3201_v32, %v3200_v19  ;;  %v4911_v19 = vld [vmem:[%s7811_s3 + $0x1] ss:$0 sm:$0xff] }
 0x42c   : > { %v3044_v18 = vpop.permute.xlu0 %3043  ;;  %v3192_v0 = vadd.f32 %v3191_v61, %v3190_v38 }
 0x42d   : > { %v3158_v40 = vmul.f32 %v3044_v18, %v7962_v22 }
 0x42e   : > { %v3076_v60 = vpop.permute.xlu1 %3075  ;;  %3250 = vrot.lane.b32.xlu1 %v3192_v0, %s5058_s14  ;;  %v3208_v0 = vsel %vm1177_vm0, %v3167_v16, 0.0 }
 0x42f   : > { %v3193_v21 = vsel %vm1177_vm0, %v3158_v40, 0.0  ;;  %v3166_v59 = vmul.f32 %v3076_v60, %v7962_v22  ;;  %v4907_v22 = vld [vmem:[%s7810_s2 + $0x4] ss:$0 sm:$0xff] }
 0x430   : > { %v3195_v36 = vadd.f32 %v3194_v25, %v3193_v21  ;;  %v3100_v2 = vpop.permute.xlu2 %3099 }
 0x431   : > { %v3207_v61 = vsel %vm1177_vm0, %v3166_v59, 0.0  ;;  %v3172_v25 = vmul.f32 %v7045_v46, %v3100_v2  ;;  %v4912_v59 = vld [vmem:[%s7811_s3 + $0x5] ss:$0 sm:$0xff] }
 0x432   : > { %v3197_v7 = vadd.f32 %v3196_v62, %v3195_v36  ;;  %v3209_v29 = vadd.f32 %v3208_v0, %v3207_v61  ;;  %v7083_v61 = vld [vmem:[%s5568_s13 + $0x31] sm:$0xff] }
 0x434   : > { %v3056_v10 = vpop.permute.xlu0 %3055 }
 0x435   : > { %v3161_v20 = vmul.f32 %v3056_v10, %v7974_v12 }
 0x436   : > { %v3084_v26 = vpop.permute.xlu1 %3083  ;;  %3307 = vperm.xlu1 %4613, %v4903_v55  }
 0x437   : > { %v3198_v51 = vsel %vm1177_vm0, %v3161_v20, 0.0  ;;  %v3168_v28 = vmul.f32 %v3084_v26, %v7969_v4 }
 0x438   : > { %v3199_v50 = vadd.f32 %v3198_v51, %v3197_v7  ;;  %v3104_v60 = vpop.permute.xlu2 %3103 }
 0x439   : > { %v3210_v40 = vsel %vm1177_vm0, %v3168_v28, 0.0  ;;  %v3173_v20 = vmul.f32 %v3104_v60, %v7974_v12 }
 0x43a   : > { %3252 = vrot.lane.b32.xlu2 %v3199_v50, %s5058_s14  ;;  %v3211_v10 = vadd.f32 %v3210_v40, %v3209_v29 }
 0x43b   : > { %v3219_v33 = vsel %vm1177_vm0, %v3173_v20, 0.0 }
 0x43c   : > { %v3068_v42 = vpop.permute.xlu0 %3067 }
 0x43d   : > { %v3164_v30 = vmul.f32 %v3068_v42, %v7969_v4  ;;  %v3170_v4 = vmul.f32 %v7040_v43, %v3092_v15  ;;  %v3217_v15 = vsel %vm1177_vm0, %v3172_v25, 0.0  ;;  %v4908_v42 = vld [vmem:[%s7810_s2 + $0x5] ss:$0 sm:$0xff] }
 0x43e   : > { %v3088_v6 = vpop.permute.xlu1 %3087  ;;  %3315 = vperm.xlu1 %4613, %v4904_v24  }
 0x43f   : > { %v3203_v35 = vsel %vm1177_vm0, %v3164_v30, 0.0  ;;  %v3169_v18 = vmul.f32 %v3088_v6, %v7974_v12  ;;  %v3214_v62 = vsel %vm1177_vm0, %v3170_v4, 0.0  ;;  %v4910_v30 = vld [vmem:[%s7810_s2 + $0x6] ss:$0 sm:$0xff] }
 0x440   : > { %v3204_v23 = vadd.f32 %v3203_v35, %v3202_v13  ;;  %v3128_v63 = vpop.permute.xlu2 %3127 }
 0x441   : > { %v3212_v36 = vsel %vm1177_vm0, %v3169_v18, 0.0  ;;  %v3179_v4 = vmul.f32 %v7027_v3, %v3128_v63  ;;  %v4916_v63 = vld [vmem:[%s7811_s3 + $0xa] ss:$0 sm:$0xff] }
 0x442   : > { %3311 = vperm.xlu2 %4614, %v4905_v47   ;;  %v3213_v26 = vadd.f32 %v3212_v36, %v3211_v10  ;;  %v4914_v36 = vld [vmem:[%s7811_s3 + $0x10] ss:$0 sm:$0xff] }
 0x443   : > { %v3229_v10 = vsel %vm1177_vm0, %v3179_v4, 0.0 }
 0x444   : > { %v3072_v31 = vpop.permute.xlu0 %3071 }
 0x445   : > { %v3165_v45 = vmul.f32 %v3072_v31, %v7974_v12  ;;  %v4909_v12 = vld [vmem:[%s7810_s2 + $0x3] ss:$0 sm:$0xff] }
 0x446   : > { %3499 = vperm.xlu1 %4613, %v4906_v39   ;;  %v3112_v38 = vpop.permute.xlu1 %3111 }
 0x447   : > { %v3205_v58 = vsel %vm1177_vm0, %v3165_v45, 0.0  ;;  %v3175_v35 = vmul.f32 %v7027_v3, %v3112_v38  ;;  %v4913_v45 = vld [vmem:[%s7811_s3 + $0x2] ss:$0 sm:$0xff] }
 0x448   : > { %v3206_v17 = vadd.f32 %v3205_v58, %v3204_v23  ;;  %v3140_v28 = vpop.permute.xlu2 %3139 }
 0x449   : > { %v3222_v23 = vsel %vm1177_vm0, %v3175_v35, 0.0 }
 0x44a   : > { %3254 = vrot.lane.b32.xlu0 %v3206_v17, %s5058_s14 }
 0x44c   : > { %v3096_v21 = vpop.permute.xlu0 %3095 }
 0x44d   : > { %v3171_v55 = vmul.f32 %v7027_v3, %v3096_v21 }
 0x44e   : > { %3323 = vperm.xlu1 %4613, %v4907_v22   ;;  %v3124_v24 = vpop.permute.xlu1 %3123 }
 0x44f   : > { %v3215_v7 = vsel %vm1177_vm0, %v3171_v55, 0.0  ;;  %v3178_v38 = vmul.f32 %v7040_v43, %v3124_v24  ;;  %v4915_v55 = vld [vmem:[%s7811_s3 + $0x3] ss:$0 sm:$0xff] }
 0x450   : > { %v3216_v51 = vadd.f32 %v3215_v7, %v3214_v62 }
 0x451   : > { %v3228_v21 = vsel %vm1177_vm0, %v3178_v38, 0.0  ;;  %v7134_v38 = vld [vmem:[%s5568_s13] sm:$0xff] }
 0x452   : > { %v3218_v50 = vadd.f32 %v3217_v15, %v3216_v51  ;;  %3256 = vrot.lane.b32.xlu0 %v3213_v26, %s5058_s14  ;;  %v3230_v20 = vadd.f32 %v3229_v10, %v3228_v21  ;;  %v3182_v26 = vmul.f32 %v7040_v43, %v3140_v28  ;;  %v7149_v21 = vld [vmem:[%s5568_s13 + $0x20] sm:$0xff]  ;;  %v8011_v10 = vld [vmem:[#allocation26_spill] sm:$0xff] }
 0x454   : > { %v3108_v6 = vpop.permute.xlu0 %3107  ;;  %v3220_v47 = vadd.f32 %v3219_v33, %v3218_v50  ;;  %v3148_v50 = vpop.permute.xlu2 %3147 }
 0x455   : > { %v3174_v32 = vmul.f32 %v7040_v43, %v3108_v6  ;;  %v3235_v6 = vsel %vm1177_vm0, %v3182_v26, 0.0  ;;  %v4923_v26 = vld [vmem:[%s7811_s3 + $0x9] ss:$0 sm:$0xff] }
 0x456   : > { %3327 = vperm.xlu1 %4613, %v4908_v42   ;;  %3258 = vrot.lane.b32.xlu2 %v3220_v47, %s5058_s14  ;;  %v3132_v2 = vpop.permute.xlu1 %3131  ;;  %v3184_v47 = vmul.f32 %v7045_v46, %v3148_v50  ;;  %v8013_v50 = vld [vmem:[#allocation41_spill] sm:$0xff] }
 0x457   : > { %v3221_v31 = vsel %vm1177_vm0, %v3174_v32, 0.0  ;;  %v3180_v40 = vmul.f32 %v7045_v46, %v3132_v2 }
 0x458   : > { %v3223_v58 = vadd.f32 %v3222_v23, %v3221_v31  ;;  %v3238_v2 = vsel %vm1177_vm0, %v3184_v47, 0.0  ;;  %v4918_v31 = vld [vmem:[%s7811_s3 + $0xb] ss:$0 sm:$0xff]  ;;  %v7127_v23 = vld [vmem:[%s5568_s13 + $0x10] sm:$0xff] }
 0x459   : > { %v3231_v62 = vsel %vm1177_vm0, %v3180_v40, 0.0  ;;  %v4921_v40 = vld [vmem:[%s7811_s3 + $0x14] ss:$0 sm:$0xff]  ;;  %v8016_v47 = vld [vmem:[#allocation22_spill] sm:$0xff] }
 0x45a   : > { %3319 = vperm.xlu0 %4612, %v4909_v12   ;;  %v3232_v24 = vadd.f32 %v3231_v62, %v3230_v20  ;;  %v826_v62 = vmul.f32 %v6627_v48, %v8011_v10  ;;  %v8012_v20 = vld [vmem:[#allocation51_spill] sm:$0xff] }
 0x45c   : > { %v3116_v39 = vpop.permute.xlu0 %3115 }
 0x45d   : > { %v3176_v13 = vmul.f32 %v7045_v46, %v3116_v39 }
 0x45e   : > { %3331 = vperm.xlu1 %4613, %v4910_v30   ;;  %3503 = vperm.xlu2 %4614, %v4911_v19   ;;  %v3136_v0 = vpop.permute.xlu1 %3135  ;;  %v4917_v30 = vld [vmem:[%s7811_s3 + $0x4] ss:$0 sm:$0xff] }
 0x45f   : > { %v3224_v16 = vsel %vm1177_vm0, %v3176_v13, 0.0  ;;  %v3181_v25 = vmul.f32 %v7083_v61, %v3136_v0  ;;  %v8009_v0 = vld [vmem:[#allocation21_spill] sm:$0xff] }
 0x460   : > { %v3225_v22 = vadd.f32 %v3224_v16, %v3223_v58  ;;  %v8006_v16 = vld [vmem:[#allocation13_spill] sm:$0xff]  ;;  %v8007_v58 = vld [vmem:[#allocation27_spill] sm:$0xff]  ;;  %v824_v4 = vmul.f32 %v6607_v41, %v8009_v0 }
 0x461   : > { %v3233_v51 = vsel %vm1177_vm0, %v3181_v25, 0.0  ;;  %v506_v28 = vmul.f32 %v7127_v23, %v8006_v16  ;;  %v8010_v25 = vld [vmem:[#allocation9_spill] sm:$0xff]  ;;  %v8020_v16 = vld [vmem:[#allocation42_spill] sm:$0xff] }
 0x462   : > { %v3234_v33 = vadd.f32 %v3233_v51, %v3232_v24  ;;  %v1504_v24 = vmul.f32 %v6729_v49, %v8013_v50  ;;  %v4924_v49 = vld [vmem:[%s7812_s4] ss:$0 sm:$0xff]  ;;  %v4928_v50 = vld [vmem:[%s7811_s3 + $0x13] ss:$0 sm:$0xff] }
 0x464   : > { %v3120_v17 = vpop.permute.xlu0 %3119 }
 0x465   : > { %v3177_v18 = vmul.f32 %v7083_v61, %v3120_v17  ;;  %v825_v17 = vmul.f32 %v6610_v56, %v8007_v58 }
 0x466   : > { %3519 = vperm.xlu1 %4613, %v4912_v59   ;;  %3507 = vperm.xlu2 %4614, %v4913_v45   ;;  %v4919_v59 = vld [vmem:[%s7811_s3 + $0x8] ss:$0 sm:$0xff]  ;;  %v4920_v45 = vld [vmem:[%s7810_s2 + $0x7] ss:$0 sm:$0xff] }
 0x467   : > { %v3226_v29 = vsel %vm1177_vm0, %v3177_v18, 0.0  ;;  %v8008_v18 = vld [vmem:[#allocation10_spill] sm:$0xff]  ;;  %v857_v56 = vsel %vm537_vm1, %v825_v17, 0.0  ;;  %v8021_v17 = vld [vmem:[#allocation81_spill] sm:$0xff] }
 0x468   : > { %v3227_v60 = vadd.f32 %v3226_v29, %v3225_v22  ;;  %v505_v22 = vmul.f32 %v7134_v38, %v8008_v18  ;;  %v4922_v29 = vld [vmem:[%s7811_s3 + $0x11] ss:$0 sm:$0xff]  ;;  %v1832_v18 = vmul.f32 %v6767_v52, %v8021_v17  ;;  %v4934_v17 = vld [vmem:[%s7811_s3 + $0xe] ss:$0 sm:$0xff] }
 0x46a   : > { %3260 = vrot.lane.b32.xlu0 %v3227_v60, %s5058_s14  ;;  %v539_v60 = vsel %vm537_vm1, %v506_v28, 0.0  ;;  %v538_v41 = vsel %vm537_vm1, %v505_v22, 0.0  ;;  %v1507_v28 = vmul.f32 %v6795_v8, %v8020_v16  ;;  %v8022_v22 = vld [vmem:[#allocation84_spill] sm:$0xff]  ;;  %v4926_v8 = vld [vmem:[%s7811_s3 + $0x6] ss:$0 sm:$0xff] }
 0x46b   : > { %v540_v51 = vadd.f32 %v539_v60, %v538_v41  ;;  %v1833_v0 = vmul.f32 %v6807_v27, %v8022_v22 }
 0x46c   : > { %v3144_v7 = vpop.permute.xlu0 %3143 }
 0x46d   : > { %v3183_v15 = vmul.f32 %v7027_v3, %v3144_v7  ;;  %v1505_v7 = vmul.f32 %v6813_v54, %v8012_v20  ;;  %v1865_v20 = vsel %vm537_vm1, %v1832_v18, 0.0  ;;  %v4935_v18 = vld [vmem:[%s7811_s3 + $0x15] ss:$0 sm:$0xff] }
 0x46e   : > { %3563 = vperm.xlu1 %4613, %v4914_v36   ;;  %3511 = vperm.xlu2 %4614, %v4915_v55   ;;  %v507_v36 = vmul.f32 %v7149_v21, %v8010_v25  ;;  %v856_v55 = vsel %vm537_vm1, %v824_v4, 0.0 }
 0x46f   : > { %v3236_v42 = vsel %vm1177_vm0, %v3183_v15, 0.0  ;;  %v858_v15 = vadd.f32 %v857_v56, %v856_v55  ;;  %v8024_v56 = vld [vmem:[#allocation121_spill] sm:$0xff] }
 0x470   : > { %v3237_v12 = vadd.f32 %v3236_v42, %v3235_v6  ;;  %v8014_v42 = vld [vmem:[#allocation55_spill] sm:$0xff]  ;;  %v8015_v6 = vld [vmem:[#allocation82_spill] sm:$0xff]  ;;  %v541_v54 = vsel %vm537_vm1, %v507_v36, 0.0  ;;  %v2510_v25 = vmul.f32 %v7045_v46, %v8024_v56 }
 0x471   : > { %v1830_v48 = vmul.f32 %v6751_v1, %v8015_v6  ;;  %v4925_v1 = vld [vmem:[%s7811_s3 + $0x12] ss:$0 sm:$0xff] }
 0x472   : > { %3262 = vrot.lane.b32.xlu0 %v3234_v33, %s5058_s14  ;;  %v3239_v32 = vadd.f32 %v3238_v2, %v3237_v12  ;;  %v1506_v33 = vmul.f32 %v6761_v9, %v8014_v42  ;;  %v827_v12 = vmul.f32 %v6648_v5, %v8016_v47  ;;  %v7182_v9 = vld [vmem:[%s5568_s13 + $0x30] sm:$0xff] }
 0x473   : > { %v8026_v47 = vld [vmem:[#allocation43_spill] sm:$0xff] }
 0x474   : > { %v3152_v19 = vpop.permute.xlu0 %3151  ;;  %v861_v4 = vsel %vm537_vm1, %v827_v12, 0.0 }
 0x475   : > { %v3185_v39 = vmul.f32 %v7083_v61, %v3152_v19  ;;  %v8017_v19 = vld [vmem:[#allocation68_spill] sm:$0xff] }
 0x476   : > { %3539 = vperm.xlu1 %4613, %v4916_v63   ;;  %3515 = vperm.xlu2 %4614, %v4917_v30   ;;  %v859_v63 = vsel %vm537_vm1, %v826_v62, 0.0  ;;  %v1537_v30 = vsel %vm537_vm1, %v1505_v7, 0.0  ;;  %v1831_v2 = vmul.f32 %v6745_v57, %v8017_v19  ;;  %v1539_v57 = vsel %vm537_vm1, %v1506_v33, 0.0  ;;  %v4929_v19 = vld [vmem:[%s7811_s3 + $0x7] ss:$0 sm:$0xff] }
 0x477   : > { %v3240_v35 = vsel %vm1177_vm0, %v3185_v39, 0.0  ;;  %v8018_v39 = vld [vmem:[#allocation12_spill] sm:$0xff]  ;;  %v1541_v62 = vsel %vm537_vm1, %v1507_v28, 0.0  ;;  %v1867_v7 = vsel %vm537_vm1, %v1833_v0, 0.0 }
 0x478   : > { %v3241_v13 = vadd.f32 %v3240_v35, %v3239_v32  ;;  %v508_v5 = vmul.f32 %v7182_v9, %v8018_v39  ;;  %v542_v32 = vadd.f32 %v541_v54, %v540_v51  ;;  %v860_v35 = vadd.f32 %v859_v63, %v858_v15  ;;  %v4927_v15 = vld [vmem:[%s7811_s3 + $0xf] ss:$0 sm:$0xff] }
 0x479   : > { %v2543_v51 = vsel %vm537_vm1, %v2510_v25, 0.0  ;;  %v4939_v25 = vld [vmem:[%s7811_s3 + $0x2d] ss:$0 sm:$0xff] }
 0x47a   : > { %3264 = vrot.lane.b32.xlu0 %v3241_v13, %s5058_s14  ;;  %v1536_v13 = vsel %vm537_vm1, %v1504_v24, 0.0  ;;  %v862_v52 = vadd.f32 %v861_v4, %v860_v35  ;;  %v543_v27 = vsel %vm537_vm1, %v508_v5, 0.0  ;;  %v4930_v5 = vld [vmem:[%s7812_s4 + $0x2] ss:$0 sm:$0xff]  ;;  %v4936_v4 = vld [vmem:[%s7811_s3 + $0x21] ss:$0 sm:$0xff] }
 0x47b   : > { %v1538_v58 = vadd.f32 %v1537_v30, %v1536_v13  ;;  %v544_v10 = vadd.f32 %v543_v27, %v542_v32  ;;  %v4931_v32 = vld [vmem:[%s7811_s3 + $0xd] ss:$0 sm:$0xff]  ;;  %v8027_v35 = vld [vmem:[#allocation105_spill] sm:$0xff]  ;;  %s5013_s14 = scalar_lea.hbm %s7815_s7, 192 }
 0x47c   : > { %v8028_v27 = vld [vmem:[#allocation5_spill] sm:$0xff]  ;;  %p5015_p1 = scmp.lt.s32.totalorder %s5013_s14, %s5009_s29 }
 0x47d   : > { %v1540_v36 = vadd.f32 %v1539_v57, %v1538_v58  ;;  %v912_v24 = vadd.f32 %v862_v52, %v544_v10  ;;  %v4933_v58 = vld [vmem:[%s7811_s3 + $0x2a] ss:$0 sm:$0xff]  ;;  %v4941_v52 = vld [vmem:[%s7812_s4 + $0x1] ss:$0 sm:$0xff] }
 0x47e   : > { %3543 = vperm.xlu1 %4613, %v4918_v31   ;;  %3531 = vperm.xlu2 %4614, %v4919_v59   ;;  %v1862_v31 = vsel %vm537_vm1, %v1830_v48, 0.0  ;;  %v8019_v59 = vld [vmem:[#allocation113_spill] sm:$0xff]  ;;  %v8025_v48 = vld [vmem:[#allocation116_spill] sm:$0xff]  ;;  %v8029_v10 = vld [vmem:[#allocation6_spill] sm:$0xff]  ;;  %p5016_p2 = por %p5015_p1, %p5014_p0 }
 0x47f   : > { %v1542_v42 = vadd.f32 %v1541_v62, %v1540_v36  ;;  %v2511_v54 = vmul.f32 %v7083_v61, %v8025_v48  ;;  %v1266_v12 = vadd.f32 %v8026_v47, %v912_v24  ;;  %v510_v62 = vmul.f32 %v7127_v23, %v8029_v10  ;;  %v4944_v24 = vld [vmem:[%s7811_s3 + $0x29] ss:$0 sm:$0xff]  ;;  %v4981_v48 = vld [vmem:[%s5568_s13 + $0x50] sm:$0xff] }
 0x480   : > { %v8043_v10 = vld [vmem:[#allocation19_spill] sm:$0xff]  ;;  %p5017_p3 = pnand %p5016_p2, %p5012_p13 }
 0x482   : > { %3335 = vperm.xlu0 %4612, %v4920_v45   ;;  %v2508_v45 = vmul.f32 %v7040_v43, %v8019_v59  ;;  %v4932_v59 = vld [vmem:[%s7811_s3 + $0xc] ss:$0 sm:$0xff] }
 0x484   : > { %v2540_v55 = vsel %vm537_vm1, %v2508_v45, 0.0 }
 0x486   : > { %3579 = vperm.xlu1 %4613, %v4921_v40   ;;  %3567 = vperm.xlu2 %4614, %v4922_v29   ;;  %v1863_v40 = vsel %vm537_vm1, %v1831_v2, 0.0  ;;  %v8023_v29 = vld [vmem:[#allocation109_spill] sm:$0xff]  ;;  %v1592_v2 = vadd.f32 %v1542_v42, %v1266_v12 }
 0x487   : > { %v2509_v60 = vmul.f32 %v7027_v3, %v8023_v29  ;;  %v1864_v41 = vadd.f32 %v1863_v40, %v1862_v31  ;;  %v4937_v40 = vld [vmem:[%s7811_s3 + $0x17] ss:$0 sm:$0xff]  ;;  %v4938_v29 = vld [vmem:[%s7811_s3 + $0x16] ss:$0 sm:$0xff]  ;;  %v8031_v42 = vld [vmem:[#allocation17_spill] sm:$0xff] }
 0x488   : > { %v4982_v12 = vld [vmem:[%s5568_s13 + $0x40] sm:$0xff] }
 0x489   : > { %v1866_v33 = vadd.f32 %v1865_v20, %v1864_v41  ;;  %v4942_v20 = vld [vmem:[%s7811_s3 + $0x18] ss:$0 sm:$0xff] }
 0x48a   : > { %3535 = vperm.xlu0 %4612, %v4923_v26   ;;  %v2541_v26 = vsel %vm537_vm1, %v2509_v60, 0.0 }
 0x48b   : > { %v2542_v6 = vadd.f32 %v2541_v26, %v2540_v55  ;;  %v1868_v63 = vadd.f32 %v1867_v7, %v1866_v33  ;;  %v509_v55 = vmul.f32 %v7134_v38, %v8028_v27  ;;  %v4943_v7 = vld [vmem:[%s7811_s3 + $0x2b] ss:$0 sm:$0xff]  ;;  %v514_v33 = vmul.f32 %v7127_v23, %v8031_v42  ;;  %v8045_v42 = vld [vmem:[#allocation23_spill] sm:$0xff] }
 0x48c   : > { %v8042_v27 = vld [vmem:[#allocation18_spill] sm:$0xff] }
 0x48d   : > { %v2544_v30 = vadd.f32 %v2543_v51, %v2542_v6  ;;  %v545_v26 = vsel %vm537_vm1, %v509_v55, 0.0  ;;  %v546_v51 = vsel %vm537_vm1, %v510_v62, 0.0  ;;  %v518_v55 = vmul.f32 %v7127_v23, %v8042_v27 }
 0x48e   : > { %3847 = vperm.xlu1 %4613, %v4924_v49   ;;  %3571 = vperm.xlu2 %4614, %v4925_v1   ;;  %v2545_v49 = vsel %vm537_vm1, %v2511_v54, 0.0  ;;  %v1918_v1 = vadd.f32 %v1868_v63, %v1592_v2  ;;  %v8032_v54 = vld [vmem:[#allocation29_spill] sm:$0xff]  ;;  %v8033_v63 = vld [vmem:[#allocation30_spill] sm:$0xff]  ;;  %v517_v62 = vmul.f32 %v7134_v38, %v8043_v10 }
 0x48f   : > { %v2546_v39 = vadd.f32 %v2545_v49, %v2544_v30  ;;  %v829_v47 = vmul.f32 %v4981_v48, %v8032_v54  ;;  %v828_v30 = vmul.f32 %v4982_v12, %v8033_v63  ;;  %v8035_v49 = vld [vmem:[#allocation36_spill] sm:$0xff]  ;;  %v8047_v63 = vld [vmem:[#allocation35_spill] sm:$0xff] }
 0x490   : > { %v2271_v13 = vadd.f32 %v8027_v35, %v1918_v1  ;;  %v837_v1 = vmul.f32 %v4981_v48, %v8035_v49  ;;  %v8036_v35 = vld [vmem:[#allocation15_spill] sm:$0xff]  ;;  %v8046_v54 = vld [vmem:[#allocation32_spill] sm:$0xff] }
 0x492   : > { %3523 = vperm.xlu0 %4612, %v4926_v8   ;;  %v2596_v57 = vadd.f32 %v2546_v39, %v2271_v13  ;;  %v4940_v8 = vld [vmem:[%s7811_s3 + $0x28] ss:$0 sm:$0xff]  ;;  %v511_v13 = vmul.f32 %v7149_v21, %v8036_v35 }
 0x493   : > { %v8048_v35 = vld [vmem:[#allocation14_spill] sm:$0xff] }
 0x494   : > { %v7233_v31 = vpop.permute.xlu2 %3252  ;;  %v2921_v45 = vadd.f32 %v6596_v34, %v2596_v57  ;;  %v8037_v57 = vld [vmem:[#allocation24_spill] sm:$0xff] }
 0x496   : > { %3559 = vperm.xlu1 %4613, %v4927_v15   ;;  %3575 = vperm.xlu2 %4614, %v4928_v50   ;;  %v8030_v15 = vld [vmem:[#allocation7_spill] sm:$0xff] }
 0x497   : > { %v513_v50 = vmul.f32 %v7134_v38, %v8030_v15  ;;  %v548_v15 = vsel %vm537_vm1, %v511_v13, 0.0  ;;  %v4984_v38 = vld [vmem:[%s5568_s13 + $0x70] sm:$0xff]  ;;  %v512_v13 = vmul.f32 %v7182_v9, %v8048_v35 }
 0x49a   : > { %3527 = vperm.xlu0 %4612, %v4929_v19   ;;  %v8034_v19 = vld [vmem:[#allocation31_spill] sm:$0xff] }
 0x49b   : > { %v832_v2 = vmul.f32 %v4982_v12, %v8034_v19  ;;  %v4947_v19 = vld [vmem:[%s7811_s3 + $0x20] ss:$0 sm:$0xff] }
 0x49c   : > { %v7248_v22 = vpop.permute.xlu2 %3311 }
 0x49e   : > { %3855 = vperm.xlu1 %4613, %v4930_v5   ;;  %3551 = vperm.xlu2 %4614, %v4931_v32   ;;  %v547_v32 = vadd.f32 %v546_v51, %v545_v26  ;;  %v870_v26 = vsel %vm537_vm1, %v832_v2, 0.0  ;;  %v878_v51 = vsel %vm537_vm1, %v837_v1, 0.0 }
 0x4a0   : > { %v3251_v16 = vpop.permute.xlu1 %3250 }
 0x4a1   : > { %v3274_v28 = vadd.f32 %v3251_v16, %v2921_v45  ;;  %v552_v45 = vsel %vm537_vm1, %v513_v50, 0.0  ;;  %v8038_v16 = vld [vmem:[#allocation8_spill] sm:$0xff] }
 0x4a2   : > { %3547 = vperm.xlu0 %4612, %v4932_v59   ;;  %v833_v59 = vmul.f32 %v4981_v48, %v8037_v57  ;;  %v8044_v50 = vld [vmem:[#allocation16_spill] sm:$0xff]  ;;  %v560_v57 = vsel %vm537_vm1, %v518_v55, 0.0 }
 0x4a4   : > { %v871_v23 = vsel %vm537_vm1, %v833_v59, 0.0  ;;  %v559_v59 = vsel %vm537_vm1, %v517_v62, 0.0 }
 0x4a5   : > { %v872_v49 = vadd.f32 %v871_v23, %v870_v26  ;;  %v4986_v23 = vld [vmem:[%s5568_s13 + $0x80] sm:$0xff] }
 0x4a6   : > { %3667 = vperm.xlu1 %4613, %v4933_v58   ;;  %3555 = vperm.xlu2 %4614, %v4934_v17   ;;  %v8039_v58 = vld [vmem:[#allocation25_spill] sm:$0xff] }
 0x4a7   : > { %v836_v17 = vmul.f32 %v4982_v12, %v8039_v58 }
 0x4a8   : > { %v3308_v34 = vpop.permute.xlu1 %3307 }
 0x4a9   : > { %v7250_v0 = vadd.f32 %v3308_v34, %v3274_v28  ;;  %v516_v28 = vmul.f32 %v7182_v9, %v8038_v16  ;;  %v8040_v34 = vld [vmem:[#allocation34_spill] sm:$0xff]  ;;  %v877_v48 = vsel %vm537_vm1, %v836_v17, 0.0  ;;  %v8049_v16 = vld [vmem:[#allocation33_spill] sm:$0xff] }
 0x4aa   : > { %3583 = vperm.xlu0 %4612, %v4935_v18   ;;  %v4983_v18 = vld [vmem:[%s5568_s13 + $0x60] sm:$0xff]  ;;  %v879_v1 = vadd.f32 %v878_v51, %v877_v48  ;;  %v835_v58 = vmul.f32 %v4984_v38, %v8049_v16  ;;  %v8053_v48 = vld [vmem:[#allocation60_spill] sm:$0xff] }
 0x4ae   : > { %3631 = vperm.xlu1 %4613, %v4936_v4   ;;  %3591 = vperm.xlu2 %4614, %v4937_v40   ;;  %v834_v4 = vmul.f32 %v4983_v18, %v8040_v34  ;;  %v4945_v40 = vld [vmem:[%s7811_s3 + $0x2f] ss:$0 sm:$0xff]  ;;  %v549_v34 = vadd.f32 %v548_v15, %v547_v32  ;;  %v4948_v32 = vld [vmem:[%s7811_s3 + $0x1b] ss:$0 sm:$0xff]  ;;  %v557_v15 = vsel %vm537_vm1, %v516_v28, 0.0 }
 0x4b0   : > { %v7261_v60 = vpop.permute.xlu1 %3315  ;;  %v7263_v56 = vpop.permute.xlu2 %3258  ;;  %v873_v12 = vsel %vm537_vm1, %v834_v4, 0.0 }
 0x4b2   : > { %3587 = vperm.xlu0 %4612, %v4938_v29   ;;  %v4946_v29 = vld [vmem:[%s7811_s3 + $0x2c] ss:$0 sm:$0xff] }
 0x4b6   : > { %3679 = vperm.xlu1 %4613, %v4939_v25   ;;  %3659 = vperm.xlu2 %4614, %v4940_v8   ;;  %v8041_v25 = vld [vmem:[#allocation11_spill] sm:$0xff] }
 0x4b7   : > { %v519_v8 = vmul.f32 %v7149_v21, %v8041_v25 }
 0x4b8   : > { %v7274_v36 = vpop.permute.xlu1 %3499  ;;  %v7276_v41 = vpop.permute.xlu2 %3503 }
 0x4ba   : > { %3851 = vperm.xlu0 %4612, %v4941_v52   ;;  %v553_v52 = vsel %vm537_vm1, %v514_v33, 0.0  ;;  %v830_v33 = vmul.f32 %v4983_v18, %v8045_v42  ;;  %v8052_v42 = vld [vmem:[#allocation57_spill] sm:$0xff] }
 0x4bc   : > { %v7297_v6 = vpop.permute.xlu0 %3254 }
 0x4be   : > { %3595 = vperm.xlu1 %4613, %v4942_v20   ;;  %3671 = vperm.xlu2 %4614, %v4943_v7   ;;  %v864_v20 = vsel %vm537_vm1, %v829_v47, 0.0  ;;  %v863_v7 = vsel %vm537_vm1, %v828_v30, 0.0  ;;  %v831_v47 = vmul.f32 %v4984_v38, %v8046_v54  ;;  %v838_v30 = vmul.f32 %v4983_v18, %v8047_v63 }
 0x4bf   : > { %v865_v2 = vadd.f32 %v864_v20, %v863_v7  ;;  %v4949_v20 = vld [vmem:[%s7811_s3 + $0x23] ss:$0 sm:$0xff]  ;;  %v562_v54 = vsel %vm537_vm1, %v519_v8, 0.0 }
 0x4c0   : > { %v7305_v39 = vpop.permute.xlu1 %3323  ;;  %v7307_v5 = vpop.permute.xlu2 %3507  ;;  %v868_v55 = vsel %vm537_vm1, %v831_v47, 0.0  ;;  %v880_v10 = vsel %vm537_vm1, %v838_v30, 0.0  ;;  %v550_v47 = vsel %vm537_vm1, %v512_v13, 0.0 }
 0x4c1   : > { %v881_v51 = vadd.f32 %v880_v10, %v879_v1  ;;  %v4950_v1 = vld [vmem:[%s7811_s3 + $0x22] ss:$0 sm:$0xff]  ;;  %v551_v13 = vadd.f32 %v550_v47, %v549_v34  ;;  %v8057_v10 = vld [vmem:[#allocation59_spill] sm:$0xff] }
 0x4c2   : > { %3663 = vperm.xlu0 %4612, %v4944_v24   ;;  %v515_v24 = vmul.f32 %v7149_v21, %v8044_v50  ;;  %v554_v21 = vadd.f32 %v553_v52, %v552_v45  ;;  %v866_v45 = vsel %vm537_vm1, %v830_v33, 0.0  ;;  %v8051_v52 = vld [vmem:[#allocation28_spill] sm:$0xff]  ;;  %v875_v50 = vsel %vm537_vm1, %v835_v58, 0.0  ;;  %v8061_v47 = vld [vmem:[#allocation53_spill] sm:$0xff] }
 0x4c3   : > { %v839_v27 = vmul.f32 %v4984_v38, %v8051_v52  ;;  %v867_v26 = vadd.f32 %v866_v45, %v865_v2  ;;  %v1512_v38 = vmul.f32 %v4986_v23, %v8053_v48  ;;  %v8055_v2 = vld [vmem:[#allocation54_spill] sm:$0xff] }
 0x4c4   : > { %v555_v4 = vsel %vm537_vm1, %v515_v24, 0.0  ;;  %v7364_v62 = vpop.permute.xlu0 %3256  ;;  %v4985_v24 = vld [vmem:[%s5568_s13 + $0x90] sm:$0xff] }
 0x4c5   : > { %v556_v7 = vadd.f32 %v555_v4, %v554_v21  ;;  %v1509_v33 = vmul.f32 %v4985_v24, %v8052_v42  ;;  %v8054_v21 = vld [vmem:[#allocation47_spill] sm:$0xff]  ;;  %v1550_v16 = vsel %vm537_vm1, %v1512_v38, 0.0 }
 0x4c6   : > { %3687 = vperm.xlu1 %4613, %v4945_v40   ;;  %3675 = vperm.xlu2 %4614, %v4946_v29   ;;  %v874_v40 = vadd.f32 %v873_v12, %v872_v49  ;;  %v8050_v29 = vld [vmem:[#allocation20_spill] sm:$0xff]  ;;  %v869_v12 = vadd.f32 %v868_v55, %v867_v26  ;;  %v1513_v28 = vmul.f32 %v4985_v24, %v8054_v21  ;;  %v8060_v38 = vld [vmem:[#allocation39_spill] sm:$0xff]  ;;  %v8063_v21 = vld [vmem:[#allocation89_spill] sm:$0xff] }
 0x4c7   : > { %v520_v25 = vmul.f32 %v7182_v9, %v8050_v29  ;;  %v561_v9 = vadd.f32 %v560_v57, %v559_v59  ;;  %v1508_v49 = vmul.f32 %v4986_v23, %v8055_v2  ;;  %v558_v35 = vadd.f32 %v557_v15, %v556_v7  ;;  %v4987_v29 = vld [vmem:[%s5568_s13 + $0xa0] sm:$0xff]  ;;  %v8058_v7 = vld [vmem:[#allocation63_spill] sm:$0xff]  ;;  %v4951_v26 = vld [vmem:[%s7811_s3 + $0x1c] ss:$0 sm:$0xff] }
 0x4c8   : > { %v7353_v17 = vpop.permute.xlu1 %3327  ;;  %v7355_v18 = vpop.permute.xlu2 %3511  ;;  %v876_v63 = vadd.f32 %v875_v50, %v874_v40  ;;  %v1544_v59 = vsel %vm537_vm1, %v1509_v33, 0.0  ;;  %v913_v40 = vadd.f32 %v869_v12, %v551_v13  ;;  %v1551_v55 = vsel %vm537_vm1, %v1513_v28, 0.0  ;;  %v8059_v50 = vld [vmem:[#allocation50_spill] sm:$0xff]  ;;  %v8066_v13 = vld [vmem:[#allocation65_spill] sm:$0xff] }
 0x4c9   : > { %v564_v30 = vsel %vm537_vm1, %v520_v25, 0.0  ;;  %v563_v8 = vadd.f32 %v562_v54, %v561_v9  ;;  %v8056_v25 = vld [vmem:[#allocation44_spill] sm:$0xff]  ;;  %v1543_v34 = vsel %vm537_vm1, %v1508_v49, 0.0  ;;  %v1516_v42 = vmul.f32 %v4986_v23, %v8059_v50  ;;  %v8064_v49 = vld [vmem:[#allocation46_spill] sm:$0xff] }
 0x4ca   : > { %3627 = vperm.xlu0 %4612, %v4947_v19   ;;  %v882_v19 = vsel %vm537_vm1, %v839_v27, 0.0  ;;  %v914_v45 = vadd.f32 %v876_v63, %v558_v35  ;;  %v1510_v52 = vmul.f32 %v4987_v29, %v8056_v25  ;;  %v1545_v33 = vadd.f32 %v1544_v59, %v1543_v34  ;;  %v8062_v63 = vld [vmem:[#allocation62_spill] sm:$0xff]  ;;  %v8065_v23 = vld [vmem:[#allocation56_spill] sm:$0xff]  ;;  %v8068_v25 = vld [vmem:[#allocation85_spill] sm:$0xff] }
 0x4cb   : > { %v883_v57 = vadd.f32 %v882_v19, %v881_v51  ;;  %v565_v4 = vadd.f32 %v564_v30, %v563_v8  ;;  %v4952_v51 = vld [vmem:[%s7811_s3 + $0x19] ss:$0 sm:$0xff]  ;;  %v1552_v48 = vadd.f32 %v1551_v55, %v1550_v16  ;;  %v1517_v30 = vmul.f32 %v4985_v24, %v8062_v63  ;;  %v4989_v19 = vld [vmem:[%s5568_s13 + $0xd0] sm:$0xff]  ;;  %v8070_v50 = vld [vmem:[#allocation86_spill] sm:$0xff] }
 0x4cc   : > { %v1268_v54 = vadd.f32 %v8060_v38, %v914_v45  ;;  %v1839_v28 = vmul.f32 %v4989_v19, %v8063_v21  ;;  %v7414_v2 = vpop.permute.xlu0 %3319  ;;  %v1546_v8 = vsel %vm537_vm1, %v1510_v52, 0.0  ;;  %v8067_v24 = vld [vmem:[#allocation83_spill] sm:$0xff]  ;;  %v4990_v45 = vld [vmem:[%s5568_s13 + $0xc0] sm:$0xff]  ;;  %v1557_v52 = vsel %vm537_vm1, %v1516_v42, 0.0 }
 0x4cd   : > { %v7406_v15 = vadd.f32 %v883_v57, %v565_v4  ;;  %v1518_v57 = vmul.f32 %v4987_v29, %v8066_v13  ;;  %v1835_v4 = vmul.f32 %v4989_v19, %v8067_v24  ;;  %v1838_v55 = vmul.f32 %v4990_v45, %v8068_v25  ;;  %v8074_v25 = vld [vmem:[#allocation92_spill] sm:$0xff] }
 0x4ce   : > { %3607 = vperm.xlu1 %4613, %v4948_v32   ;;  %3639 = vperm.xlu2 %4614, %v4949_v20   ;;  %v1514_v32 = vmul.f32 %v4987_v29, %v8057_v10  ;;  %v4988_v20 = vld [vmem:[%s5568_s13 + $0xb0] sm:$0xff]  ;;  %v1547_v34 = vadd.f32 %v1546_v8, %v1545_v33  ;;  %v8073_v8 = vld [vmem:[#allocation80_spill] sm:$0xff] }
 0x4cf   : > { %v1515_v9 = vmul.f32 %v4988_v20, %v8058_v7  ;;  %v1519_v12 = vmul.f32 %v4988_v20, %v8061_v47  ;;  %v1511_v35 = vmul.f32 %v4988_v20, %v8065_v23  ;;  %v8069_v10 = vld [vmem:[#allocation71_spill] sm:$0xff]  ;;  %v1558_v7 = vsel %vm537_vm1, %v1517_v30, 0.0 }
 0x4d0   : > { %v7389_v58 = vpop.permute.xlu1 %3331  ;;  %v7393_v27 = vpop.permute.xlu2 %3515  ;;  %v1553_v59 = vsel %vm537_vm1, %v1514_v32, 0.0  ;;  %v1834_v32 = vmul.f32 %v4990_v45, %v8069_v10  ;;  %v1560_v42 = vsel %vm537_vm1, %v1518_v57, 0.0  ;;  %v4992_v33 = vld [vmem:[%s5568_s13 + $0xf0] sm:$0xff]  ;;  %v1843_v23 = vmul.f32 %v4989_v19, %v8073_v8 }
 0x4d1   : > { %v1555_v16 = vsel %vm537_vm1, %v1515_v9, 0.0  ;;  %v1554_v29 = vadd.f32 %v1553_v59, %v1552_v48  ;;  %v7433_v20 = vsel %vm537_vm1, %v1519_v12, 0.0  ;;  %v4991_v9 = vld [vmem:[%s5568_s13 + $0xe0] sm:$0xff]  ;;  %v1548_v47 = vsel %vm537_vm1, %v1511_v35, 0.0  ;;  %v8071_v48 = vld [vmem:[#allocation74_spill] sm:$0xff]  ;;  %v8076_v10 = vld [vmem:[#allocation127_spill] sm:$0xff] }
 0x4d2   : > { %3635 = vperm.xlu0 %4612, %v4950_v1   ;;  %v7417_v1 = vadd.f32 %v8064_v49, %v913_v40  ;;  %v4953_v40 = vld [vmem:[%s7811_s3 + $0x2e] ss:$0 sm:$0xff]  ;;  %v1837_v21 = vmul.f32 %v4992_v33, %v8071_v48  ;;  %v8072_v49 = vld [vmem:[#allocation77_spill] sm:$0xff]  ;;  %v1870_v30 = vsel %vm537_vm1, %v1835_v4, 0.0  ;;  %v1876_v13 = vsel %vm537_vm1, %v1838_v55, 0.0 }
 0x4d3   : > { %v1556_v63 = vadd.f32 %v1555_v16, %v1554_v29  ;;  %v1840_v12 = vmul.f32 %v4991_v9, %v8072_v49  ;;  %v4955_v35 = vld [vmem:[%s7811_s3 + $0x1a] ss:$0 sm:$0xff]  ;;  %v1559_v57 = vadd.f32 %v1558_v7, %v1557_v52  ;;  %v1869_v59 = vsel %vm537_vm1, %v1834_v32, 0.0  ;;  %v8078_v49 = vld [vmem:[#allocation122_spill] sm:$0xff] }
 0x4d4   : > { %v7456_v24 = vadd.f32 %v1548_v47, %v1547_v34  ;;  %v1842_v55 = vmul.f32 %v4990_v45, %v8074_v25  ;;  %v1871_v7 = vadd.f32 %v1870_v30, %v1869_v59  ;;  %v1874_v47 = vsel %vm537_vm1, %v1837_v21, 0.0 }
 0x4d5   : > { %v1561_v52 = vadd.f32 %v1560_v42, %v1559_v57  ;;  %v1594_v32 = vadd.f32 %v1556_v63, %v1268_v54  ;;  %v1884_v45 = vsel %vm537_vm1, %v1843_v23, 0.0  ;;  %v2517_v8 = vmul.f32 %v7027_v3, %v8078_v49  ;;  %v4956_v42 = vld [vmem:[%s7811_s3 + $0x24] ss:$0 sm:$0xff]  ;;  %v8079_v54 = vld [vmem:[#allocation88_spill] sm:$0xff]  ;;  %v8080_v57 = vld [vmem:[#allocation91_spill] sm:$0xff] }
 0x4d6   : > { %3611 = vperm.xlu1 %4613, %v4951_v26   ;;  %3599 = vperm.xlu2 %4614, %v4952_v51   ;;  %v1836_v26 = vmul.f32 %v4991_v9, %v8070_v50  ;;  %v1877_v51 = vsel %vm537_vm1, %v1839_v28, 0.0  ;;  %v4954_v28 = vld [vmem:[%s7811_s3 + $0x1e] ss:$0 sm:$0xff]  ;;  %v2516_v50 = vmul.f32 %v7040_v43, %v8076_v10  ;;  %v1841_v63 = vmul.f32 %v4992_v33, %v8079_v54  ;;  %v8081_v23 = vld [vmem:[#allocation125_spill] sm:$0xff]  ;;  %v8088_v49 = vld [vmem:[#allocation131_spill] sm:$0xff] }
 0x4d7   : > { %v1878_v16 = vadd.f32 %v1877_v51, %v1876_v13  ;;  %v8077_v51 = vld [vmem:[#allocation111_spill] sm:$0xff]  ;;  %v1844_v59 = vmul.f32 %v4991_v9, %v8080_v57  ;;  %v1883_v21 = vsel %vm537_vm1, %v1842_v55, 0.0  ;;  %v2520_v25 = vmul.f32 %v7040_v43, %v8081_v23  ;;  %v8086_v55 = vld [vmem:[#allocation120_spill] sm:$0xff] }
 0x4d8   : > { %v7439_v38 = vpop.permute.xlu1 %3519  ;;  %v7458_v19 = vpop.permute.xlu2 %3531  ;;  %v1872_v4 = vsel %vm537_vm1, %v1836_v26, 0.0  ;;  %v2512_v34 = vmul.f32 %v7040_v43, %v8077_v51  ;;  %v1879_v26 = vsel %vm537_vm1, %v1840_v12, 0.0  ;;  %v8085_v51 = vld [vmem:[#allocation119_spill] sm:$0xff]  ;;  %v8087_v43 = vld [vmem:[#allocation129_spill] sm:$0xff]  ;;  %v2522_v54 = vmul.f32 %v7045_v46, %v8088_v49  ;;  %v8089_v49 = vld [vmem:[#allocation114_spill] sm:$0xff] }
 0x4d9   : > { %v1873_v30 = vadd.f32 %v1872_v4, %v1871_v7  ;;  %v1880_v13 = vadd.f32 %v1879_v26, %v1878_v16  ;;  %v8084_v7 = vld [vmem:[#allocation117_spill] sm:$0xff]  ;;  %v2514_v9 = vmul.f32 %v7045_v46, %v8085_v51  ;;  %v2555_v26 = vsel %vm537_vm1, %v2517_v8, 0.0 }
 0x4da   : > { %3683 = vperm.xlu0 %4612, %v4953_v40   ;;  %v8075_v40 = vld [vmem:[#allocation124_spill] sm:$0xff]  ;;  %v2547_v4 = vsel %vm537_vm1, %v2512_v34, 0.0  ;;  %v2518_v16 = vmul.f32 %v7045_v46, %v8084_v7  ;;  %v4958_v34 = vld [vmem:[%s7811_s3 + $0x26] ss:$0 sm:$0xff]  ;;  %v1881_v57 = vsel %vm537_vm1, %v1841_v63, 0.0  ;;  %v2561_v46 = vsel %vm537_vm1, %v2520_v25, 0.0 }
 0x4db   : > { %v2513_v29 = vmul.f32 %v7027_v3, %v8075_v40  ;;  %v8083_v40 = vld [vmem:[#allocation94_spill] sm:$0xff]  ;;  %v1875_v7 = vadd.f32 %v1874_v47, %v1873_v30  ;;  %v1882_v51 = vadd.f32 %v1881_v57, %v1880_v13  ;;  %v2564_v47 = vsel %vm537_vm1, %v2522_v54, 0.0  ;;  %v4959_v30 = vld [vmem:[%s7811_s3 + $0x25] ss:$0 sm:$0xff]  ;;  %v4960_v57 = vld [vmem:[%s7811_s3 + $0x27] ss:$0 sm:$0xff] }
 0x4dc   : > { %v7466_v48 = vpop.permute.xlu0 %3260  ;;  %v1845_v10 = vmul.f32 %v4992_v33, %v8083_v40  ;;  %v4957_v33 = vld [vmem:[%s7812_s4 + $0x3] ss:$0 sm:$0xff]  ;;  %v1563_v40 = vadd.f32 %v7433_v20, %v1561_v52  ;;  %v2557_v63 = vsel %vm537_vm1, %v2518_v16, 0.0  ;;  %v8091_v16 = vld [vmem:[#allocation128_spill] sm:$0xff] }
 0x4dd   : > { %v2548_v12 = vsel %vm537_vm1, %v2513_v29, 0.0  ;;  %v2521_v29 = vmul.f32 %v7027_v3, %v8086_v55  ;;  %v1885_v3 = vadd.f32 %v1884_v45, %v1883_v21  ;;  %v1886_v55 = vsel %vm537_vm1, %v1844_v59, 0.0 }
 0x4de   : > { %3619 = vperm.xlu1 %4613, %v4954_v28   ;;  %3603 = vperm.xlu2 %4614, %v4955_v35   ;;  %v2554_v28 = vsel %vm537_vm1, %v2516_v50, 0.0  ;;  %v2519_v50 = vmul.f32 %v7083_v61, %v8087_v43  ;;  %v2549_v23 = vadd.f32 %v2548_v12, %v2547_v4  ;;  %v1888_v43 = vsel %vm537_vm1, %v1845_v10, 0.0 }
 0x4df   : > { %v2556_v8 = vadd.f32 %v2555_v26, %v2554_v28  ;;  %v2550_v21 = vsel %vm537_vm1, %v2514_v9, 0.0  ;;  %v2562_v20 = vsel %vm537_vm1, %v2521_v29, 0.0  ;;  %v1887_v13 = vadd.f32 %v1886_v55, %v1885_v3  ;;  %v8090_v28 = vld [vmem:[#allocation45_spill] sm:$0xff] }
 0x4e0   : > { %v7485_v35 = vpop.permute.xlu1 %3563  ;;  %v7516_v45 = vpop.permute.xlu2 %3567  ;;  %v2559_v52 = vsel %vm537_vm1, %v2519_v50, 0.0  ;;  %v2551_v59 = vadd.f32 %v2550_v21, %v2549_v23  ;;  %v2563_v12 = vadd.f32 %v2562_v20, %v2561_v46  ;;  %v1269_v10 = vadd.f32 %v8090_v28, %v7406_v15  ;;  %v8092_v23 = vld [vmem:[#allocation108_spill] sm:$0xff] }
 0x4e1   : > { %8082 = vst [vmem:[#allocation132_spill] sm:$0xff] %v7485_v35  ;;  %v2515_v35 = vmul.f32 %v7083_v61, %v8089_v49  ;;  %v2558_v25 = vadd.f32 %v2557_v63, %v2556_v8  ;;  %v1593_v4 = vadd.f32 %v7456_v24, %v7417_v1  ;;  %v2523_v9 = vmul.f32 %v7083_v61, %v8091_v16  ;;  %v8094_v49 = vld [vmem:[#allocation106_spill] sm:$0xff]  ;;  %v8095_v63 = vld [vmem:[#allocation140_spill] sm:$0xff] }
 0x4e2   : > { %3643 = vperm.xlu0 %4612, %v4956_v42   ;;  %v1889_v26 = vadd.f32 %v1888_v43, %v1887_v13  ;;  %v1920_v50 = vadd.f32 %v1882_v51, %v1594_v32  ;;  %v1595_v15 = vadd.f32 %v1563_v40, %v1269_v10  ;;  %v8093_v32 = vld [vmem:[#allocation112_spill] sm:$0xff] }
 0x4e3   : > { %v2560_v54 = vadd.f32 %v2559_v52, %v2558_v25  ;;  %v1919_v3 = vadd.f32 %v1875_v7, %v1593_v4  ;;  %v2566_v61 = vsel %vm537_vm1, %v2523_v9, 0.0  ;;  %v7559_v25 = vld [vmem:[%s7814_s6] sm:$0xff] }
 0x4e4   : > { %v7509_v42 = vpop.permute.xlu0 %3262  ;;  %v2273_v1 = vadd.f32 %v8092_v23, %v1920_v50  ;;  %v1921_v46 = vadd.f32 %v1889_v26, %v1595_v15  ;;  %3897 = vmatpush.msra.mxu0 %v7559_v25  ;;  %3952 = vmatpush.msra.mxu2 %v7559_v25  ;;  %v7576_v50 = vmax.f32 %v7250_v0, 0.0 }
 0x4e5   : > { %v2272_v51 = vadd.f32 %v8093_v32, %v1919_v3  ;;  %v3280_v15 = vadd.f32 %v7509_v42, %v6976_v14 }
 0x4e6   : > { %3859 = vperm.xlu1 %4613, %v4957_v33   ;;  %3651 = vperm.xlu2 %4614, %v4958_v34   ;;  %v2565_v33 = vadd.f32 %v2564_v47, %v2563_v12  ;;  %v2552_v34 = vsel %vm537_vm1, %v2515_v35, 0.0  ;;  %v2598_v55 = vadd.f32 %v2560_v54, %v2273_v1  ;;  %v4961_v35 = vld [vmem:[%s7812_s4 + $0x5] ss:$0 sm:$0xff]  ;;  %v2274_v40 = vadd.f32 %v8094_v49, %v1921_v46  ;;  %v8096_v47 = vld [vmem:[#allocation139_spill] sm:$0xff]  ;;  %v4962_v12 = vld [vmem:[%s7812_s4 + $0x4] ss:$0 sm:$0xff] }
 0x4e7   : > { %v2553_v24 = vadd.f32 %v2552_v34, %v2551_v59  ;;  %4001 = vmatpush.msrb.mxu0 %v7559_v25 }
 0x4e8   : > { %v7531_v29 = vpop.permute.xlu1 %3539  ;;  %v2567_v43 = vadd.f32 %v2566_v61, %v2565_v33  ;;  %v2923_v21 = vadd.f32 %v8095_v63, %v2598_v55  ;;  %v7547_v20 = vpop.permute.xlu2 %3571  ;;  %v3690_v33 = vmul.f32 %v7274_v36, %v7576_v50  ;;  %v4964_v36 = vld [vmem:[%s7811_s3 + $0x1f] ss:$0 sm:$0xff] }
 0x4e9   : > { %v2597_v7 = vadd.f32 %v2553_v24, %v2272_v51 }
 0x4ea   : > { %3647 = vperm.xlu0 %4612, %v4959_v30   ;;  %v3276_v13 = vadd.f32 %v7297_v6, %v2923_v21  ;;  %v2599_v59 = vadd.f32 %v2567_v43, %v2274_v40 }
 0x4eb   : > { %v2922_v30 = vadd.f32 %v8096_v47, %v2597_v7 }
 0x4ec   : > { %v7539_v8 = vpop.permute.xlu0 %3264  ;;  %v2924_v10 = vadd.f32 %v6840_v44, %v2599_v59  ;;  %v3340_v16 = vadd.f32 %v7261_v60, %v3276_v13 }
 0x4ed   : > { %v3275_v28 = vadd.f32 %v7233_v31, %v2922_v30  ;;  %v4963_v31 = vld [vmem:[%s7811_s3 + $0x1d] ss:$0 sm:$0xff]  ;;  %v3281_v51 = vadd.f32 %v7539_v8, %v6987_v11 }
 0x4ee   : > { %3655 = vperm.xlu2 %4614, %v4960_v57   ;;  %v3277_v9 = vadd.f32 %v7364_v62, %v2924_v10  ;;  %v7578_v54 = vmax.f32 %v3340_v16, 0.0  ;;  %v3278_v57 = vadd.f32 %v7263_v56, %v6897_v53 }
 0x4ef   : > { %v3339_v4 = vadd.f32 %v7248_v22, %v3275_v28  ;;  %v3279_v22 = vadd.f32 %v7466_v48, %v6941_v37 }
 0x4f0   : > { %v7549_v52 = vpop.permute.xlu1 %3543  ;;  %v3341_v44 = vadd.f32 %v7414_v2, %v3277_v9  ;;  %v7582_v60 = vpop.permute.xlu2 %3575  ;;  %v3692_v37 = vmul.f32 %v7307_v5, %v7578_v54  ;;  %v3342_v23 = vadd.f32 %v7305_v39, %v3278_v57  ;;  %v3700_v16 = vmul.f32 %v7531_v29, %v7578_v54 }
 0x4f1   : > { %v7573_v26 = vmax.f32 %v3339_v4, 0.0  ;;  %v3343_v48 = vadd.f32 %v7353_v17, %v3279_v22  ;;  %v3344_v17 = vadd.f32 %v7389_v58, %v3280_v15 }
 0x4f2   : > { %3867 = vperm.xlu0 %4612, %v4961_v35   ;;  %v7590_v34 = vmax.f32 %v3341_v44, 0.0  ;;  %v3741_v56 = vsel %vm537_vm1, %v3692_v37, 0.0  ;;  %v7611_v42 = vmax.f32 %v3342_v23, 0.0  ;;  %v8097_v44 = vld [vmem:[#allocation132_spill] sm:$0xff]  ;;  %v3708_v37 = vmul.f32 %v7547_v20, %v7578_v54 }
 0x4f3   : > { %v3691_v2 = vmul.f32 %v7276_v41, %v7573_v26  ;;  %v3738_v41 = vsel %vm537_vm1, %v3690_v33, 0.0  ;;  %v7608_v5 = vmax.f32 %v3343_v48, 0.0  ;;  %v3706_v22 = vmul.f32 %v8097_v44, %v7576_v50 }
 0x4f4   : > { %v3336_v6 = vpop.permute.xlu0 %3335  ;;  %v3693_v53 = vmul.f32 %v7355_v18, %v7590_v34  ;;  %v3694_v39 = vmul.f32 %v7393_v27, %v7611_v42  ;;  %v7616_v18 = vmax.f32 %v3344_v17, 0.0 }
 0x4f5   : > { %v3739_v3 = vsel %vm537_vm1, %v3691_v2, 0.0  ;;  %v3695_v58 = vmul.f32 %v7439_v38, %v7608_v5  ;;  %v3345_v43 = vadd.f32 %v3336_v6, %v3281_v51  ;;  %v3756_v2 = vsel %vm537_vm1, %v3700_v16, 0.0 }
 0x4f6   : > { %3863 = vperm.xlu2 %4614, %v4962_v12   ;;  %v3740_v14 = vadd.f32 %v3739_v3, %v3738_v41  ;;  %v3743_v1 = vsel %vm537_vm1, %v3693_v53, 0.0  ;;  %v3745_v49 = vsel %vm537_vm1, %v3694_v39, 0.0  ;;  %v3698_v12 = vmul.f32 %v7458_v19, %v7576_v50 }
 0x4f7   : > { %v3747_v40 = vsel %vm537_vm1, %v3695_v58, 0.0  ;;  %v7625_v63 = vmax.f32 %v3345_v43, 0.0  ;;  %v3707_v19 = vmul.f32 %v7516_v45, %v7573_v26  ;;  %v3768_v15 = vsel %vm537_vm1, %v3706_v22, 0.0 }
 0x4f8   : > { %v7584_v62 = vpop.permute.xlu1 %3579  ;;  %v3552_v24 = vpop.permute.xlu2 %3551  ;;  %v3742_v61 = vadd.f32 %v3741_v56, %v3740_v14  ;;  %v3753_v4 = vsel %vm537_vm1, %v3698_v12, 0.0  ;;  %v3709_v45 = vmul.f32 %v7582_v60, %v7590_v34 }
 0x4f9   : > { %v3710_v53 = vmul.f32 %v7584_v62, %v7611_v42  ;;  %v3703_v17 = vmul.f32 %v3552_v24, %v7608_v5 }
 0x4fa   : > { %3615 = vperm.xlu0 %4612, %v4963_v31   ;;  %v3744_v55 = vadd.f32 %v3743_v1, %v3742_v61  ;;  %v3773_v14 = vsel %vm537_vm1, %v3709_v45, 0.0 }
 0x4fb   : > { %v3762_v51 = vsel %vm537_vm1, %v3703_v17, 0.0 }
 0x4fc   : > { %v3536_v0 = vpop.permute.xlu0 %3535  ;;  %v3746_v7 = vadd.f32 %v3745_v49, %v3744_v55 }
 0x4fd   : > { %v3699_v38 = vmul.f32 %v3536_v0, %v7573_v26  ;;  %v3701_v0 = vmul.f32 %v7549_v52, %v7590_v34  ;;  %v3771_v52 = vsel %vm537_vm1, %v3708_v37, 0.0 }
 0x4fe   : > { %v3748_v21 = vadd.f32 %v3747_v40, %v3746_v7 }
 0x4ff   : > { %v3754_v10 = vsel %vm537_vm1, %v3699_v38, 0.0  ;;  %v3758_v41 = vsel %vm537_vm1, %v3701_v0, 0.0 }
 0x500   : > { %v3848_v46 = vpop.permute.xlu1 %3847  ;;  %v3556_v30 = vpop.permute.xlu2 %3555  ;;  %v3755_v31 = vadd.f32 %v3754_v10, %v3753_v4 }
 0x501   : > { %v3704_v58 = vmul.f32 %v3556_v30, %v7616_v18 }
 0x502   : > { %3623 = vperm.xlu0 %4612, %v4964_v36   ;;  %v3757_v48 = vadd.f32 %v3756_v2, %v3755_v31  ;;  %v3769_v36 = vsel %vm537_vm1, %v3707_v19, 0.0 }
 0x503   : > { %v3770_v20 = vadd.f32 %v3769_v36, %v3768_v15  ;;  %v3764_v7 = vsel %vm537_vm1, %v3704_v58, 0.0 }
 0x504   : > { %v3524_v32 = vpop.permute.xlu0 %3523  ;;  %v3759_v56 = vadd.f32 %v3758_v41, %v3757_v48 }
 0x505   : > { %v3696_v35 = vmul.f32 %v3524_v32, %v7616_v18  ;;  %v3772_v60 = vadd.f32 %v3771_v52, %v3770_v20 }
 0x507   : > { %v3749_v27 = vsel %vm537_vm1, %v3696_v35, 0.0  ;;  %v3774_v39 = vadd.f32 %v3773_v14, %v3772_v60 }
 0x508   : > { %v3750_v8 = vadd.f32 %v3749_v27, %v3748_v21  ;;  %v3560_v13 = vpop.permute.xlu1 %3559  ;;  %v3592_v33 = vpop.permute.xlu2 %3591 }
 0x509   : > { %v3713_v49 = vmul.f32 %v3592_v33, %v7625_v63  ;;  %v3705_v27 = vmul.f32 %v3560_v13, %v7625_v63 }
 0x50b   : > { %v3781_v30 = vsel %vm537_vm1, %v3713_v49, 0.0 }
 0x50c   : > { %v3528_v47 = vpop.permute.xlu0 %3527 }
 0x50d   : > { %v3697_v11 = vmul.f32 %v3528_v47, %v7625_v63 }
 0x50f   : > { %v3751_v59 = vsel %vm537_vm1, %v3697_v11, 0.0 }
 0x510   : > { %v3752_v28 = vadd.f32 %v3751_v59, %v3750_v8  ;;  %v3856_v57 = vpop.permute.xlu1 %3855  ;;  %v3660_v32 = vpop.permute.xlu2 %3659  ;;  %v3766_v8 = vsel %vm537_vm1, %v3705_v27, 0.0 }
 0x511   : > { %v3730_v13 = vmul.f32 %v3660_v32, %v7576_v50 }
 0x512   : > { %v3870_v6 = vadd.f32 %v3848_v46, %v3752_v28  ;;  %v3775_v46 = vsel %vm537_vm1, %v3710_v53, 0.0 }
 0x513   : > { %v3776_v35 = vadd.f32 %v3775_v46, %v3774_v39  ;;  %v3813_v33 = vsel %vm537_vm1, %v3730_v13, 0.0 }
 0x514   : > { %v3548_v9 = vpop.permute.xlu0 %3547  ;;  %4535 = vmatmul.msk.f32.vlgmr.msra.gmra.mxu0 %vm537_vm1, %v3870_v6 }
 0x515   : > { %4050 = vmatpush.msra.mxu0 %v7559_v25  ;;  %v3702_v29 = vmul.f32 %v3548_v9, %v7611_v42 }
 0x517   : > { %v3760_v3 = vsel %vm537_vm1, %v3702_v29, 0.0 }
 0x518   : > { %v3761_v1 = vadd.f32 %v3760_v3, %v3759_v56  ;;  %v3668_v55 = vpop.permute.xlu1 %3667  ;;  %v3672_v12 = vpop.permute.xlu2 %3671 }
 0x519   : > { %v3732_v31 = vmul.f32 %v3668_v55, %v7578_v54  ;;  %v3733_v2 = vmul.f32 %v3672_v12, %v7590_v34 }
 0x51a   : > { %v3763_v62 = vadd.f32 %v3762_v51, %v3761_v1 }
 0x51b   : > { %v3816_v29 = vsel %vm537_vm1, %v3732_v31, 0.0  ;;  %v3818_v15 = vsel %vm537_vm1, %v3733_v2, 0.0 }
 0x51c   : > { %v3584_v23 = vpop.permute.xlu0 %3583  ;;  %v3765_v11 = vadd.f32 %v3764_v7, %v3763_v62 }
 0x51d   : > { %v3711_v61 = vmul.f32 %v3584_v23, %v7608_v5 }
 0x51e   : > { %v3767_v28 = vadd.f32 %v3766_v8, %v3765_v11 }
 0x51f   : > { %v3777_v43 = vsel %vm537_vm1, %v3711_v61, 0.0 }
 0x520   : > { %v3778_v21 = vadd.f32 %v3777_v43, %v3776_v35  ;;  %v3632_v10 = vpop.permute.xlu1 %3631  ;;  %v3676_v22 = vpop.permute.xlu2 %3675 }
 0x521   : > { %v3734_v37 = vmul.f32 %v3676_v22, %v7611_v42  ;;  %v3723_v36 = vmul.f32 %v3632_v10, %v7573_v26 }
 0x523   : > { %v3820_v23 = vsel %vm537_vm1, %v3734_v37, 0.0  ;;  %v3799_v56 = vsel %vm537_vm1, %v3723_v36, 0.0 }
 0x524   : > { %v3588_v24 = vpop.permute.xlu0 %3587 }
 0x525   : > { %v3712_v40 = vmul.f32 %v3588_v24, %v7616_v18 }
 0x527   : > { %v3779_v47 = vsel %vm537_vm1, %v3712_v40, 0.0 }
 0x528   : > { %v3780_v38 = vadd.f32 %v3779_v47, %v3778_v21  ;;  %v3680_v19 = vpop.permute.xlu1 %3679  ;;  %v3640_v60 = vpop.permute.xlu2 %3639 }
 0x529   : > { %v3735_v45 = vmul.f32 %v3680_v19, %v7608_v5  ;;  %v3725_v32 = vmul.f32 %v3640_v60, %v7590_v34 }
 0x52a   : > { %v3782_v59 = vadd.f32 %v3781_v30, %v3780_v38 }
 0x52b   : > { %v3822_v20 = vsel %vm537_vm1, %v3735_v45, 0.0  ;;  %v3803_v55 = vsel %vm537_vm1, %v3725_v32, 0.0 }
 0x52c   : > { %v3852_v6 = vpop.permute.xlu0 %3851  ;;  %v3872_v4 = vadd.f32 %v3856_v57, %v3782_v59 }
 0x52d   : > { %v3871_v16 = vadd.f32 %v3852_v6, %v3767_v28 }
 0x52e   : > { %4543 = vmatmul.msk.f32.vlgmr.msrb.gmra.mxu0 %vm537_vm1, %v3872_v4 }
 0x52f   : > { %4538 = vmatmul.msk.f32.vlgmr.msra.gmra.mxu2 %vm537_vm1, %v3871_v16 }
 0x530   : > { %v3596_v14 = vpop.permute.xlu1 %3595  ;;  %v3600_v30 = vpop.permute.xlu2 %3599 }
 0x531   : > { %v3714_v16 = vmul.f32 %v3596_v14, %v7576_v50  ;;  %v3715_v13 = vmul.f32 %v3600_v30, %v7573_v26 }
 0x533   : > { %v3783_v19 = vsel %vm537_vm1, %v3714_v16, 0.0 }
 0x534   : > { %v3664_v9 = vpop.permute.xlu0 %3663 }
 0x535   : > { %v3731_v44 = vmul.f32 %v3664_v9, %v7573_v26 }
 0x537   : > { %v3814_v0 = vsel %vm537_vm1, %v3731_v44, 0.0 }
 0x538   : > { %v3815_v57 = vadd.f32 %v3814_v0, %v3813_v33  ;;  %v3688_v62 = vpop.permute.xlu1 %3687  ;;  %v3604_v4 = vpop.permute.xlu2 %3603  ;;  %v3784_v33 = vsel %vm537_vm1, %v3715_v13, 0.0 }
 0x539   : > { %v3737_v24 = vmul.f32 %v3688_v62, %v7625_v63  ;;  %v3716_v44 = vmul.f32 %v3604_v4, %v7578_v54 }
 0x53a   : > { %v3817_v48 = vadd.f32 %v3816_v29, %v3815_v57  ;;  %v3785_v29 = vadd.f32 %v3784_v33, %v3783_v19 }
 0x53b   : > { %v3826_v27 = vsel %vm537_vm1, %v3737_v24, 0.0  ;;  %v3786_v0 = vsel %vm537_vm1, %v3716_v44, 0.0 }
 0x53c   : > { %v3819_v41 = vadd.f32 %v3818_v15, %v3817_v48  ;;  %v3628_v3 = vpop.permute.xlu0 %3627  ;;  %v3787_v37 = vadd.f32 %v3786_v0, %v3785_v29 }
 0x53d   : > { %v3722_v52 = vmul.f32 %v3628_v3, %v7576_v50 }
 0x53e   : > { %v3821_v53 = vadd.f32 %v3820_v23, %v3819_v41 }
 0x53f   : > { %v3798_v17 = vsel %vm537_vm1, %v3722_v52, 0.0 }
 0x540   : > { %v3800_v1 = vadd.f32 %v3799_v56, %v3798_v17  ;;  %v3823_v61 = vadd.f32 %v3822_v20, %v3821_v53  ;;  %v3608_v59 = vpop.permute.xlu1 %3607 }
 0x541   : > { %v3717_v2 = vmul.f32 %v3608_v59, %v7590_v34 }
 0x543   : > { %v3788_v50 = vsel %vm537_vm1, %v3717_v2, 0.0 }
 0x544   : > { %v3636_v46 = vpop.permute.xlu0 %3635  ;;  %v3789_v15 = vadd.f32 %v3788_v50, %v3787_v37 }
 0x545   : > { %v3724_v39 = vmul.f32 %v3636_v46, %v7578_v54  ;;  %v3652_v46 = vpop.permute.xlu2 %3651 }
 0x547   : > { %v3801_v51 = vsel %vm537_vm1, %v3724_v39, 0.0  ;;  %v3728_v39 = vmul.f32 %v3652_v46, %v7616_v18 }
 0x548   : > { %v3802_v58 = vadd.f32 %v3801_v51, %v3800_v1  ;;  %v3612_v9 = vpop.permute.xlu1 %3611  ;;  %v3876_v1 = vld [vmem:[%s7813_s5] sm:$0xff] }
 0x549   : > { %v3718_v57 = vmul.f32 %v3612_v9, %v7611_v42 }
 0x54a   : > { %v3804_v43 = vadd.f32 %v3803_v55, %v3802_v58  ;;  %v3809_v58 = vsel %vm537_vm1, %v3728_v39, 0.0 }
 0x54b   : > { %v3790_v48 = vsel %vm537_vm1, %v3718_v57, 0.0 }
 0x54c   : > { %v3684_v35 = vpop.permute.xlu0 %3683  ;;  %v3791_v41 = vadd.f32 %v3790_v48, %v3789_v15 }
 0x54d   : > { %v3736_v49 = vmul.f32 %v3684_v35, %v7616_v18  ;;  %v3656_v51 = vpop.permute.xlu2 %3655 }
 0x54e   : > { %v3729_v55 = vmul.f32 %v3656_v51, %v7625_v63 }
 0x54f   : > { %v3824_v40 = vsel %vm537_vm1, %v3736_v49, 0.0 }
 0x550   : > { %v3825_v7 = vadd.f32 %v3824_v40, %v3823_v61  ;;  %v3620_v36 = vpop.permute.xlu1 %3619  ;;  %v3877_v61 = vld [vmem:[%s7813_s5 + $0x8] sm:$0xff] }
 0x551   : > { %v3720_v34 = vmul.f32 %v3620_v36, %v7616_v18 }
 0x552   : > { %v3827_v21 = vadd.f32 %v3826_v27, %v3825_v7 }
 0x554   : > { %v3644_v47 = vpop.permute.xlu0 %3643 }
 0x555   : > { %v3726_v11 = vmul.f32 %v3644_v47, %v7611_v42  ;;  %v3794_v42 = vsel %vm537_vm1, %v3720_v34, 0.0  ;;  %v3864_v18 = vpop.permute.xlu2 %3863 }
 0x557   : > { %v3805_v38 = vsel %vm537_vm1, %v3726_v11, 0.0 }
 0x558   : > { %v3806_v8 = vadd.f32 %v3805_v38, %v3804_v43  ;;  %v3860_v17 = vpop.permute.xlu1 %3859  ;;  %v3811_v43 = vsel %vm537_vm1, %v3729_v55, 0.0 }
 0x55c   : > { %v3648_v12 = vpop.permute.xlu0 %3647 }
 0x55d   : > { %v3727_v28 = vmul.f32 %v3648_v12, %v7608_v5 }
 0x55f   : > { %v3807_v10 = vsel %vm537_vm1, %v3727_v28, 0.0 }
 0x560   : > { %v3808_v6 = vadd.f32 %v3807_v10, %v3806_v8 }
 0x562   : > { %v3810_v62 = vadd.f32 %v3809_v58, %v3808_v6 }
 0x564   : > { %v3868_v31 = vpop.permute.xlu0 %3867  ;;  %v3812_v35 = vadd.f32 %v3811_v43, %v3810_v62 }
 0x565   : > { %v3875_v22 = vadd.f32 %v3868_v31, %v3827_v21 }
 0x566   : > { %v3874_v24 = vadd.f32 %v3864_v18, %v3812_v35 }
 0x56c   : > { %v3616_v26 = vpop.permute.xlu0 %3615 }
 0x56d   : > { %v3719_v54 = vmul.f32 %v3616_v26, %v7608_v5 }
 0x56f   : > { %v3792_v45 = vsel %vm537_vm1, %v3719_v54, 0.0 }
 0x570   : > { %v3793_v3 = vadd.f32 %v3792_v45, %v3791_v41 }
 0x572   : > { %v3795_v53 = vadd.f32 %v3794_v42, %v3793_v3 }
 0x574   : > { %v3624_v23 = vpop.permute.xlu0 %3623 }
 0x575   : > { %v3721_v52 = vmul.f32 %v3624_v23, %v7625_v63 }
 0x577   : > { %v3796_v56 = vsel %vm537_vm1, %v3721_v52, 0.0 }
 0x578   : > { %v3797_v20 = vadd.f32 %v3796_v56, %v3795_v53 }
 0x57a   : > { %v3873_v14 = vadd.f32 %v3860_v17, %v3797_v20 }
 0x57c   : > { %4548 = vmatmul.msk.f32.vlgmr.msra.gmra.mxu0 %vm537_vm1, %v3873_v14 }
 0x591   : > { %v3899_v5 = vpop.f32.mrf.mxu0 }
 0x592   : > { %3923 = vmatpush.msra.mxu1 %v3899_v5 }
 0x593   : > { %4536 = vmatmul.msk.f32.vlgmr.msra.gmra.mxu1 %vm537_vm1, %v3876_v1 }
 0x59b   : > { %4537 = vmatmul.msk.f32.gmra.mxu1 %vm537_vm1, %v3877_v61 }
 0x5ab   : > { %v4003_v60 = vpop.f32.mrf.mxu0 }
 0x5ac   : > { %4021 = vmatpush.msrb.mxu2 %v4003_v60 }
 0x5ad   : > { %4544 = vmatmul.msk.f32.vlgmr.msrb.gmra.mxu2 %vm537_vm1, %v3876_v1 }
 0x5ae   : > { %4148 = vmatpush.msra.mxu2 %v7559_v25 }
 0x5b2   : > { %v3954_v32 = vpop.f32.mrf.mxu2 }
 0x5b3   : > { %3972 = vmatpush.msra.mxu3 %v3954_v32 }
 0x5b4   : > { %4539 = vmatmul.msk.f32.vlgmr.msra.gmra.mxu3 %vm537_vm1, %v3876_v1 }
 0x5b5   : > { %4545 = vmatmul.msk.f32.gmra.mxu2 %vm537_vm1, %v3877_v61  ;;  %4099 = vmatpush.msrb.mxu3 %v7559_v25 }
 0x5bc   : > { %4540 = vmatmul.msk.f32.gmra.mxu3 %vm537_vm1, %v3877_v61 }
 0x5bd   : > { %4558 = vmatmul.msk.f32.vlgmr.msra.gmra.mxu2 %vm537_vm1, %v3875_v22 }
 0x5c4   : > { %4553 = vmatmul.msk.f32.vlgmr.msrb.gmra.mxu3 %vm537_vm1, %v3874_v24 }
 0x5f9   : > { %v4052_v25 = vpop.f32.mrf.mxu0 }
 0x5fa   : > { %4070 = vmatpush.msrb.mxu1 %v4052_v25 }
 0x5fb   : > { %4549 = vmatmul.msk.f32.vlgmr.msrb.gmra.mxu1 %vm537_vm1, %v3876_v1 }
 0x603   : > { %4550 = vmatmul.msk.f32.gmra.mxu1 %vm537_vm1, %v3877_v61 }
 0x610   : > { %v3925_v49 = vpop.f32.mrf.mxu1 }
 0x611   : > { %3932 = vst.msk [vmem:[%s7744_s17] sm:$0xff] %vm3931_vm2, %v3925_v49 }
 0x618   : > { %v3928_v27 = vpop.f32.mrf.mxu1 }
 0x619   : > { %3933 = vst.msk [vmem:[%s7744_s17 + $0x8] sm:$0xff] %vm3931_vm2, %v3928_v27 }
 0x630   : > { %v4023_v63 = vpop.f32.mrf.mxu2 }
 0x631   : > { %4546 = vst.msk [vmem:[%s7744_s17 + $0x20] sm:$0xff] %vm3931_vm2, %v4023_v63 }
 0x637   : > { %v3974_v40 = vpop.f32.mrf.mxu3 }
 0x638   : > { %4541 = vst.msk [vmem:[%s7744_s17 + $0x10] sm:$0xff] %vm3931_vm2, %v3974_v40  ;;  %v4026_v7 = vpop.f32.mrf.mxu2 }
 0x639   : > { %4547 = vst.msk [vmem:[%s7744_s17 + $0x28] sm:$0xff] %vm3931_vm2, %v4026_v7 }
 0x63f   : > { %v3977_v21 = vpop.f32.mrf.mxu3 }
 0x640   : > { %4542 = vst.msk [vmem:[%s7744_s17 + $0x18] sm:$0xff] %vm3931_vm2, %v3977_v21  ;;  %v4150_v47 = vpop.f32.mrf.mxu2 }
 0x641   : > { %4168 = vmatpush.msra.mxu3 %v4150_v47 }
 0x642   : > { %4559 = vmatmul.msk.f32.vlgmr.msra.gmra.mxu3 %vm537_vm1, %v3876_v1 }
 0x647   : > { %v4101_v11 = vpop.f32.mrf.mxu3 }
 0x648   : > { %4119 = vmatpush.msrb.mxu0 %v4101_v11 }
 0x649   : > { %4554 = vmatmul.msk.f32.vlgmr.msrb.gmra.mxu0 %vm537_vm1, %v3876_v1 }
 0x64a   : > { %4560 = vmatmul.msk.f32.gmra.mxu3 %vm537_vm1, %v3877_v61 }
 0x651   : > { %4555 = vmatmul.msk.f32.gmra.mxu0 %vm537_vm1, %v3877_v61 }
 0x678   : > { %v4072_v38 = vpop.f32.mrf.mxu1 }
 0x679   : > { %4551 = vst.msk [vmem:[%s7744_s17 + $0x30] sm:$0xff] %vm3931_vm2, %v4072_v38 }
 0x680   : > { %v4075_v30 = vpop.f32.mrf.mxu1 }
 0x681   : > { %4552 = vst.msk [vmem:[%s7744_s17 + $0x38] sm:$0xff] %vm3931_vm2, %v4075_v30 }
 0x6c5   : > { %v4170_v8 = vpop.f32.mrf.mxu3 }
 0x6c6   : > { %v4121_v59 = vpop.f32.mrf.mxu0  ;;  %4561 = vst.msk [vmem:[%s7744_s17 + $0x50] sm:$0xff] %vm3931_vm2, %v4170_v8 }
 0x6c7   : > { %4556 = vst.msk [vmem:[%s7744_s17 + $0x40] sm:$0xff] %vm3931_vm2, %v4121_v59 }
 0x6cd   : > { %v4173_v12 = vpop.f32.mrf.mxu3 }
 0x6ce   : > { %v4124_v28 = vpop.f32.mrf.mxu0  ;;  %4562 = vst.msk [vmem:[%s7744_s17 + $0x58] sm:$0xff] %vm3931_vm2, %v4173_v12 }
 0x6cf   : > { %4557 = vst.msk [vmem:[%s7744_s17 + $0x48] sm:$0xff] %vm3931_vm2, %v4124_v28 }
 0x6d0   : > { %5020 = shalt.err (!%p5017_p3)
}
 0x6d1   : > { %s5059_s15 = smov 128   ;;  %s5060_s17 = smov 8  }
 0x6d2   : > { %4569 = dma.vmem_to_hbm [thread:$0]  (%p5139_p5), %s4193_s21, 1536, %s4195_s22, %s4180_s28, %s5059_s15, %s5059_s15, %s5060_s17  }
 0x6d3 PF: > { %p4575_p4 = scmp.ge.s32.totalorder %s5055_s27, 2  ;;  %s4209_s13 = sand.u32 1, %s5043_s24  }
 0x6d4   : > { %s4210_s19 = scalar_lea.sflag [#allocation3], %s4209_s13 }
 0x6d5   : > { %p4572_p7 = pnand %p4575_p4, %p5143_p6 }
 0x6d7   : > { %p4573_p8 = pneg %p4572_p7 }
 0x6d9   : > { %5038 = dma.done.wait (%p4573_p8), %s4210_s19, 1536  }
 0x6da   : > { %5040 = vsyncadd (%p4573_p8), %s4210_s19, 4294965760  ;;  %p17_p9 = scmp.ge.s32.totalorder %s5126_s30, 4   ;;  %s8098_s24 = smov %s5047_s25 }
 0x6db   : > { %s8099_s25 = smov %s5051_s26  ;;  %s8100_s26 = smov %s5137_s10 }
 0x6dc   : > { %s8101_s27 = smov %s5126_s30  ;;  %19 = sbr.rel (!%p17_p9) target bundleno = 3 (0x3), region = 99 }
 0x6e1   :  { %4216 = vsyncpa [#allocation3], 1 }
 0x6e2   :  { %4218 = vsyncpa [#allocation3 + $0x1], 1 }

</bundles_post_ra>
